<compile_context>
chip_gen: v5e
topology: v5e:2x2
jax: 0.10.0
libtpu: 0.0.40
codegen_flags: <defaults>
</compile_context>

<pallas_src>
import functools
import math

import jax
import jax.numpy as jnp
from jax.experimental import pallas as pl
from jax.experimental.pallas import tpu as pltpu

N_INPUT = (77, 4)
N_LAYER = 3
N_EMB = 128
LEN_SEQ = 5
LN_EPS = 1e-5
N_CLASSES = 2
PAD_F = 128   # padded (77 + 4) embedding input features
PAD_O = 128   # padded output-head width (lane-dense stores)


def _sigmoid(x):
    return 1.0 / (1.0 + jnp.exp(-x))


def rnn_forward_kernel(x_ref,                    # (S*B, PAD_F) time-major, concat+padded
                       wemb_ref, bemb_ref,       # (PAD_F, H), (1, H)
                       wih_ref, whh_ref,         # (L, H, 3H) each
                       bih_ref, bhh_ref,         # (L, 1, 3H) each
                       gamma_ref, beta_ref,      # (L, 1, H) each
                       wout_ref, bout_ref,       # (H, PAD_O), (1, PAD_O)
                       out_ref,                  # (B, PAD_O)
                       *, B, S):
    H = N_EMB

    # ---- fused embedding: one (S*B, PAD_F) @ (PAD_F, H) matmul -------------
    x = jnp.dot(x_ref[...], wemb_ref[...],
                preferred_element_type=jnp.float32) + bemb_ref[...]   # (S*B, H)

    # ---- encoder: [GRU -> LayerNorm -> ReLU -> Dropout(identity)] x N_LAYER
    # TODO(synk): nn.Dropout is implemented as eval-mode identity (no RNG mask).
    for l in range(N_LAYER):
        wih = wih_ref[l]      # (H, 3H)
        whh = whh_ref[l]      # (H, 3H)
        bih = bih_ref[l]      # (1, 3H)
        bhh = bhh_ref[l]      # (1, 3H)

        # Hoisted input-gate matmul over all S*B rows (bias folded in once).
        gx_all = jnp.dot(x, wih, preferred_element_type=jnp.float32) + bih  # (S*B, 3H)

        h = jnp.zeros((B, H), dtype=jnp.float32)
        outs = []
        for t in range(S):                       # S=5, fully unrolled
            gx = gx_all[t * B:(t + 1) * B, :]    # static, sublane-aligned slice
            gh = jnp.dot(h, whh, preferred_element_type=jnp.float32) + bhh
            r = _sigmoid(gx[:, 0:H] + gh[:, 0:H])
            z = _sigmoid(gx[:, H:2 * H] + gh[:, H:2 * H])
            n = jnp.tanh(gx[:, 2 * H:3 * H] + r * gh[:, 2 * H:3 * H])
            h = (1.0 - z) * n + z * h
            outs.append(h)

        o = jnp.concatenate(outs, axis=0)        # (S*B, H) time-major slab

        # LayerNorm + ReLU on the whole slab in one pass.
        mean = jnp.mean(o, axis=-1, keepdims=True)
        var = jnp.mean(jnp.square(o - mean), axis=-1, keepdims=True)
        y = (o - mean) * jax.lax.rsqrt(var + LN_EPS) * gamma_ref[l] + beta_ref[l]
        x = jnp.maximum(y, 0.0)

    # ---- head: Linear(H -> 2, padded to 128 lanes) on last time step -------
    last = x[(S - 1) * B:S * B, :]               # (B, H)
    logits = jnp.dot(last, wout_ref[...],
                     preferred_element_type=jnp.float32) + bout_ref[...]  # (B, PAD_O)

    col = jax.lax.broadcasted_iota(jnp.int32, logits.shape, 1)
    valid = col < N_CLASSES
    lm = jnp.where(valid, logits, jnp.full_like(logits, -1e30))
    m = jnp.max(lm, axis=1, keepdims=True)
    e = jnp.where(valid, jnp.exp(lm - m), 0.0)
    out_ref[...] = e / jnp.sum(e, axis=1, keepdims=True)


def _pad_last(x, to):
    pad = to - x.shape[-1]
    if pad == 0:
        return x
    cfg = [(0, 0)] * (x.ndim - 1) + [(0, pad)]
    return jnp.pad(x, cfg)


@jax.jit
def rnn_model_forward(params, en_p, en_ts, de_p, de_ts, mask):
    # NOTE: the PyTorch forward only uses de_p and de_ts; en_p/en_ts/mask are unused.
    del en_p, en_ts, mask
    B, S, _ = de_p.shape
    H = N_EMB

    # Fused, time-major, lane-padded input slab: (S*B, PAD_F).
    x = jnp.concatenate([de_p.astype(jnp.float32),
                         de_ts.astype(jnp.float32)], axis=-1)          # (B, S, 81)
    x = jnp.transpose(x, (1, 0, 2)).reshape(S * B, N_INPUT[0] + N_INPUT[1])
    x = _pad_last(x, PAD_F)

    # Fused embedding weight/bias (zero rows for padded features keep math exact).
    wemb = jnp.concatenate([params["wp"], params["wts"]], axis=0)      # (81, H)
    wemb = jnp.pad(wemb, ((0, PAD_F - wemb.shape[0]), (0, 0)))
    bemb = params["bp"] + params["bts"]                                # (1, H)

    # Lane-dense output head.
    wout = jnp.pad(params["wout"], ((0, 0), (0, PAD_O - N_CLASSES)))   # (H, PAD_O)
    bout = jnp.pad(params["bout"], ((0, 0), (0, PAD_O - N_CLASSES)))   # (1, PAD_O)

    args = (x, wemb, bemb,
            params["wih"], params["whh"], params["bih"], params["bhh"],
            params["gamma"], params["beta"],
            wout, bout)

    out = pl.pallas_call(
        functools.partial(rnn_forward_kernel, B=B, S=S),
        out_shape=jax.ShapeDtypeStruct((B, PAD_O), jnp.float32),
        in_specs=[pl.BlockSpec(memory_space=pltpu.MemorySpace.VMEM)] * len(args),
        out_specs=pl.BlockSpec(memory_space=pltpu.MemorySpace.VMEM),
    )(*args)
    return out[:, :N_CLASSES]


def init_params(seed=0):
    key = jax.random.PRNGKey(seed)
    ks = jax.random.split(key, 10)

    def u(k, shape, fan_in):
        b = 1.0 / math.sqrt(fan_in)
        return jax.random.uniform(k, shape, jnp.float32, -b, b)

    H = N_EMB
    return {
        "wp": u(ks[0], (N_INPUT[0], H), N_INPUT[0]),
        "bp": u(ks[1], (1, H), N_INPUT[0]),
        "wts": u(ks[2], (N_INPUT[1], H), N_INPUT[1]),
        "bts": u(ks[3], (1, H), N_INPUT[1]),
        "wih": u(ks[4], (N_LAYER, H, 3 * H), H),
        "whh": u(ks[5], (N_LAYER, H, 3 * H), H),
        "bih": u(ks[6], (N_LAYER, 1, 3 * H), H),
        "bhh": u(ks[7], (N_LAYER, 1, 3 * H), H),
        "gamma": jnp.ones((N_LAYER, 1, H), jnp.float32),
        "beta": jnp.zeros((N_LAYER, 1, H), jnp.float32),
        "wout": u(ks[8], (H, N_CLASSES), H),
        "bout": u(ks[9], (1, N_CLASSES), H),
    }


def rnn_model_reference(params, de_p, de_ts):
    """Pure-JAX reference mirroring the PyTorch forward (eval mode)."""
    B, S, _ = de_p.shape
    H = N_EMB
    hp = jnp.einsum("bsi,ih->bsh", de_p, params["wp"],
                    precision="highest") + params["bp"][0]
    hts = jnp.einsum("bsi,ih->bsh", de_ts, params["wts"],
                     precision="highest") + params["bts"][0]
    x = hp + hts
    for l in range(N_LAYER):
        wih, whh = params["wih"][l], params["whh"][l]
        bih, bhh = params["bih"][l, 0], params["bhh"][l, 0]
        h = jnp.zeros((B, H), jnp.float32)
        outs = []
        for t in range(S):
            gx = jnp.dot(x[:, t, :], wih, precision="highest") + bih
            gh = jnp.dot(h, whh, precision="highest") + bhh
            r = _sigmoid(gx[:, :H] + gh[:, :H])
            z = _sigmoid(gx[:, H:2 * H] + gh[:, H:2 * H])
            n = jnp.tanh(gx[:, 2 * H:] + r * gh[:, 2 * H:])
            h = (1.0 - z) * n + z * h
            outs.append(h)
        seq = jnp.stack(outs, axis=1)
        mean = jnp.mean(seq, -1, keepdims=True)
        var = jnp.mean((seq - mean) ** 2, -1, keepdims=True)
        seq = (seq - mean) / jnp.sqrt(var + LN_EPS) * params["gamma"][l, 0] + params["beta"][l, 0]
        x = jnp.maximum(seq, 0.0)
    logits = jnp.dot(x[:, -1, :], params["wout"], precision="highest") + params["bout"][0]
    return jax.nn.softmax(logits, axis=1)


if __name__ == "__main__":
    B, S = 8, LEN_SEQ
    key = jax.random.PRNGKey(0)
    k1, k2, k3, k4 = jax.random.split(key, 4)
    en_p = jax.random.normal(k1, (B, S, N_INPUT[0]), jnp.float32)   # unused by forward
    en_ts = jax.random.normal(k2, (B, S, N_INPUT[1]), jnp.float32)  # unused by forward
    de_p = jax.random.normal(k3, (B, S, N_INPUT[0]), jnp.float32)
    de_ts = jax.random.normal(k4, (B, S, N_INPUT[1]), jnp.float32)
    mask = jnp.ones((B, S), jnp.float32)                            # unused by forward

    params = init_params(0)

    out = rnn_model_forward(params, en_p, en_ts, de_p, de_ts, mask)
    out = jax.block_until_ready(out)

    ref = rnn_model_reference(params, de_p, de_ts)
    assert out.shape == (B, 2), out.shape
    assert bool(jnp.all(jnp.isfinite(out)))
    assert bool(jnp.allclose(jnp.sum(out, axis=1), 1.0, atol=1e-4))
    assert bool(jnp.allclose(out, ref, atol=5e-3)), (out, ref)

    print("KERNEL_OK")
</pallas_src>

<mosaic_0001>
module attributes {stable_mosaic.version = 11 : i64} {
  func.func @rnn_forward_kernel(%arg0: memref<40x128xf32, #tpu.memory_space<vmem>>, %arg1: memref<128x128xf32, #tpu.memory_space<vmem>>, %arg2: memref<1x128xf32, #tpu.memory_space<vmem>>, %arg3: memref<3x128x384xf32, #tpu.memory_space<vmem>>, %arg4: memref<3x128x384xf32, #tpu.memory_space<vmem>>, %arg5: memref<3x1x384xf32, #tpu.memory_space<vmem>>, %arg6: memref<3x1x384xf32, #tpu.memory_space<vmem>>, %arg7: memref<3x1x128xf32, #tpu.memory_space<vmem>>, %arg8: memref<3x1x128xf32, #tpu.memory_space<vmem>>, %arg9: memref<128x128xf32, #tpu.memory_space<vmem>>, %arg10: memref<1x128xf32, #tpu.memory_space<vmem>>, %arg11: memref<8x128xf32, #tpu.memory_space<vmem>>) attributes {dimension_semantics = [], scalar_prefetch = 0 : i64, scratch_operands = 0 : i64, tpu.core_type = #tpu.core_type<tc>} {
    %c0 = arith.constant 0 : index
    %c0_0 = arith.constant 0 : index
    %0 = vector.load %arg0[%c0, %c0_0] : memref<40x128xf32, #tpu.memory_space<vmem>>, vector<40x128xf32>
    %c0_1 = arith.constant 0 : index
    %c0_2 = arith.constant 0 : index
    %1 = vector.load %arg1[%c0_1, %c0_2] : memref<128x128xf32, #tpu.memory_space<vmem>>, vector<128x128xf32>
    %cst = arith.constant dense<0.000000e+00> : vector<40x128xf32>
    %2 = tpu.matmul %0, %1, %cst {dimension_numbers = #tpu.dot_dimension_numbers<[1], [0], [0], [1], [0, 0, 1, 1], [], []>} : vector<40x128xf32>, vector<128x128xf32>, vector<40x128xf32> -> vector<40x128xf32>
    %c0_3 = arith.constant 0 : index
    %c0_4 = arith.constant 0 : index
    %3 = vector.load %arg2[%c0_3, %c0_4] : memref<1x128xf32, #tpu.memory_space<vmem>>, vector<1x128xf32>
    %4 = vector.broadcast %3 : vector<1x128xf32> to vector<40x128xf32>
    %5 = arith.addf %2, %4 : vector<40x128xf32>
    %c0_5 = arith.constant 0 : index
    %c0_6 = arith.constant 0 : index
    %c0_7 = arith.constant 0 : index
    %6 = vector.load %arg3[%c0_5, %c0_6, %c0_7] : memref<3x128x384xf32, #tpu.memory_space<vmem>>, vector<1x128x384xf32>
    %7 = vector.shape_cast %6 : vector<1x128x384xf32> to vector<128x384xf32>
    %c0_8 = arith.constant 0 : index
    %c0_9 = arith.constant 0 : index
    %c0_10 = arith.constant 0 : index
    %8 = vector.load %arg4[%c0_8, %c0_9, %c0_10] : memref<3x128x384xf32, #tpu.memory_space<vmem>>, vector<1x128x384xf32>
    %9 = vector.shape_cast %8 : vector<1x128x384xf32> to vector<128x384xf32>
    %c0_11 = arith.constant 0 : index
    %c0_12 = arith.constant 0 : index
    %c0_13 = arith.constant 0 : index
    %10 = vector.load %arg5[%c0_11, %c0_12, %c0_13] : memref<3x1x384xf32, #tpu.memory_space<vmem>>, vector<1x1x384xf32>
    %11 = vector.shape_cast %10 : vector<1x1x384xf32> to vector<1x384xf32>
    %c0_14 = arith.constant 0 : index
    %c0_15 = arith.constant 0 : index
    %c0_16 = arith.constant 0 : index
    %12 = vector.load %arg6[%c0_14, %c0_15, %c0_16] : memref<3x1x384xf32, #tpu.memory_space<vmem>>, vector<1x1x384xf32>
    %13 = vector.shape_cast %12 : vector<1x1x384xf32> to vector<1x384xf32>
    %cst_17 = arith.constant dense<0.000000e+00> : vector<40x384xf32>
    %14 = tpu.matmul %5, %7, %cst_17 {dimension_numbers = #tpu.dot_dimension_numbers<[1], [0], [0], [1], [0, 0, 1, 1], [], []>} : vector<40x128xf32>, vector<128x384xf32>, vector<40x384xf32> -> vector<40x384xf32>
    %15 = vector.broadcast %11 : vector<1x384xf32> to vector<40x384xf32>
    %16 = arith.addf %14, %15 : vector<40x384xf32>
    %cst_18 = arith.constant 0.000000e+00 : f32
    %17 = vector.broadcast %cst_18 : f32 to vector<8x128xf32>
    %18 = vector.extract_strided_slice %16 {offsets = [0, 0], sizes = [8, 384], strides = [1, 1]} : vector<40x384xf32> to vector<8x384xf32>
    %cst_19 = arith.constant dense<0.000000e+00> : vector<8x384xf32>
    %19 = tpu.matmul %17, %9, %cst_19 {dimension_numbers = #tpu.dot_dimension_numbers<[1], [0], [0], [1], [0, 0, 1, 1], [], []>} : vector<8x128xf32>, vector<128x384xf32>, vector<8x384xf32> -> vector<8x384xf32>
    %20 = vector.broadcast %13 : vector<1x384xf32> to vector<8x384xf32>
    %21 = arith.addf %19, %20 : vector<8x384xf32>
    %22 = vector.extract_strided_slice %18 {offsets = [0, 0], sizes = [8, 128], strides = [1, 1]} : vector<8x384xf32> to vector<8x128xf32>
    %23 = vector.extract_strided_slice %21 {offsets = [0, 0], sizes = [8, 128], strides = [1, 1]} : vector<8x384xf32> to vector<8x128xf32>
    %24 = arith.addf %22, %23 : vector<8x128xf32>
    %cst_20 = arith.constant 0.000000e+00 : f32
    %25 = vector.broadcast %cst_20 : f32 to vector<8x128xf32>
    %26 = arith.subf %25, %24 : vector<8x128xf32>
    %27 = math.exp %26 : vector<8x128xf32>
    %cst_21 = arith.constant 1.000000e+00 : f32
    %28 = vector.broadcast %cst_21 : f32 to vector<8x128xf32>
    %29 = arith.addf %28, %27 : vector<8x128xf32>
    %cst_22 = arith.constant 1.000000e+00 : f32
    %30 = vector.broadcast %cst_22 : f32 to vector<8x128xf32>
    %31 = arith.divf %30, %29 : vector<8x128xf32>
    %32 = vector.extract_strided_slice %18 {offsets = [0, 128], sizes = [8, 128], strides = [1, 1]} : vector<8x384xf32> to vector<8x128xf32>
    %33 = vector.extract_strided_slice %21 {offsets = [0, 128], sizes = [8, 128], strides = [1, 1]} : vector<8x384xf32> to vector<8x128xf32>
    %34 = arith.addf %32, %33 : vector<8x128xf32>
    %cst_23 = arith.constant 0.000000e+00 : f32
    %35 = vector.broadcast %cst_23 : f32 to vector<8x128xf32>
    %36 = arith.subf %35, %34 : vector<8x128xf32>
    %37 = math.exp %36 : vector<8x128xf32>
    %cst_24 = arith.constant 1.000000e+00 : f32
    %38 = vector.broadcast %cst_24 : f32 to vector<8x128xf32>
    %39 = arith.addf %38, %37 : vector<8x128xf32>
    %cst_25 = arith.constant 1.000000e+00 : f32
    %40 = vector.broadcast %cst_25 : f32 to vector<8x128xf32>
    %41 = arith.divf %40, %39 : vector<8x128xf32>
    %42 = vector.extract_strided_slice %18 {offsets = [0, 256], sizes = [8, 128], strides = [1, 1]} : vector<8x384xf32> to vector<8x128xf32>
    %43 = vector.extract_strided_slice %21 {offsets = [0, 256], sizes = [8, 128], strides = [1, 1]} : vector<8x384xf32> to vector<8x128xf32>
    %44 = arith.mulf %31, %43 : vector<8x128xf32>
    %45 = arith.addf %42, %44 : vector<8x128xf32>
    %46 = math.tanh %45 : vector<8x128xf32>
    %cst_26 = arith.constant 1.000000e+00 : f32
    %47 = vector.broadcast %cst_26 : f32 to vector<8x128xf32>
    %48 = arith.subf %47, %41 : vector<8x128xf32>
    %49 = arith.mulf %48, %46 : vector<8x128xf32>
    %50 = arith.mulf %41, %17 : vector<8x128xf32>
    %51 = arith.addf %49, %50 : vector<8x128xf32>
    %52 = vector.extract_strided_slice %16 {offsets = [8, 0], sizes = [8, 384], strides = [1, 1]} : vector<40x384xf32> to vector<8x384xf32>
    %cst_27 = arith.constant dense<0.000000e+00> : vector<8x384xf32>
    %53 = tpu.matmul %51, %9, %cst_27 {dimension_numbers = #tpu.dot_dimension_numbers<[1], [0], [0], [1], [0, 0, 1, 1], [], []>} : vector<8x128xf32>, vector<128x384xf32>, vector<8x384xf32> -> vector<8x384xf32>
    %54 = vector.broadcast %13 : vector<1x384xf32> to vector<8x384xf32>
    %55 = arith.addf %53, %54 : vector<8x384xf32>
    %56 = vector.extract_strided_slice %52 {offsets = [0, 0], sizes = [8, 128], strides = [1, 1]} : vector<8x384xf32> to vector<8x128xf32>
    %57 = vector.extract_strided_slice %55 {offsets = [0, 0], sizes = [8, 128], strides = [1, 1]} : vector<8x384xf32> to vector<8x128xf32>
    %58 = arith.addf %56, %57 : vector<8x128xf32>
    %cst_28 = arith.constant 0.000000e+00 : f32
    %59 = vector.broadcast %cst_28 : f32 to vector<8x128xf32>
    %60 = arith.subf %59, %58 : vector<8x128xf32>
    %61 = math.exp %60 : vector<8x128xf32>
    %cst_29 = arith.constant 1.000000e+00 : f32
    %62 = vector.broadcast %cst_29 : f32 to vector<8x128xf32>
    %63 = arith.addf %62, %61 : vector<8x128xf32>
    %cst_30 = arith.constant 1.000000e+00 : f32
    %64 = vector.broadcast %cst_30 : f32 to vector<8x128xf32>
    %65 = arith.divf %64, %63 : vector<8x128xf32>
    %66 = vector.extract_strided_slice %52 {offsets = [0, 128], sizes = [8, 128], strides = [1, 1]} : vector<8x384xf32> to vector<8x128xf32>
    %67 = vector.extract_strided_slice %55 {offsets = [0, 128], sizes = [8, 128], strides = [1, 1]} : vector<8x384xf32> to vector<8x128xf32>
    %68 = arith.addf %66, %67 : vector<8x128xf32>
    %cst_31 = arith.constant 0.000000e+00 : f32
    %69 = vector.broadcast %cst_31 : f32 to vector<8x128xf32>
    %70 = arith.subf %69, %68 : vector<8x128xf32>
    %71 = math.exp %70 : vector<8x128xf32>
    %cst_32 = arith.constant 1.000000e+00 : f32
    %72 = vector.broadcast %cst_32 : f32 to vector<8x128xf32>
    %73 = arith.addf %72, %71 : vector<8x128xf32>
    %cst_33 = arith.constant 1.000000e+00 : f32
    %74 = vector.broadcast %cst_33 : f32 to vector<8x128xf32>
    %75 = arith.divf %74, %73 : vector<8x128xf32>
    %76 = vector.extract_strided_slice %52 {offsets = [0, 256], sizes = [8, 128], strides = [1, 1]} : vector<8x384xf32> to vector<8x128xf32>
    %77 = vector.extract_strided_slice %55 {offsets = [0, 256], sizes = [8, 128], strides = [1, 1]} : vector<8x384xf32> to vector<8x128xf32>
    %78 = arith.mulf %65, %77 : vector<8x128xf32>
    %79 = arith.addf %76, %78 : vector<8x128xf32>
    %80 = math.tanh %79 : vector<8x128xf32>
    %cst_34 = arith.constant 1.000000e+00 : f32
    %81 = vector.broadcast %cst_34 : f32 to vector<8x128xf32>
    %82 = arith.subf %81, %75 : vector<8x128xf32>
    %83 = arith.mulf %82, %80 : vector<8x128xf32>
    %84 = arith.mulf %75, %51 : vector<8x128xf32>
    %85 = arith.addf %83, %84 : vector<8x128xf32>
    %86 = vector.extract_strided_slice %16 {offsets = [16, 0], sizes = [8, 384], strides = [1, 1]} : vector<40x384xf32> to vector<8x384xf32>
    %cst_35 = arith.constant dense<0.000000e+00> : vector<8x384xf32>
    %87 = tpu.matmul %85, %9, %cst_35 {dimension_numbers = #tpu.dot_dimension_numbers<[1], [0], [0], [1], [0, 0, 1, 1], [], []>} : vector<8x128xf32>, vector<128x384xf32>, vector<8x384xf32> -> vector<8x384xf32>
    %88 = vector.broadcast %13 : vector<1x384xf32> to vector<8x384xf32>
    %89 = arith.addf %87, %88 : vector<8x384xf32>
    %90 = vector.extract_strided_slice %86 {offsets = [0, 0], sizes = [8, 128], strides = [1, 1]} : vector<8x384xf32> to vector<8x128xf32>
    %91 = vector.extract_strided_slice %89 {offsets = [0, 0], sizes = [8, 128], strides = [1, 1]} : vector<8x384xf32> to vector<8x128xf32>
    %92 = arith.addf %90, %91 : vector<8x128xf32>
    %cst_36 = arith.constant 0.000000e+00 : f32
    %93 = vector.broadcast %cst_36 : f32 to vector<8x128xf32>
    %94 = arith.subf %93, %92 : vector<8x128xf32>
    %95 = math.exp %94 : vector<8x128xf32>
    %cst_37 = arith.constant 1.000000e+00 : f32
    %96 = vector.broadcast %cst_37 : f32 to vector<8x128xf32>
    %97 = arith.addf %96, %95 : vector<8x128xf32>
    %cst_38 = arith.constant 1.000000e+00 : f32
    %98 = vector.broadcast %cst_38 : f32 to vector<8x128xf32>
    %99 = arith.divf %98, %97 : vector<8x128xf32>
    %100 = vector.extract_strided_slice %86 {offsets = [0, 128], sizes = [8, 128], strides = [1, 1]} : vector<8x384xf32> to vector<8x128xf32>
    %101 = vector.extract_strided_slice %89 {offsets = [0, 128], sizes = [8, 128], strides = [1, 1]} : vector<8x384xf32> to vector<8x128xf32>
    %102 = arith.addf %100, %101 : vector<8x128xf32>
    %cst_39 = arith.constant 0.000000e+00 : f32
    %103 = vector.broadcast %cst_39 : f32 to vector<8x128xf32>
    %104 = arith.subf %103, %102 : vector<8x128xf32>
    %105 = math.exp %104 : vector<8x128xf32>
    %cst_40 = arith.constant 1.000000e+00 : f32
    %106 = vector.broadcast %cst_40 : f32 to vector<8x128xf32>
    %107 = arith.addf %106, %105 : vector<8x128xf32>
    %cst_41 = arith.constant 1.000000e+00 : f32
    %108 = vector.broadcast %cst_41 : f32 to vector<8x128xf32>
    %109 = arith.divf %108, %107 : vector<8x128xf32>
    %110 = vector.extract_strided_slice %86 {offsets = [0, 256], sizes = [8, 128], strides = [1, 1]} : vector<8x384xf32> to vector<8x128xf32>
    %111 = vector.extract_strided_slice %89 {offsets = [0, 256], sizes = [8, 128], strides = [1, 1]} : vector<8x384xf32> to vector<8x128xf32>
    %112 = arith.mulf %99, %111 : vector<8x128xf32>
    %113 = arith.addf %110, %112 : vector<8x128xf32>
    %114 = math.tanh %113 : vector<8x128xf32>
    %cst_42 = arith.constant 1.000000e+00 : f32
    %115 = vector.broadcast %cst_42 : f32 to vector<8x128xf32>
    %116 = arith.subf %115, %109 : vector<8x128xf32>
    %117 = arith.mulf %116, %114 : vector<8x128xf32>
    %118 = arith.mulf %109, %85 : vector<8x128xf32>
    %119 = arith.addf %117, %118 : vector<8x128xf32>
    %120 = vector.extract_strided_slice %16 {offsets = [24, 0], sizes = [8, 384], strides = [1, 1]} : vector<40x384xf32> to vector<8x384xf32>
    %cst_43 = arith.constant dense<0.000000e+00> : vector<8x384xf32>
    %121 = tpu.matmul %119, %9, %cst_43 {dimension_numbers = #tpu.dot_dimension_numbers<[1], [0], [0], [1], [0, 0, 1, 1], [], []>} : vector<8x128xf32>, vector<128x384xf32>, vector<8x384xf32> -> vector<8x384xf32>
    %122 = vector.broadcast %13 : vector<1x384xf32> to vector<8x384xf32>
    %123 = arith.addf %121, %122 : vector<8x384xf32>
    %124 = vector.extract_strided_slice %120 {offsets = [0, 0], sizes = [8, 128], strides = [1, 1]} : vector<8x384xf32> to vector<8x128xf32>
    %125 = vector.extract_strided_slice %123 {offsets = [0, 0], sizes = [8, 128], strides = [1, 1]} : vector<8x384xf32> to vector<8x128xf32>
    %126 = arith.addf %124, %125 : vector<8x128xf32>
    %cst_44 = arith.constant 0.000000e+00 : f32
    %127 = vector.broadcast %cst_44 : f32 to vector<8x128xf32>
    %128 = arith.subf %127, %126 : vector<8x128xf32>
    %129 = math.exp %128 : vector<8x128xf32>
    %cst_45 = arith.constant 1.000000e+00 : f32
    %130 = vector.broadcast %cst_45 : f32 to vector<8x128xf32>
    %131 = arith.addf %130, %129 : vector<8x128xf32>
    %cst_46 = arith.constant 1.000000e+00 : f32
    %132 = vector.broadcast %cst_46 : f32 to vector<8x128xf32>
    %133 = arith.divf %132, %131 : vector<8x128xf32>
    %134 = vector.extract_strided_slice %120 {offsets = [0, 128], sizes = [8, 128], strides = [1, 1]} : vector<8x384xf32> to vector<8x128xf32>
    %135 = vector.extract_strided_slice %123 {offsets = [0, 128], sizes = [8, 128], strides = [1, 1]} : vector<8x384xf32> to vector<8x128xf32>
    %136 = arith.addf %134, %135 : vector<8x128xf32>
    %cst_47 = arith.constant 0.000000e+00 : f32
    %137 = vector.broadcast %cst_47 : f32 to vector<8x128xf32>
    %138 = arith.subf %137, %136 : vector<8x128xf32>
    %139 = math.exp %138 : vector<8x128xf32>
    %cst_48 = arith.constant 1.000000e+00 : f32
    %140 = vector.broadcast %cst_48 : f32 to vector<8x128xf32>
    %141 = arith.addf %140, %139 : vector<8x128xf32>
    %cst_49 = arith.constant 1.000000e+00 : f32
    %142 = vector.broadcast %cst_49 : f32 to vector<8x128xf32>
    %143 = arith.divf %142, %141 : vector<8x128xf32>
    %144 = vector.extract_strided_slice %120 {offsets = [0, 256], sizes = [8, 128], strides = [1, 1]} : vector<8x384xf32> to vector<8x128xf32>
    %145 = vector.extract_strided_slice %123 {offsets = [0, 256], sizes = [8, 128], strides = [1, 1]} : vector<8x384xf32> to vector<8x128xf32>
    %146 = arith.mulf %133, %145 : vector<8x128xf32>
    %147 = arith.addf %144, %146 : vector<8x128xf32>
    %148 = math.tanh %147 : vector<8x128xf32>
    %cst_50 = arith.constant 1.000000e+00 : f32
    %149 = vector.broadcast %cst_50 : f32 to vector<8x128xf32>
    %150 = arith.subf %149, %143 : vector<8x128xf32>
    %151 = arith.mulf %150, %148 : vector<8x128xf32>
    %152 = arith.mulf %143, %119 : vector<8x128xf32>
    %153 = arith.addf %151, %152 : vector<8x128xf32>
    %154 = vector.extract_strided_slice %16 {offsets = [32, 0], sizes = [8, 384], strides = [1, 1]} : vector<40x384xf32> to vector<8x384xf32>
    %cst_51 = arith.constant dense<0.000000e+00> : vector<8x384xf32>
    %155 = tpu.matmul %153, %9, %cst_51 {dimension_numbers = #tpu.dot_dimension_numbers<[1], [0], [0], [1], [0, 0, 1, 1], [], []>} : vector<8x128xf32>, vector<128x384xf32>, vector<8x384xf32> -> vector<8x384xf32>
    %156 = vector.broadcast %13 : vector<1x384xf32> to vector<8x384xf32>
    %157 = arith.addf %155, %156 : vector<8x384xf32>
    %158 = vector.extract_strided_slice %154 {offsets = [0, 0], sizes = [8, 128], strides = [1, 1]} : vector<8x384xf32> to vector<8x128xf32>
    %159 = vector.extract_strided_slice %157 {offsets = [0, 0], sizes = [8, 128], strides = [1, 1]} : vector<8x384xf32> to vector<8x128xf32>
    %160 = arith.addf %158, %159 : vector<8x128xf32>
    %cst_52 = arith.constant 0.000000e+00 : f32
    %161 = vector.broadcast %cst_52 : f32 to vector<8x128xf32>
    %162 = arith.subf %161, %160 : vector<8x128xf32>
    %163 = math.exp %162 : vector<8x128xf32>
    %cst_53 = arith.constant 1.000000e+00 : f32
    %164 = vector.broadcast %cst_53 : f32 to vector<8x128xf32>
    %165 = arith.addf %164, %163 : vector<8x128xf32>
    %cst_54 = arith.constant 1.000000e+00 : f32
    %166 = vector.broadcast %cst_54 : f32 to vector<8x128xf32>
    %167 = arith.divf %166, %165 : vector<8x128xf32>
    %168 = vector.extract_strided_slice %154 {offsets = [0, 128], sizes = [8, 128], strides = [1, 1]} : vector<8x384xf32> to vector<8x128xf32>
    %169 = vector.extract_strided_slice %157 {offsets = [0, 128], sizes = [8, 128], strides = [1, 1]} : vector<8x384xf32> to vector<8x128xf32>
    %170 = arith.addf %168, %169 : vector<8x128xf32>
    %cst_55 = arith.constant 0.000000e+00 : f32
    %171 = vector.broadcast %cst_55 : f32 to vector<8x128xf32>
    %172 = arith.subf %171, %170 : vector<8x128xf32>
    %173 = math.exp %172 : vector<8x128xf32>
    %cst_56 = arith.constant 1.000000e+00 : f32
    %174 = vector.broadcast %cst_56 : f32 to vector<8x128xf32>
    %175 = arith.addf %174, %173 : vector<8x128xf32>
    %cst_57 = arith.constant 1.000000e+00 : f32
    %176 = vector.broadcast %cst_57 : f32 to vector<8x128xf32>
    %177 = arith.divf %176, %175 : vector<8x128xf32>
    %178 = vector.extract_strided_slice %154 {offsets = [0, 256], sizes = [8, 128], strides = [1, 1]} : vector<8x384xf32> to vector<8x128xf32>
    %179 = vector.extract_strided_slice %157 {offsets = [0, 256], sizes = [8, 128], strides = [1, 1]} : vector<8x384xf32> to vector<8x128xf32>
    %180 = arith.mulf %167, %179 : vector<8x128xf32>
    %181 = arith.addf %178, %180 : vector<8x128xf32>
    %182 = math.tanh %181 : vector<8x128xf32>
    %cst_58 = arith.constant 1.000000e+00 : f32
    %183 = vector.broadcast %cst_58 : f32 to vector<8x128xf32>
    %184 = arith.subf %183, %177 : vector<8x128xf32>
    %185 = arith.mulf %184, %182 : vector<8x128xf32>
    %186 = arith.mulf %177, %153 : vector<8x128xf32>
    %187 = arith.addf %185, %186 : vector<8x128xf32>
    %188 = tpu.concatenate %51, %85, %119, %153, %187 in 0 : vector<8x128xf32>, vector<8x128xf32>, vector<8x128xf32>, vector<8x128xf32>, vector<8x128xf32> -> vector<40x128xf32>
    %cst_59 = arith.constant dense<0.000000e+00> : vector<40xf32>
    %189 = vector.multi_reduction <add>, %188, %cst_59 [1] : vector<40x128xf32> to vector<40xf32>
    %190 = vector.shape_cast %189 : vector<40xf32> to vector<40x1xf32>
    %cst_60 = arith.constant 1.280000e+02 : f32
    %191 = vector.broadcast %cst_60 : f32 to vector<40x1xf32>
    %192 = arith.divf %190, %191 : vector<40x1xf32>
    %193 = vector.broadcast %192 : vector<40x1xf32> to vector<40x128xf32>
    %194 = arith.subf %188, %193 : vector<40x128xf32>
    %195 = arith.mulf %194, %194 : vector<40x128xf32>
    %cst_61 = arith.constant dense<0.000000e+00> : vector<40xf32>
    %196 = vector.multi_reduction <add>, %195, %cst_61 [1] : vector<40x128xf32> to vector<40xf32>
    %197 = vector.shape_cast %196 : vector<40xf32> to vector<40x1xf32>
    %cst_62 = arith.constant 1.280000e+02 : f32
    %198 = vector.broadcast %cst_62 : f32 to vector<40x1xf32>
    %199 = arith.divf %197, %198 : vector<40x1xf32>
    %200 = vector.broadcast %192 : vector<40x1xf32> to vector<40x128xf32>
    %201 = arith.subf %188, %200 : vector<40x128xf32>
    %cst_63 = arith.constant 9.99999974E-6 : f32
    %202 = vector.broadcast %cst_63 : f32 to vector<40x1xf32>
    %203 = arith.addf %199, %202 : vector<40x1xf32>
    %204 = math.rsqrt %203 : vector<40x1xf32>
    %205 = vector.broadcast %204 : vector<40x1xf32> to vector<40x128xf32>
    %206 = arith.mulf %201, %205 : vector<40x128xf32>
    %c0_64 = arith.constant 0 : index
    %c0_65 = arith.constant 0 : index
    %c0_66 = arith.constant 0 : index
    %207 = vector.load %arg7[%c0_64, %c0_65, %c0_66] : memref<3x1x128xf32, #tpu.memory_space<vmem>>, vector<1x1x128xf32>
    %208 = vector.shape_cast %207 : vector<1x1x128xf32> to vector<1x128xf32>
    %209 = vector.broadcast %208 : vector<1x128xf32> to vector<40x128xf32>
    %210 = arith.mulf %206, %209 : vector<40x128xf32>
    %c0_67 = arith.constant 0 : index
    %c0_68 = arith.constant 0 : index
    %c0_69 = arith.constant 0 : index
    %211 = vector.load %arg8[%c0_67, %c0_68, %c0_69] : memref<3x1x128xf32, #tpu.memory_space<vmem>>, vector<1x1x128xf32>
    %212 = vector.shape_cast %211 : vector<1x1x128xf32> to vector<1x128xf32>
    %213 = vector.broadcast %212 : vector<1x128xf32> to vector<40x128xf32>
    %214 = arith.addf %210, %213 : vector<40x128xf32>
    %cst_70 = arith.constant 0.000000e+00 : f32
    %215 = vector.broadcast %cst_70 : f32 to vector<40x128xf32>
    %216 = arith.maximumf %214, %215 : vector<40x128xf32>
    %c1 = arith.constant 1 : index
    %c0_71 = arith.constant 0 : index
    %c0_72 = arith.constant 0 : index
    %217 = vector.load %arg3[%c1, %c0_71, %c0_72] : memref<3x128x384xf32, #tpu.memory_space<vmem>>, vector<1x128x384xf32>
    %218 = vector.shape_cast %217 : vector<1x128x384xf32> to vector<128x384xf32>
    %c1_73 = arith.constant 1 : index
    %c0_74 = arith.constant 0 : index
    %c0_75 = arith.constant 0 : index
    %219 = vector.load %arg4[%c1_73, %c0_74, %c0_75] : memref<3x128x384xf32, #tpu.memory_space<vmem>>, vector<1x128x384xf32>
    %220 = vector.shape_cast %219 : vector<1x128x384xf32> to vector<128x384xf32>
    %c1_76 = arith.constant 1 : index
    %c0_77 = arith.constant 0 : index
    %c0_78 = arith.constant 0 : index
    %221 = vector.load %arg5[%c1_76, %c0_77, %c0_78] : memref<3x1x384xf32, #tpu.memory_space<vmem>>, vector<1x1x384xf32>
    %222 = vector.shape_cast %221 : vector<1x1x384xf32> to vector<1x384xf32>
    %c1_79 = arith.constant 1 : index
    %c0_80 = arith.constant 0 : index
    %c0_81 = arith.constant 0 : index
    %223 = vector.load %arg6[%c1_79, %c0_80, %c0_81] : memref<3x1x384xf32, #tpu.memory_space<vmem>>, vector<1x1x384xf32>
    %224 = vector.shape_cast %223 : vector<1x1x384xf32> to vector<1x384xf32>
    %cst_82 = arith.constant dense<0.000000e+00> : vector<40x384xf32>
    %225 = tpu.matmul %216, %218, %cst_82 {dimension_numbers = #tpu.dot_dimension_numbers<[1], [0], [0], [1], [0, 0, 1, 1], [], []>} : vector<40x128xf32>, vector<128x384xf32>, vector<40x384xf32> -> vector<40x384xf32>
    %226 = vector.broadcast %222 : vector<1x384xf32> to vector<40x384xf32>
    %227 = arith.addf %225, %226 : vector<40x384xf32>
    %cst_83 = arith.constant 0.000000e+00 : f32
    %228 = vector.broadcast %cst_83 : f32 to vector<8x128xf32>
    %229 = vector.extract_strided_slice %227 {offsets = [0, 0], sizes = [8, 384], strides = [1, 1]} : vector<40x384xf32> to vector<8x384xf32>
    %cst_84 = arith.constant dense<0.000000e+00> : vector<8x384xf32>
    %230 = tpu.matmul %228, %220, %cst_84 {dimension_numbers = #tpu.dot_dimension_numbers<[1], [0], [0], [1], [0, 0, 1, 1], [], []>} : vector<8x128xf32>, vector<128x384xf32>, vector<8x384xf32> -> vector<8x384xf32>
    %231 = vector.broadcast %224 : vector<1x384xf32> to vector<8x384xf32>
    %232 = arith.addf %230, %231 : vector<8x384xf32>
    %233 = vector.extract_strided_slice %229 {offsets = [0, 0], sizes = [8, 128], strides = [1, 1]} : vector<8x384xf32> to vector<8x128xf32>
    %234 = vector.extract_strided_slice %232 {offsets = [0, 0], sizes = [8, 128], strides = [1, 1]} : vector<8x384xf32> to vector<8x128xf32>
    %235 = arith.addf %233, %234 : vector<8x128xf32>
    %cst_85 = arith.constant 0.000000e+00 : f32
    %236 = vector.broadcast %cst_85 : f32 to vector<8x128xf32>
    %237 = arith.subf %236, %235 : vector<8x128xf32>
    %238 = math.exp %237 : vector<8x128xf32>
    %cst_86 = arith.constant 1.000000e+00 : f32
    %239 = vector.broadcast %cst_86 : f32 to vector<8x128xf32>
    %240 = arith.addf %239, %238 : vector<8x128xf32>
    %cst_87 = arith.constant 1.000000e+00 : f32
    %241 = vector.broadcast %cst_87 : f32 to vector<8x128xf32>
    %242 = arith.divf %241, %240 : vector<8x128xf32>
    %243 = vector.extract_strided_slice %229 {offsets = [0, 128], sizes = [8, 128], strides = [1, 1]} : vector<8x384xf32> to vector<8x128xf32>
    %244 = vector.extract_strided_slice %232 {offsets = [0, 128], sizes = [8, 128], strides = [1, 1]} : vector<8x384xf32> to vector<8x128xf32>
    %245 = arith.addf %243, %244 : vector<8x128xf32>
    %cst_88 = arith.constant 0.000000e+00 : f32
    %246 = vector.broadcast %cst_88 : f32 to vector<8x128xf32>
    %247 = arith.subf %246, %245 : vector<8x128xf32>
    %248 = math.exp %247 : vector<8x128xf32>
    %cst_89 = arith.constant 1.000000e+00 : f32
    %249 = vector.broadcast %cst_89 : f32 to vector<8x128xf32>
    %250 = arith.addf %249, %248 : vector<8x128xf32>
    %cst_90 = arith.constant 1.000000e+00 : f32
    %251 = vector.broadcast %cst_90 : f32 to vector<8x128xf32>
    %252 = arith.divf %251, %250 : vector<8x128xf32>
    %253 = vector.extract_strided_slice %229 {offsets = [0, 256], sizes = [8, 128], strides = [1, 1]} : vector<8x384xf32> to vector<8x128xf32>
    %254 = vector.extract_strided_slice %232 {offsets = [0, 256], sizes = [8, 128], strides = [1, 1]} : vector<8x384xf32> to vector<8x128xf32>
    %255 = arith.mulf %242, %254 : vector<8x128xf32>
    %256 = arith.addf %253, %255 : vector<8x128xf32>
    %257 = math.tanh %256 : vector<8x128xf32>
    %cst_91 = arith.constant 1.000000e+00 : f32
    %258 = vector.broadcast %cst_91 : f32 to vector<8x128xf32>
    %259 = arith.subf %258, %252 : vector<8x128xf32>
    %260 = arith.mulf %259, %257 : vector<8x128xf32>
    %261 = arith.mulf %252, %228 : vector<8x128xf32>
    %262 = arith.addf %260, %261 : vector<8x128xf32>
    %263 = vector.extract_strided_slice %227 {offsets = [8, 0], sizes = [8, 384], strides = [1, 1]} : vector<40x384xf32> to vector<8x384xf32>
    %cst_92 = arith.constant dense<0.000000e+00> : vector<8x384xf32>
    %264 = tpu.matmul %262, %220, %cst_92 {dimension_numbers = #tpu.dot_dimension_numbers<[1], [0], [0], [1], [0, 0, 1, 1], [], []>} : vector<8x128xf32>, vector<128x384xf32>, vector<8x384xf32> -> vector<8x384xf32>
    %265 = vector.broadcast %224 : vector<1x384xf32> to vector<8x384xf32>
    %266 = arith.addf %264, %265 : vector<8x384xf32>
    %267 = vector.extract_strided_slice %263 {offsets = [0, 0], sizes = [8, 128], strides = [1, 1]} : vector<8x384xf32> to vector<8x128xf32>
    %268 = vector.extract_strided_slice %266 {offsets = [0, 0], sizes = [8, 128], strides = [1, 1]} : vector<8x384xf32> to vector<8x128xf32>
    %269 = arith.addf %267, %268 : vector<8x128xf32>
    %cst_93 = arith.constant 0.000000e+00 : f32
    %270 = vector.broadcast %cst_93 : f32 to vector<8x128xf32>
    %271 = arith.subf %270, %269 : vector<8x128xf32>
    %272 = math.exp %271 : vector<8x128xf32>
    %cst_94 = arith.constant 1.000000e+00 : f32
    %273 = vector.broadcast %cst_94 : f32 to vector<8x128xf32>
    %274 = arith.addf %273, %272 : vector<8x128xf32>
    %cst_95 = arith.constant 1.000000e+00 : f32
    %275 = vector.broadcast %cst_95 : f32 to vector<8x128xf32>
    %276 = arith.divf %275, %274 : vector<8x128xf32>
    %277 = vector.extract_strided_slice %263 {offsets = [0, 128], sizes = [8, 128], strides = [1, 1]} : vector<8x384xf32> to vector<8x128xf32>
    %278 = vector.extract_strided_slice %266 {offsets = [0, 128], sizes = [8, 128], strides = [1, 1]} : vector<8x384xf32> to vector<8x128xf32>
    %279 = arith.addf %277, %278 : vector<8x128xf32>
    %cst_96 = arith.constant 0.000000e+00 : f32
    %280 = vector.broadcast %cst_96 : f32 to vector<8x128xf32>
    %281 = arith.subf %280, %279 : vector<8x128xf32>
    %282 = math.exp %281 : vector<8x128xf32>
    %cst_97 = arith.constant 1.000000e+00 : f32
    %283 = vector.broadcast %cst_97 : f32 to vector<8x128xf32>
    %284 = arith.addf %283, %282 : vector<8x128xf32>
    %cst_98 = arith.constant 1.000000e+00 : f32
    %285 = vector.broadcast %cst_98 : f32 to vector<8x128xf32>
    %286 = arith.divf %285, %284 : vector<8x128xf32>
    %287 = vector.extract_strided_slice %263 {offsets = [0, 256], sizes = [8, 128], strides = [1, 1]} : vector<8x384xf32> to vector<8x128xf32>
    %288 = vector.extract_strided_slice %266 {offsets = [0, 256], sizes = [8, 128], strides = [1, 1]} : vector<8x384xf32> to vector<8x128xf32>
    %289 = arith.mulf %276, %288 : vector<8x128xf32>
    %290 = arith.addf %287, %289 : vector<8x128xf32>
    %291 = math.tanh %290 : vector<8x128xf32>
    %cst_99 = arith.constant 1.000000e+00 : f32
    %292 = vector.broadcast %cst_99 : f32 to vector<8x128xf32>
    %293 = arith.subf %292, %286 : vector<8x128xf32>
    %294 = arith.mulf %293, %291 : vector<8x128xf32>
    %295 = arith.mulf %286, %262 : vector<8x128xf32>
    %296 = arith.addf %294, %295 : vector<8x128xf32>
    %297 = vector.extract_strided_slice %227 {offsets = [16, 0], sizes = [8, 384], strides = [1, 1]} : vector<40x384xf32> to vector<8x384xf32>
    %cst_100 = arith.constant dense<0.000000e+00> : vector<8x384xf32>
    %298 = tpu.matmul %296, %220, %cst_100 {dimension_numbers = #tpu.dot_dimension_numbers<[1], [0], [0], [1], [0, 0, 1, 1], [], []>} : vector<8x128xf32>, vector<128x384xf32>, vector<8x384xf32> -> vector<8x384xf32>
    %299 = vector.broadcast %224 : vector<1x384xf32> to vector<8x384xf32>
    %300 = arith.addf %298, %299 : vector<8x384xf32>
    %301 = vector.extract_strided_slice %297 {offsets = [0, 0], sizes = [8, 128], strides = [1, 1]} : vector<8x384xf32> to vector<8x128xf32>
    %302 = vector.extract_strided_slice %300 {offsets = [0, 0], sizes = [8, 128], strides = [1, 1]} : vector<8x384xf32> to vector<8x128xf32>
    %303 = arith.addf %301, %302 : vector<8x128xf32>
    %cst_101 = arith.constant 0.000000e+00 : f32
    %304 = vector.broadcast %cst_101 : f32 to vector<8x128xf32>
    %305 = arith.subf %304, %303 : vector<8x128xf32>
    %306 = math.exp %305 : vector<8x128xf32>
    %cst_102 = arith.constant 1.000000e+00 : f32
    %307 = vector.broadcast %cst_102 : f32 to vector<8x128xf32>
    %308 = arith.addf %307, %306 : vector<8x128xf32>
    %cst_103 = arith.constant 1.000000e+00 : f32
    %309 = vector.broadcast %cst_103 : f32 to vector<8x128xf32>
    %310 = arith.divf %309, %308 : vector<8x128xf32>
    %311 = vector.extract_strided_slice %297 {offsets = [0, 128], sizes = [8, 128], strides = [1, 1]} : vector<8x384xf32> to vector<8x128xf32>
    %312 = vector.extract_strided_slice %300 {offsets = [0, 128], sizes = [8, 128], strides = [1, 1]} : vector<8x384xf32> to vector<8x128xf32>
    %313 = arith.addf %311, %312 : vector<8x128xf32>
    %cst_104 = arith.constant 0.000000e+00 : f32
    %314 = vector.broadcast %cst_104 : f32 to vector<8x128xf32>
    %315 = arith.subf %314, %313 : vector<8x128xf32>
    %316 = math.exp %315 : vector<8x128xf32>
    %cst_105 = arith.constant 1.000000e+00 : f32
    %317 = vector.broadcast %cst_105 : f32 to vector<8x128xf32>
    %318 = arith.addf %317, %316 : vector<8x128xf32>
    %cst_106 = arith.constant 1.000000e+00 : f32
    %319 = vector.broadcast %cst_106 : f32 to vector<8x128xf32>
    %320 = arith.divf %319, %318 : vector<8x128xf32>
    %321 = vector.extract_strided_slice %297 {offsets = [0, 256], sizes = [8, 128], strides = [1, 1]} : vector<8x384xf32> to vector<8x128xf32>
    %322 = vector.extract_strided_slice %300 {offsets = [0, 256], sizes = [8, 128], strides = [1, 1]} : vector<8x384xf32> to vector<8x128xf32>
    %323 = arith.mulf %310, %322 : vector<8x128xf32>
    %324 = arith.addf %321, %323 : vector<8x128xf32>
    %325 = math.tanh %324 : vector<8x128xf32>
    %cst_107 = arith.constant 1.000000e+00 : f32
    %326 = vector.broadcast %cst_107 : f32 to vector<8x128xf32>
    %327 = arith.subf %326, %320 : vector<8x128xf32>
    %328 = arith.mulf %327, %325 : vector<8x128xf32>
    %329 = arith.mulf %320, %296 : vector<8x128xf32>
    %330 = arith.addf %328, %329 : vector<8x128xf32>
    %331 = vector.extract_strided_slice %227 {offsets = [24, 0], sizes = [8, 384], strides = [1, 1]} : vector<40x384xf32> to vector<8x384xf32>
    %cst_108 = arith.constant dense<0.000000e+00> : vector<8x384xf32>
    %332 = tpu.matmul %330, %220, %cst_108 {dimension_numbers = #tpu.dot_dimension_numbers<[1], [0], [0], [1], [0, 0, 1, 1], [], []>} : vector<8x128xf32>, vector<128x384xf32>, vector<8x384xf32> -> vector<8x384xf32>
    %333 = vector.broadcast %224 : vector<1x384xf32> to vector<8x384xf32>
    %334 = arith.addf %332, %333 : vector<8x384xf32>
    %335 = vector.extract_strided_slice %331 {offsets = [0, 0], sizes = [8, 128], strides = [1, 1]} : vector<8x384xf32> to vector<8x128xf32>
    %336 = vector.extract_strided_slice %334 {offsets = [0, 0], sizes = [8, 128], strides = [1, 1]} : vector<8x384xf32> to vector<8x128xf32>
    %337 = arith.addf %335, %336 : vector<8x128xf32>
    %cst_109 = arith.constant 0.000000e+00 : f32
    %338 = vector.broadcast %cst_109 : f32 to vector<8x128xf32>
    %339 = arith.subf %338, %337 : vector<8x128xf32>
    %340 = math.exp %339 : vector<8x128xf32>
    %cst_110 = arith.constant 1.000000e+00 : f32
    %341 = vector.broadcast %cst_110 : f32 to vector<8x128xf32>
    %342 = arith.addf %341, %340 : vector<8x128xf32>
    %cst_111 = arith.constant 1.000000e+00 : f32
    %343 = vector.broadcast %cst_111 : f32 to vector<8x128xf32>
    %344 = arith.divf %343, %342 : vector<8x128xf32>
    %345 = vector.extract_strided_slice %331 {offsets = [0, 128], sizes = [8, 128], strides = [1, 1]} : vector<8x384xf32> to vector<8x128xf32>
    %346 = vector.extract_strided_slice %334 {offsets = [0, 128], sizes = [8, 128], strides = [1, 1]} : vector<8x384xf32> to vector<8x128xf32>
    %347 = arith.addf %345, %346 : vector<8x128xf32>
    %cst_112 = arith.constant 0.000000e+00 : f32
    %348 = vector.broadcast %cst_112 : f32 to vector<8x128xf32>
    %349 = arith.subf %348, %347 : vector<8x128xf32>
    %350 = math.exp %349 : vector<8x128xf32>
    %cst_113 = arith.constant 1.000000e+00 : f32
    %351 = vector.broadcast %cst_113 : f32 to vector<8x128xf32>
    %352 = arith.addf %351, %350 : vector<8x128xf32>
    %cst_114 = arith.constant 1.000000e+00 : f32
    %353 = vector.broadcast %cst_114 : f32 to vector<8x128xf32>
    %354 = arith.divf %353, %352 : vector<8x128xf32>
    %355 = vector.extract_strided_slice %331 {offsets = [0, 256], sizes = [8, 128], strides = [1, 1]} : vector<8x384xf32> to vector<8x128xf32>
    %356 = vector.extract_strided_slice %334 {offsets = [0, 256], sizes = [8, 128], strides = [1, 1]} : vector<8x384xf32> to vector<8x128xf32>
    %357 = arith.mulf %344, %356 : vector<8x128xf32>
    %358 = arith.addf %355, %357 : vector<8x128xf32>
    %359 = math.tanh %358 : vector<8x128xf32>
    %cst_115 = arith.constant 1.000000e+00 : f32
    %360 = vector.broadcast %cst_115 : f32 to vector<8x128xf32>
    %361 = arith.subf %360, %354 : vector<8x128xf32>
    %362 = arith.mulf %361, %359 : vector<8x128xf32>
    %363 = arith.mulf %354, %330 : vector<8x128xf32>
    %364 = arith.addf %362, %363 : vector<8x128xf32>
    %365 = vector.extract_strided_slice %227 {offsets = [32, 0], sizes = [8, 384], strides = [1, 1]} : vector<40x384xf32> to vector<8x384xf32>
    %cst_116 = arith.constant dense<0.000000e+00> : vector<8x384xf32>
    %366 = tpu.matmul %364, %220, %cst_116 {dimension_numbers = #tpu.dot_dimension_numbers<[1], [0], [0], [1], [0, 0, 1, 1], [], []>} : vector<8x128xf32>, vector<128x384xf32>, vector<8x384xf32> -> vector<8x384xf32>
    %367 = vector.broadcast %224 : vector<1x384xf32> to vector<8x384xf32>
    %368 = arith.addf %366, %367 : vector<8x384xf32>
    %369 = vector.extract_strided_slice %365 {offsets = [0, 0], sizes = [8, 128], strides = [1, 1]} : vector<8x384xf32> to vector<8x128xf32>
    %370 = vector.extract_strided_slice %368 {offsets = [0, 0], sizes = [8, 128], strides = [1, 1]} : vector<8x384xf32> to vector<8x128xf32>
    %371 = arith.addf %369, %370 : vector<8x128xf32>
    %cst_117 = arith.constant 0.000000e+00 : f32
    %372 = vector.broadcast %cst_117 : f32 to vector<8x128xf32>
    %373 = arith.subf %372, %371 : vector<8x128xf32>
    %374 = math.exp %373 : vector<8x128xf32>
    %cst_118 = arith.constant 1.000000e+00 : f32
    %375 = vector.broadcast %cst_118 : f32 to vector<8x128xf32>
    %376 = arith.addf %375, %374 : vector<8x128xf32>
    %cst_119 = arith.constant 1.000000e+00 : f32
    %377 = vector.broadcast %cst_119 : f32 to vector<8x128xf32>
    %378 = arith.divf %377, %376 : vector<8x128xf32>
    %379 = vector.extract_strided_slice %365 {offsets = [0, 128], sizes = [8, 128], strides = [1, 1]} : vector<8x384xf32> to vector<8x128xf32>
    %380 = vector.extract_strided_slice %368 {offsets = [0, 128], sizes = [8, 128], strides = [1, 1]} : vector<8x384xf32> to vector<8x128xf32>
    %381 = arith.addf %379, %380 : vector<8x128xf32>
    %cst_120 = arith.constant 0.000000e+00 : f32
    %382 = vector.broadcast %cst_120 : f32 to vector<8x128xf32>
    %383 = arith.subf %382, %381 : vector<8x128xf32>
    %384 = math.exp %383 : vector<8x128xf32>
    %cst_121 = arith.constant 1.000000e+00 : f32
    %385 = vector.broadcast %cst_121 : f32 to vector<8x128xf32>
    %386 = arith.addf %385, %384 : vector<8x128xf32>
    %cst_122 = arith.constant 1.000000e+00 : f32
    %387 = vector.broadcast %cst_122 : f32 to vector<8x128xf32>
    %388 = arith.divf %387, %386 : vector<8x128xf32>
    %389 = vector.extract_strided_slice %365 {offsets = [0, 256], sizes = [8, 128], strides = [1, 1]} : vector<8x384xf32> to vector<8x128xf32>
    %390 = vector.extract_strided_slice %368 {offsets = [0, 256], sizes = [8, 128], strides = [1, 1]} : vector<8x384xf32> to vector<8x128xf32>
    %391 = arith.mulf %378, %390 : vector<8x128xf32>
    %392 = arith.addf %389, %391 : vector<8x128xf32>
    %393 = math.tanh %392 : vector<8x128xf32>
    %cst_123 = arith.constant 1.000000e+00 : f32
    %394 = vector.broadcast %cst_123 : f32 to vector<8x128xf32>
    %395 = arith.subf %394, %388 : vector<8x128xf32>
    %396 = arith.mulf %395, %393 : vector<8x128xf32>
    %397 = arith.mulf %388, %364 : vector<8x128xf32>
    %398 = arith.addf %396, %397 : vector<8x128xf32>
    %399 = tpu.concatenate %262, %296, %330, %364, %398 in 0 : vector<8x128xf32>, vector<8x128xf32>, vector<8x128xf32>, vector<8x128xf32>, vector<8x128xf32> -> vector<40x128xf32>
    %cst_124 = arith.constant dense<0.000000e+00> : vector<40xf32>
    %400 = vector.multi_reduction <add>, %399, %cst_124 [1] : vector<40x128xf32> to vector<40xf32>
    %401 = vector.shape_cast %400 : vector<40xf32> to vector<40x1xf32>
    %cst_125 = arith.constant 1.280000e+02 : f32
    %402 = vector.broadcast %cst_125 : f32 to vector<40x1xf32>
    %403 = arith.divf %401, %402 : vector<40x1xf32>
    %404 = vector.broadcast %403 : vector<40x1xf32> to vector<40x128xf32>
    %405 = arith.subf %399, %404 : vector<40x128xf32>
    %406 = arith.mulf %405, %405 : vector<40x128xf32>
    %cst_126 = arith.constant dense<0.000000e+00> : vector<40xf32>
    %407 = vector.multi_reduction <add>, %406, %cst_126 [1] : vector<40x128xf32> to vector<40xf32>
    %408 = vector.shape_cast %407 : vector<40xf32> to vector<40x1xf32>
    %cst_127 = arith.constant 1.280000e+02 : f32
    %409 = vector.broadcast %cst_127 : f32 to vector<40x1xf32>
    %410 = arith.divf %408, %409 : vector<40x1xf32>
    %411 = vector.broadcast %403 : vector<40x1xf32> to vector<40x128xf32>
    %412 = arith.subf %399, %411 : vector<40x128xf32>
    %cst_128 = arith.constant 9.99999974E-6 : f32
    %413 = vector.broadcast %cst_128 : f32 to vector<40x1xf32>
    %414 = arith.addf %410, %413 : vector<40x1xf32>
    %415 = math.rsqrt %414 : vector<40x1xf32>
    %416 = vector.broadcast %415 : vector<40x1xf32> to vector<40x128xf32>
    %417 = arith.mulf %412, %416 : vector<40x128xf32>
    %c1_129 = arith.constant 1 : index
    %c0_130 = arith.constant 0 : index
    %c0_131 = arith.constant 0 : index
    %418 = vector.load %arg7[%c1_129, %c0_130, %c0_131] : memref<3x1x128xf32, #tpu.memory_space<vmem>>, vector<1x1x128xf32>
    %419 = vector.shape_cast %418 : vector<1x1x128xf32> to vector<1x128xf32>
    %420 = vector.broadcast %419 : vector<1x128xf32> to vector<40x128xf32>
    %421 = arith.mulf %417, %420 : vector<40x128xf32>
    %c1_132 = arith.constant 1 : index
    %c0_133 = arith.constant 0 : index
    %c0_134 = arith.constant 0 : index
    %422 = vector.load %arg8[%c1_132, %c0_133, %c0_134] : memref<3x1x128xf32, #tpu.memory_space<vmem>>, vector<1x1x128xf32>
    %423 = vector.shape_cast %422 : vector<1x1x128xf32> to vector<1x128xf32>
    %424 = vector.broadcast %423 : vector<1x128xf32> to vector<40x128xf32>
    %425 = arith.addf %421, %424 : vector<40x128xf32>
    %cst_135 = arith.constant 0.000000e+00 : f32
    %426 = vector.broadcast %cst_135 : f32 to vector<40x128xf32>
    %427 = arith.maximumf %425, %426 : vector<40x128xf32>
    %c2 = arith.constant 2 : index
    %c0_136 = arith.constant 0 : index
    %c0_137 = arith.constant 0 : index
    %428 = vector.load %arg3[%c2, %c0_136, %c0_137] : memref<3x128x384xf32, #tpu.memory_space<vmem>>, vector<1x128x384xf32>
    %429 = vector.shape_cast %428 : vector<1x128x384xf32> to vector<128x384xf32>
    %c2_138 = arith.constant 2 : index
    %c0_139 = arith.constant 0 : index
    %c0_140 = arith.constant 0 : index
    %430 = vector.load %arg4[%c2_138, %c0_139, %c0_140] : memref<3x128x384xf32, #tpu.memory_space<vmem>>, vector<1x128x384xf32>
    %431 = vector.shape_cast %430 : vector<1x128x384xf32> to vector<128x384xf32>
    %c2_141 = arith.constant 2 : index
    %c0_142 = arith.constant 0 : index
    %c0_143 = arith.constant 0 : index
    %432 = vector.load %arg5[%c2_141, %c0_142, %c0_143] : memref<3x1x384xf32, #tpu.memory_space<vmem>>, vector<1x1x384xf32>
    %433 = vector.shape_cast %432 : vector<1x1x384xf32> to vector<1x384xf32>
    %c2_144 = arith.constant 2 : index
    %c0_145 = arith.constant 0 : index
    %c0_146 = arith.constant 0 : index
    %434 = vector.load %arg6[%c2_144, %c0_145, %c0_146] : memref<3x1x384xf32, #tpu.memory_space<vmem>>, vector<1x1x384xf32>
    %435 = vector.shape_cast %434 : vector<1x1x384xf32> to vector<1x384xf32>
    %cst_147 = arith.constant dense<0.000000e+00> : vector<40x384xf32>
    %436 = tpu.matmul %427, %429, %cst_147 {dimension_numbers = #tpu.dot_dimension_numbers<[1], [0], [0], [1], [0, 0, 1, 1], [], []>} : vector<40x128xf32>, vector<128x384xf32>, vector<40x384xf32> -> vector<40x384xf32>
    %437 = vector.broadcast %433 : vector<1x384xf32> to vector<40x384xf32>
    %438 = arith.addf %436, %437 : vector<40x384xf32>
    %cst_148 = arith.constant 0.000000e+00 : f32
    %439 = vector.broadcast %cst_148 : f32 to vector<8x128xf32>
    %440 = vector.extract_strided_slice %438 {offsets = [0, 0], sizes = [8, 384], strides = [1, 1]} : vector<40x384xf32> to vector<8x384xf32>
    %cst_149 = arith.constant dense<0.000000e+00> : vector<8x384xf32>
    %441 = tpu.matmul %439, %431, %cst_149 {dimension_numbers = #tpu.dot_dimension_numbers<[1], [0], [0], [1], [0, 0, 1, 1], [], []>} : vector<8x128xf32>, vector<128x384xf32>, vector<8x384xf32> -> vector<8x384xf32>
    %442 = vector.broadcast %435 : vector<1x384xf32> to vector<8x384xf32>
    %443 = arith.addf %441, %442 : vector<8x384xf32>
    %444 = vector.extract_strided_slice %440 {offsets = [0, 0], sizes = [8, 128], strides = [1, 1]} : vector<8x384xf32> to vector<8x128xf32>
    %445 = vector.extract_strided_slice %443 {offsets = [0, 0], sizes = [8, 128], strides = [1, 1]} : vector<8x384xf32> to vector<8x128xf32>
    %446 = arith.addf %444, %445 : vector<8x128xf32>
    %cst_150 = arith.constant 0.000000e+00 : f32
    %447 = vector.broadcast %cst_150 : f32 to vector<8x128xf32>
    %448 = arith.subf %447, %446 : vector<8x128xf32>
    %449 = math.exp %448 : vector<8x128xf32>
    %cst_151 = arith.constant 1.000000e+00 : f32
    %450 = vector.broadcast %cst_151 : f32 to vector<8x128xf32>
    %451 = arith.addf %450, %449 : vector<8x128xf32>
    %cst_152 = arith.constant 1.000000e+00 : f32
    %452 = vector.broadcast %cst_152 : f32 to vector<8x128xf32>
    %453 = arith.divf %452, %451 : vector<8x128xf32>
    %454 = vector.extract_strided_slice %440 {offsets = [0, 128], sizes = [8, 128], strides = [1, 1]} : vector<8x384xf32> to vector<8x128xf32>
    %455 = vector.extract_strided_slice %443 {offsets = [0, 128], sizes = [8, 128], strides = [1, 1]} : vector<8x384xf32> to vector<8x128xf32>
    %456 = arith.addf %454, %455 : vector<8x128xf32>
    %cst_153 = arith.constant 0.000000e+00 : f32
    %457 = vector.broadcast %cst_153 : f32 to vector<8x128xf32>
    %458 = arith.subf %457, %456 : vector<8x128xf32>
    %459 = math.exp %458 : vector<8x128xf32>
    %cst_154 = arith.constant 1.000000e+00 : f32
    %460 = vector.broadcast %cst_154 : f32 to vector<8x128xf32>
    %461 = arith.addf %460, %459 : vector<8x128xf32>
    %cst_155 = arith.constant 1.000000e+00 : f32
    %462 = vector.broadcast %cst_155 : f32 to vector<8x128xf32>
    %463 = arith.divf %462, %461 : vector<8x128xf32>
    %464 = vector.extract_strided_slice %440 {offsets = [0, 256], sizes = [8, 128], strides = [1, 1]} : vector<8x384xf32> to vector<8x128xf32>
    %465 = vector.extract_strided_slice %443 {offsets = [0, 256], sizes = [8, 128], strides = [1, 1]} : vector<8x384xf32> to vector<8x128xf32>
    %466 = arith.mulf %453, %465 : vector<8x128xf32>
    %467 = arith.addf %464, %466 : vector<8x128xf32>
    %468 = math.tanh %467 : vector<8x128xf32>
    %cst_156 = arith.constant 1.000000e+00 : f32
    %469 = vector.broadcast %cst_156 : f32 to vector<8x128xf32>
    %470 = arith.subf %469, %463 : vector<8x128xf32>
    %471 = arith.mulf %470, %468 : vector<8x128xf32>
    %472 = arith.mulf %463, %439 : vector<8x128xf32>
    %473 = arith.addf %471, %472 : vector<8x128xf32>
    %474 = vector.extract_strided_slice %438 {offsets = [8, 0], sizes = [8, 384], strides = [1, 1]} : vector<40x384xf32> to vector<8x384xf32>
    %cst_157 = arith.constant dense<0.000000e+00> : vector<8x384xf32>
    %475 = tpu.matmul %473, %431, %cst_157 {dimension_numbers = #tpu.dot_dimension_numbers<[1], [0], [0], [1], [0, 0, 1, 1], [], []>} : vector<8x128xf32>, vector<128x384xf32>, vector<8x384xf32> -> vector<8x384xf32>
    %476 = vector.broadcast %435 : vector<1x384xf32> to vector<8x384xf32>
    %477 = arith.addf %475, %476 : vector<8x384xf32>
    %478 = vector.extract_strided_slice %474 {offsets = [0, 0], sizes = [8, 128], strides = [1, 1]} : vector<8x384xf32> to vector<8x128xf32>
    %479 = vector.extract_strided_slice %477 {offsets = [0, 0], sizes = [8, 128], strides = [1, 1]} : vector<8x384xf32> to vector<8x128xf32>
    %480 = arith.addf %478, %479 : vector<8x128xf32>
    %cst_158 = arith.constant 0.000000e+00 : f32
    %481 = vector.broadcast %cst_158 : f32 to vector<8x128xf32>
    %482 = arith.subf %481, %480 : vector<8x128xf32>
    %483 = math.exp %482 : vector<8x128xf32>
    %cst_159 = arith.constant 1.000000e+00 : f32
    %484 = vector.broadcast %cst_159 : f32 to vector<8x128xf32>
    %485 = arith.addf %484, %483 : vector<8x128xf32>
    %cst_160 = arith.constant 1.000000e+00 : f32
    %486 = vector.broadcast %cst_160 : f32 to vector<8x128xf32>
    %487 = arith.divf %486, %485 : vector<8x128xf32>
    %488 = vector.extract_strided_slice %474 {offsets = [0, 128], sizes = [8, 128], strides = [1, 1]} : vector<8x384xf32> to vector<8x128xf32>
    %489 = vector.extract_strided_slice %477 {offsets = [0, 128], sizes = [8, 128], strides = [1, 1]} : vector<8x384xf32> to vector<8x128xf32>
    %490 = arith.addf %488, %489 : vector<8x128xf32>
    %cst_161 = arith.constant 0.000000e+00 : f32
    %491 = vector.broadcast %cst_161 : f32 to vector<8x128xf32>
    %492 = arith.subf %491, %490 : vector<8x128xf32>
    %493 = math.exp %492 : vector<8x128xf32>
    %cst_162 = arith.constant 1.000000e+00 : f32
    %494 = vector.broadcast %cst_162 : f32 to vector<8x128xf32>
    %495 = arith.addf %494, %493 : vector<8x128xf32>
    %cst_163 = arith.constant 1.000000e+00 : f32
    %496 = vector.broadcast %cst_163 : f32 to vector<8x128xf32>
    %497 = arith.divf %496, %495 : vector<8x128xf32>
    %498 = vector.extract_strided_slice %474 {offsets = [0, 256], sizes = [8, 128], strides = [1, 1]} : vector<8x384xf32> to vector<8x128xf32>
    %499 = vector.extract_strided_slice %477 {offsets = [0, 256], sizes = [8, 128], strides = [1, 1]} : vector<8x384xf32> to vector<8x128xf32>
    %500 = arith.mulf %487, %499 : vector<8x128xf32>
    %501 = arith.addf %498, %500 : vector<8x128xf32>
    %502 = math.tanh %501 : vector<8x128xf32>
    %cst_164 = arith.constant 1.000000e+00 : f32
    %503 = vector.broadcast %cst_164 : f32 to vector<8x128xf32>
    %504 = arith.subf %503, %497 : vector<8x128xf32>
    %505 = arith.mulf %504, %502 : vector<8x128xf32>
    %506 = arith.mulf %497, %473 : vector<8x128xf32>
    %507 = arith.addf %505, %506 : vector<8x128xf32>
    %508 = vector.extract_strided_slice %438 {offsets = [16, 0], sizes = [8, 384], strides = [1, 1]} : vector<40x384xf32> to vector<8x384xf32>
    %cst_165 = arith.constant dense<0.000000e+00> : vector<8x384xf32>
    %509 = tpu.matmul %507, %431, %cst_165 {dimension_numbers = #tpu.dot_dimension_numbers<[1], [0], [0], [1], [0, 0, 1, 1], [], []>} : vector<8x128xf32>, vector<128x384xf32>, vector<8x384xf32> -> vector<8x384xf32>
    %510 = vector.broadcast %435 : vector<1x384xf32> to vector<8x384xf32>
    %511 = arith.addf %509, %510 : vector<8x384xf32>
    %512 = vector.extract_strided_slice %508 {offsets = [0, 0], sizes = [8, 128], strides = [1, 1]} : vector<8x384xf32> to vector<8x128xf32>
    %513 = vector.extract_strided_slice %511 {offsets = [0, 0], sizes = [8, 128], strides = [1, 1]} : vector<8x384xf32> to vector<8x128xf32>
    %514 = arith.addf %512, %513 : vector<8x128xf32>
    %cst_166 = arith.constant 0.000000e+00 : f32
    %515 = vector.broadcast %cst_166 : f32 to vector<8x128xf32>
    %516 = arith.subf %515, %514 : vector<8x128xf32>
    %517 = math.exp %516 : vector<8x128xf32>
    %cst_167 = arith.constant 1.000000e+00 : f32
    %518 = vector.broadcast %cst_167 : f32 to vector<8x128xf32>
    %519 = arith.addf %518, %517 : vector<8x128xf32>
    %cst_168 = arith.constant 1.000000e+00 : f32
    %520 = vector.broadcast %cst_168 : f32 to vector<8x128xf32>
    %521 = arith.divf %520, %519 : vector<8x128xf32>
    %522 = vector.extract_strided_slice %508 {offsets = [0, 128], sizes = [8, 128], strides = [1, 1]} : vector<8x384xf32> to vector<8x128xf32>
    %523 = vector.extract_strided_slice %511 {offsets = [0, 128], sizes = [8, 128], strides = [1, 1]} : vector<8x384xf32> to vector<8x128xf32>
    %524 = arith.addf %522, %523 : vector<8x128xf32>
    %cst_169 = arith.constant 0.000000e+00 : f32
    %525 = vector.broadcast %cst_169 : f32 to vector<8x128xf32>
    %526 = arith.subf %525, %524 : vector<8x128xf32>
    %527 = math.exp %526 : vector<8x128xf32>
    %cst_170 = arith.constant 1.000000e+00 : f32
    %528 = vector.broadcast %cst_170 : f32 to vector<8x128xf32>
    %529 = arith.addf %528, %527 : vector<8x128xf32>
    %cst_171 = arith.constant 1.000000e+00 : f32
    %530 = vector.broadcast %cst_171 : f32 to vector<8x128xf32>
    %531 = arith.divf %530, %529 : vector<8x128xf32>
    %532 = vector.extract_strided_slice %508 {offsets = [0, 256], sizes = [8, 128], strides = [1, 1]} : vector<8x384xf32> to vector<8x128xf32>
    %533 = vector.extract_strided_slice %511 {offsets = [0, 256], sizes = [8, 128], strides = [1, 1]} : vector<8x384xf32> to vector<8x128xf32>
    %534 = arith.mulf %521, %533 : vector<8x128xf32>
    %535 = arith.addf %532, %534 : vector<8x128xf32>
    %536 = math.tanh %535 : vector<8x128xf32>
    %cst_172 = arith.constant 1.000000e+00 : f32
    %537 = vector.broadcast %cst_172 : f32 to vector<8x128xf32>
    %538 = arith.subf %537, %531 : vector<8x128xf32>
    %539 = arith.mulf %538, %536 : vector<8x128xf32>
    %540 = arith.mulf %531, %507 : vector<8x128xf32>
    %541 = arith.addf %539, %540 : vector<8x128xf32>
    %542 = vector.extract_strided_slice %438 {offsets = [24, 0], sizes = [8, 384], strides = [1, 1]} : vector<40x384xf32> to vector<8x384xf32>
    %cst_173 = arith.constant dense<0.000000e+00> : vector<8x384xf32>
    %543 = tpu.matmul %541, %431, %cst_173 {dimension_numbers = #tpu.dot_dimension_numbers<[1], [0], [0], [1], [0, 0, 1, 1], [], []>} : vector<8x128xf32>, vector<128x384xf32>, vector<8x384xf32> -> vector<8x384xf32>
    %544 = vector.broadcast %435 : vector<1x384xf32> to vector<8x384xf32>
    %545 = arith.addf %543, %544 : vector<8x384xf32>
    %546 = vector.extract_strided_slice %542 {offsets = [0, 0], sizes = [8, 128], strides = [1, 1]} : vector<8x384xf32> to vector<8x128xf32>
    %547 = vector.extract_strided_slice %545 {offsets = [0, 0], sizes = [8, 128], strides = [1, 1]} : vector<8x384xf32> to vector<8x128xf32>
    %548 = arith.addf %546, %547 : vector<8x128xf32>
    %cst_174 = arith.constant 0.000000e+00 : f32
    %549 = vector.broadcast %cst_174 : f32 to vector<8x128xf32>
    %550 = arith.subf %549, %548 : vector<8x128xf32>
    %551 = math.exp %550 : vector<8x128xf32>
    %cst_175 = arith.constant 1.000000e+00 : f32
    %552 = vector.broadcast %cst_175 : f32 to vector<8x128xf32>
    %553 = arith.addf %552, %551 : vector<8x128xf32>
    %cst_176 = arith.constant 1.000000e+00 : f32
    %554 = vector.broadcast %cst_176 : f32 to vector<8x128xf32>
    %555 = arith.divf %554, %553 : vector<8x128xf32>
    %556 = vector.extract_strided_slice %542 {offsets = [0, 128], sizes = [8, 128], strides = [1, 1]} : vector<8x384xf32> to vector<8x128xf32>
    %557 = vector.extract_strided_slice %545 {offsets = [0, 128], sizes = [8, 128], strides = [1, 1]} : vector<8x384xf32> to vector<8x128xf32>
    %558 = arith.addf %556, %557 : vector<8x128xf32>
    %cst_177 = arith.constant 0.000000e+00 : f32
    %559 = vector.broadcast %cst_177 : f32 to vector<8x128xf32>
    %560 = arith.subf %559, %558 : vector<8x128xf32>
    %561 = math.exp %560 : vector<8x128xf32>
    %cst_178 = arith.constant 1.000000e+00 : f32
    %562 = vector.broadcast %cst_178 : f32 to vector<8x128xf32>
    %563 = arith.addf %562, %561 : vector<8x128xf32>
    %cst_179 = arith.constant 1.000000e+00 : f32
    %564 = vector.broadcast %cst_179 : f32 to vector<8x128xf32>
    %565 = arith.divf %564, %563 : vector<8x128xf32>
    %566 = vector.extract_strided_slice %542 {offsets = [0, 256], sizes = [8, 128], strides = [1, 1]} : vector<8x384xf32> to vector<8x128xf32>
    %567 = vector.extract_strided_slice %545 {offsets = [0, 256], sizes = [8, 128], strides = [1, 1]} : vector<8x384xf32> to vector<8x128xf32>
    %568 = arith.mulf %555, %567 : vector<8x128xf32>
    %569 = arith.addf %566, %568 : vector<8x128xf32>
    %570 = math.tanh %569 : vector<8x128xf32>
    %cst_180 = arith.constant 1.000000e+00 : f32
    %571 = vector.broadcast %cst_180 : f32 to vector<8x128xf32>
    %572 = arith.subf %571, %565 : vector<8x128xf32>
    %573 = arith.mulf %572, %570 : vector<8x128xf32>
    %574 = arith.mulf %565, %541 : vector<8x128xf32>
    %575 = arith.addf %573, %574 : vector<8x128xf32>
    %576 = vector.extract_strided_slice %438 {offsets = [32, 0], sizes = [8, 384], strides = [1, 1]} : vector<40x384xf32> to vector<8x384xf32>
    %cst_181 = arith.constant dense<0.000000e+00> : vector<8x384xf32>
    %577 = tpu.matmul %575, %431, %cst_181 {dimension_numbers = #tpu.dot_dimension_numbers<[1], [0], [0], [1], [0, 0, 1, 1], [], []>} : vector<8x128xf32>, vector<128x384xf32>, vector<8x384xf32> -> vector<8x384xf32>
    %578 = vector.broadcast %435 : vector<1x384xf32> to vector<8x384xf32>
    %579 = arith.addf %577, %578 : vector<8x384xf32>
    %580 = vector.extract_strided_slice %576 {offsets = [0, 0], sizes = [8, 128], strides = [1, 1]} : vector<8x384xf32> to vector<8x128xf32>
    %581 = vector.extract_strided_slice %579 {offsets = [0, 0], sizes = [8, 128], strides = [1, 1]} : vector<8x384xf32> to vector<8x128xf32>
    %582 = arith.addf %580, %581 : vector<8x128xf32>
    %cst_182 = arith.constant 0.000000e+00 : f32
    %583 = vector.broadcast %cst_182 : f32 to vector<8x128xf32>
    %584 = arith.subf %583, %582 : vector<8x128xf32>
    %585 = math.exp %584 : vector<8x128xf32>
    %cst_183 = arith.constant 1.000000e+00 : f32
    %586 = vector.broadcast %cst_183 : f32 to vector<8x128xf32>
    %587 = arith.addf %586, %585 : vector<8x128xf32>
    %cst_184 = arith.constant 1.000000e+00 : f32
    %588 = vector.broadcast %cst_184 : f32 to vector<8x128xf32>
    %589 = arith.divf %588, %587 : vector<8x128xf32>
    %590 = vector.extract_strided_slice %576 {offsets = [0, 128], sizes = [8, 128], strides = [1, 1]} : vector<8x384xf32> to vector<8x128xf32>
    %591 = vector.extract_strided_slice %579 {offsets = [0, 128], sizes = [8, 128], strides = [1, 1]} : vector<8x384xf32> to vector<8x128xf32>
    %592 = arith.addf %590, %591 : vector<8x128xf32>
    %cst_185 = arith.constant 0.000000e+00 : f32
    %593 = vector.broadcast %cst_185 : f32 to vector<8x128xf32>
    %594 = arith.subf %593, %592 : vector<8x128xf32>
    %595 = math.exp %594 : vector<8x128xf32>
    %cst_186 = arith.constant 1.000000e+00 : f32
    %596 = vector.broadcast %cst_186 : f32 to vector<8x128xf32>
    %597 = arith.addf %596, %595 : vector<8x128xf32>
    %cst_187 = arith.constant 1.000000e+00 : f32
    %598 = vector.broadcast %cst_187 : f32 to vector<8x128xf32>
    %599 = arith.divf %598, %597 : vector<8x128xf32>
    %600 = vector.extract_strided_slice %576 {offsets = [0, 256], sizes = [8, 128], strides = [1, 1]} : vector<8x384xf32> to vector<8x128xf32>
    %601 = vector.extract_strided_slice %579 {offsets = [0, 256], sizes = [8, 128], strides = [1, 1]} : vector<8x384xf32> to vector<8x128xf32>
    %602 = arith.mulf %589, %601 : vector<8x128xf32>
    %603 = arith.addf %600, %602 : vector<8x128xf32>
    %604 = math.tanh %603 : vector<8x128xf32>
    %cst_188 = arith.constant 1.000000e+00 : f32
    %605 = vector.broadcast %cst_188 : f32 to vector<8x128xf32>
    %606 = arith.subf %605, %599 : vector<8x128xf32>
    %607 = arith.mulf %606, %604 : vector<8x128xf32>
    %608 = arith.mulf %599, %575 : vector<8x128xf32>
    %609 = arith.addf %607, %608 : vector<8x128xf32>
    %610 = tpu.concatenate %473, %507, %541, %575, %609 in 0 : vector<8x128xf32>, vector<8x128xf32>, vector<8x128xf32>, vector<8x128xf32>, vector<8x128xf32> -> vector<40x128xf32>
    %cst_189 = arith.constant dense<0.000000e+00> : vector<40xf32>
    %611 = vector.multi_reduction <add>, %610, %cst_189 [1] : vector<40x128xf32> to vector<40xf32>
    %612 = vector.shape_cast %611 : vector<40xf32> to vector<40x1xf32>
    %cst_190 = arith.constant 1.280000e+02 : f32
    %613 = vector.broadcast %cst_190 : f32 to vector<40x1xf32>
    %614 = arith.divf %612, %613 : vector<40x1xf32>
    %615 = vector.broadcast %614 : vector<40x1xf32> to vector<40x128xf32>
    %616 = arith.subf %610, %615 : vector<40x128xf32>
    %617 = arith.mulf %616, %616 : vector<40x128xf32>
    %cst_191 = arith.constant dense<0.000000e+00> : vector<40xf32>
    %618 = vector.multi_reduction <add>, %617, %cst_191 [1] : vector<40x128xf32> to vector<40xf32>
    %619 = vector.shape_cast %618 : vector<40xf32> to vector<40x1xf32>
    %cst_192 = arith.constant 1.280000e+02 : f32
    %620 = vector.broadcast %cst_192 : f32 to vector<40x1xf32>
    %621 = arith.divf %619, %620 : vector<40x1xf32>
    %622 = vector.broadcast %614 : vector<40x1xf32> to vector<40x128xf32>
    %623 = arith.subf %610, %622 : vector<40x128xf32>
    %cst_193 = arith.constant 9.99999974E-6 : f32
    %624 = vector.broadcast %cst_193 : f32 to vector<40x1xf32>
    %625 = arith.addf %621, %624 : vector<40x1xf32>
    %626 = math.rsqrt %625 : vector<40x1xf32>
    %627 = vector.broadcast %626 : vector<40x1xf32> to vector<40x128xf32>
    %628 = arith.mulf %623, %627 : vector<40x128xf32>
    %c2_194 = arith.constant 2 : index
    %c0_195 = arith.constant 0 : index
    %c0_196 = arith.constant 0 : index
    %629 = vector.load %arg7[%c2_194, %c0_195, %c0_196] : memref<3x1x128xf32, #tpu.memory_space<vmem>>, vector<1x1x128xf32>
    %630 = vector.shape_cast %629 : vector<1x1x128xf32> to vector<1x128xf32>
    %631 = vector.broadcast %630 : vector<1x128xf32> to vector<40x128xf32>
    %632 = arith.mulf %628, %631 : vector<40x128xf32>
    %c2_197 = arith.constant 2 : index
    %c0_198 = arith.constant 0 : index
    %c0_199 = arith.constant 0 : index
    %633 = vector.load %arg8[%c2_197, %c0_198, %c0_199] : memref<3x1x128xf32, #tpu.memory_space<vmem>>, vector<1x1x128xf32>
    %634 = vector.shape_cast %633 : vector<1x1x128xf32> to vector<1x128xf32>
    %635 = vector.broadcast %634 : vector<1x128xf32> to vector<40x128xf32>
    %636 = arith.addf %632, %635 : vector<40x128xf32>
    %cst_200 = arith.constant 0.000000e+00 : f32
    %637 = vector.broadcast %cst_200 : f32 to vector<40x128xf32>
    %638 = arith.maximumf %636, %637 : vector<40x128xf32>
    %639 = vector.extract_strided_slice %638 {offsets = [32, 0], sizes = [8, 128], strides = [1, 1]} : vector<40x128xf32> to vector<8x128xf32>
    %c0_201 = arith.constant 0 : index
    %c0_202 = arith.constant 0 : index
    %640 = vector.load %arg9[%c0_201, %c0_202] : memref<128x128xf32, #tpu.memory_space<vmem>>, vector<128x128xf32>
    %cst_203 = arith.constant dense<0.000000e+00> : vector<8x128xf32>
    %641 = tpu.matmul %639, %640, %cst_203 {dimension_numbers = #tpu.dot_dimension_numbers<[1], [0], [0], [1], [0, 0, 1, 1], [], []>} : vector<8x128xf32>, vector<128x128xf32>, vector<8x128xf32> -> vector<8x128xf32>
    %c0_204 = arith.constant 0 : index
    %c0_205 = arith.constant 0 : index
    %642 = vector.load %arg10[%c0_204, %c0_205] : memref<1x128xf32, #tpu.memory_space<vmem>>, vector<1x128xf32>
    %643 = vector.broadcast %642 : vector<1x128xf32> to vector<8x128xf32>
    %644 = arith.addf %641, %643 : vector<8x128xf32>
    %645 = tpu.iota {dimensions = array<i32: 1>} : vector<8x128xi32>
    %c2_i32 = arith.constant 2 : i32
    %646 = vector.broadcast %c2_i32 : i32 to vector<8x128xi32>
    %647 = arith.cmpi slt, %645, %646 : vector<8x128xi32>
    %cst_206 = arith.constant -1.000000e+30 : f32
    %648 = vector.broadcast %cst_206 : f32 to vector<8x128xf32>
    %649 = arith.select %647, %644, %648 : vector<8x128xi1>, vector<8x128xf32>
    %cst_207 = arith.constant dense<0xFF800000> : vector<8xf32>
    %650 = vector.multi_reduction <maximumf>, %649, %cst_207 [1] : vector<8x128xf32> to vector<8xf32>
    %651 = vector.shape_cast %650 : vector<8xf32> to vector<8x1xf32>
    %652 = vector.broadcast %651 : vector<8x1xf32> to vector<8x128xf32>
    %653 = arith.subf %649, %652 : vector<8x128xf32>
    %654 = math.exp %653 : vector<8x128xf32>
    %cst_208 = arith.constant 0.000000e+00 : f32
    %655 = vector.broadcast %cst_208 : f32 to vector<8x128xf32>
    %656 = arith.select %647, %654, %655 : vector<8x128xi1>, vector<8x128xf32>
    %cst_209 = arith.constant dense<0.000000e+00> : vector<8xf32>
    %657 = vector.multi_reduction <add>, %656, %cst_209 [1] : vector<8x128xf32> to vector<8xf32>
    %658 = vector.shape_cast %657 : vector<8xf32> to vector<8x1xf32>
    %659 = vector.broadcast %658 : vector<8x1xf32> to vector<8x128xf32>
    %660 = arith.divf %656, %659 : vector<8x128xf32>
    %c0_210 = arith.constant 0 : index
    %c0_211 = arith.constant 0 : index
    %661 = vector.load %arg11[%c0_210, %c0_211] : memref<8x128xf32, #tpu.memory_space<vmem>>, vector<8x128xf32>
    tpu.vector_store %arg11[%c0_210, %c0_211], %660 {strides = array<i32>} : memref<8x128xf32, #tpu.memory_space<vmem>>, vector<8x128xf32>,
    return
  }
}

</mosaic_0001>

<bundles_post_ra>
// kernel: rnn_model_forward.1
= control target key start
LH: loop header
LB: loop body
LE: loop exit
PB: predicated region body
PF: predicated region fallthrough
CT: control target
= control target key end

     0   :  { %16 = vsyncpa [#allocation3], 0  ;;  %s4685_s0 = inlined_call_operand.vmem [shape: f32[40,128], index: 0, kind: input, shape index: {}]   ;;  %s4686_s1 = inlined_call_operand.vmem [shape: f32[128,128], index: 1, kind: input, shape index: {}]   ;;  %s4687_s2 = inlined_call_operand.vmem [shape: f32[1,128], index: 2, kind: input, shape index: {}]   ;;  %s4688_s3 = inlined_call_operand.hbm [shape: f32[3,128,384], index: 3, kind: input, shape index: {}]   ;;  %s4689_s4 = inlined_call_operand.hbm [shape: f32[3,128,384], index: 4, kind: input, shape index: {}]   ;;  %s4690_s5 = inlined_call_operand.vmem [shape: f32[3,1,384], index: 5, kind: input, shape index: {}]   ;;  %s4691_s6 = inlined_call_operand.vmem [shape: f32[3,1,384], index: 6, kind: input, shape index: {}]   ;;  %s4692_s7 = inlined_call_operand.vmem [shape: f32[3,1,128], index: 7, kind: input, shape index: {}]   ;;  %s4693_s8 = inlined_call_operand.vmem [shape: f32[3,1,128], index: 8, kind: input, shape index: {}]   ;;  %s4694_s9 = inlined_call_operand.vmem [shape: f32[128,128], index: 9, kind: input, shape index: {}]   ;;  %s4695_s10 = inlined_call_operand.vmem [shape: f32[1,128], index: 10, kind: input, shape index: {}]   ;;  %s4696_s11 = inlined_call_operand.vmem [shape: f32[8,128], index: 11, kind: output, shape index: {}]  }
   0x1   :  { %s28_s19 = sshll.u32 %s4688_s3, 4  ;;  %s29_s19 = int_to_ptr.hbm [resolvable:$true] %s28_s19 }
   0x2   :  { %17 = vsyncpa [#allocation5], 0  ;;  %s2994_s20 = smov [#allocation2]   ;;  %s41_s24 = sshll.u32 %s4689_s4, 4  ;;  %s42_s24 = int_to_ptr.hbm [resolvable:$true] %s41_s24 }
   0x3   :  { %s30_s21 = sshll.u32 %s2994_s20, 4  ;;  %s2995_s25 = smov 384   ;;  %s31_s21 = int_to_ptr.vmem [resolvable:$true] %s30_s21 }
   0x4   :  { %s2996_s26 = smov 24   ;;  %s2997_s27 = smov [#allocation4]  }
   0x5   :  { %36 = dma.hbm_to_vmem [thread:$0]  %s29_s19, 18432, %s31_s21, [#allocation3], %s2995_s25, %s2995_s25, %s2996_s26  }
   0x6   :  { %s43_s28 = sshll.u32 %s2997_s27, 4  ;;  %s44_s28 = int_to_ptr.vmem [resolvable:$true] %s43_s28 }
   0x7   :  { %49 = dma.hbm_to_vmem [thread:$0]  %s42_s24, 18432, %s44_s28, [#allocation5], %s2995_s25, %s2995_s25, %s2996_s26  }
   0x8   :  { %2990 = dma.done.wait [#allocation3], 18432  }
   0x9   :  { %2991 = vsyncadd [#allocation3], 4294948864 }
   0xa   :  { %2992 = dma.done.wait [#allocation5], 18432  }
   0xb   :  { %2993 = vsyncadd [#allocation5], 4294948864  ;;  %v90_v0 = vld [vmem:[%s4686_s1 + $0x78] sm:$0xff]  ;;  %v89_v1 = vld [vmem:[%s4686_s1 + $0x70] sm:$0xff] }
   0xc   :  { %95 = vmatpush.msra.mxu0 %v90_v0  ;;  %v88_v2 = vld [vmem:[%s4686_s1 + $0x68] sm:$0xff]  ;;  %v87_v3 = vld [vmem:[%s4686_s1 + $0x60] sm:$0xff]  ;;  %v86_v4 = vld [vmem:[%s4686_s1 + $0x58] sm:$0xff] }
   0xd   :  { %v85_v5 = vld [vmem:[%s4686_s1 + $0x50] sm:$0xff]  ;;  %v84_v6 = vld [vmem:[%s4686_s1 + $0x48] sm:$0xff]  ;;  %v83_v7 = vld [vmem:[%s4686_s1 + $0x40] sm:$0xff] }
   0xe   :  { %96 = vmatpush.msra.mxu0 %v89_v1  ;;  %v82_v8 = vld [vmem:[%s4686_s1 + $0x38] sm:$0xff]  ;;  %v81_v9 = vld [vmem:[%s4686_s1 + $0x30] sm:$0xff]  ;;  %v80_v10 = vld [vmem:[%s4686_s1 + $0x28] sm:$0xff] }
   0xf   :  { %v79_v11 = vld [vmem:[%s4686_s1 + $0x20] sm:$0xff]  ;;  %v78_v12 = vld [vmem:[%s4686_s1 + $0x18] sm:$0xff]  ;;  %v77_v13 = vld [vmem:[%s4686_s1 + $0x10] sm:$0xff] }
  0x10   :  { %97 = vmatpush.msra.mxu0 %v88_v2  ;;  %v76_v14 = vld [vmem:[%s4686_s1 + $0x8] sm:$0xff]  ;;  %v75_v15 = vld [vmem:[%s4686_s1] sm:$0xff]  ;;  %v173_v18 = vld [vmem:[#allocation2 + $0x170] sm:$0xff] }
  0x11   :  { %v70_v16 = vld [vmem:[%s4685_s0] sm:$0xff]  ;;  %v172_v17 = vld [vmem:[#allocation2 + $0x168] sm:$0xff]  ;;  %v174_v19 = vld [vmem:[#allocation2 + $0x178] sm:$0xff]  ;;  %264 = vmatpush.msra.mxu2 %v173_v18 }
  0x12   :  { %98 = vmatpush.msra.mxu0 %v87_v3  ;;  %232 = vmatpush.msra.mxu1 %v172_v17  ;;  %v3117_v20 = vld [vmem:[#allocation4 + $0x168] sm:$0xff]  ;;  %v169_v21 = vld [vmem:[#allocation2 + $0x150] sm:$0xff]  ;;  %v170_v22 = vld [vmem:[#allocation2 + $0x158] sm:$0xff] }
  0x13   :  { %296 = vmatpush.msra.mxu3 %v174_v19  ;;  %v171_v23 = vld [vmem:[#allocation2 + $0x160] sm:$0xff]  ;;  %v3120_v24 = vld [vmem:[#allocation4 + $0x150] sm:$0xff]  ;;  %v166_v25 = vld [vmem:[#allocation2 + $0x138] sm:$0xff]  ;;  %265 = vmatpush.msra.mxu2 %v170_v22  ;;  %v4697_v22 = vmov 0.0  }
  0x14   :  { %99 = vmatpush.msra.mxu0 %v86_v4  ;;  %233 = vmatpush.msra.mxu1 %v169_v21  ;;  %v167_v26 = vld [vmem:[#allocation2 + $0x140] sm:$0xff]  ;;  %v168_v27 = vld [vmem:[#allocation2 + $0x148] sm:$0xff]  ;;  %v3122_v28 = vld [vmem:[#allocation4 + $0x138] sm:$0xff] }
  0x15   :  { %297 = vmatpush.msra.mxu3 %v171_v23  ;;  %v163_v29 = vld [vmem:[#allocation2 + $0x120] sm:$0xff]  ;;  %v164_v30 = vld [vmem:[#allocation2 + $0x128] sm:$0xff]  ;;  %266 = vmatpush.msra.mxu2 %v167_v26  ;;  %v165_v32 = vld [vmem:[#allocation2 + $0x130] sm:$0xff] }
  0x16   :  { %100 = vmatpush.msra.mxu0 %v85_v5  ;;  %v71_v31 = vld [vmem:[%s4685_s0 + $0x8] sm:$0xff]  ;;  %234 = vmatpush.msra.mxu1 %v166_v25  ;;  %v3129_v33 = vld [vmem:[#allocation4 + $0x120] sm:$0xff]  ;;  %v161_v35 = vld [vmem:[#allocation2 + $0x110] sm:$0xff] }
  0x17   :  { %298 = vmatpush.msra.mxu3 %v168_v27  ;;  %v160_v34 = vld [vmem:[#allocation2 + $0x108] sm:$0xff]  ;;  %267 = vmatpush.msra.mxu2 %v164_v30  ;;  %v162_v36 = vld [vmem:[#allocation2 + $0x118] sm:$0xff]  ;;  %v157_v38 = vld [vmem:[#allocation2 + $0xf0] sm:$0xff] }
  0x18   :  { %101 = vmatpush.msra.mxu0 %v84_v6  ;;  %235 = vmatpush.msra.mxu1 %v163_v29  ;;  %v3131_v37 = vld [vmem:[#allocation4 + $0x108] sm:$0xff]  ;;  %v158_v39 = vld [vmem:[#allocation2 + $0xf8] sm:$0xff]  ;;  %v159_v40 = vld [vmem:[#allocation2 + $0x100] sm:$0xff] }
  0x19   :  { %299 = vmatpush.msra.mxu3 %v165_v32  ;;  %268 = vmatpush.msra.mxu2 %v161_v35  ;;  %v3134_v41 = vld [vmem:[#allocation4 + $0xf0] sm:$0xff]  ;;  %v154_v42 = vld [vmem:[#allocation2 + $0xd8] sm:$0xff]  ;;  %v155_v43 = vld [vmem:[#allocation2 + $0xe0] sm:$0xff] }
  0x1a   :  { %102 = vmatpush.msra.mxu0 %v83_v7  ;;  %236 = vmatpush.msra.mxu1 %v160_v34  ;;  %v156_v44 = vld [vmem:[#allocation2 + $0xe8] sm:$0xff]  ;;  %v3137_v45 = vld [vmem:[#allocation4 + $0xd8] sm:$0xff]  ;;  %v151_v46 = vld [vmem:[#allocation2 + $0xc0] sm:$0xff] }
  0x1b   :  { %300 = vmatpush.msra.mxu3 %v162_v36  ;;  %269 = vmatpush.msra.mxu2 %v158_v39  ;;  %v72_v47 = vld [vmem:[%s4685_s0 + $0x10] sm:$0xff]  ;;  %v152_v48 = vld [vmem:[#allocation2 + $0xc8] sm:$0xff]  ;;  %v3143_v50 = vld [vmem:[#allocation4 + $0xc0] sm:$0xff] }
  0x1c   :  { %103 = vmatpush.msra.mxu0 %v82_v8  ;;  %237 = vmatpush.msra.mxu1 %v157_v38  ;;  %v153_v49 = vld [vmem:[#allocation2 + $0xd0] sm:$0xff]  ;;  %v148_v51 = vld [vmem:[#allocation2 + $0xa8] sm:$0xff]  ;;  %v150_v53 = vld [vmem:[#allocation2 + $0xb8] sm:$0xff] }
  0x1d   :  { %301 = vmatpush.msra.mxu3 %v159_v40  ;;  %270 = vmatpush.msra.mxu2 %v155_v43  ;;  %v149_v52 = vld [vmem:[#allocation2 + $0xb0] sm:$0xff]  ;;  %v3146_v54 = vld [vmem:[#allocation4 + $0xa8] sm:$0xff]  ;;  %v146_v56 = vld [vmem:[#allocation2 + $0x98] sm:$0xff] }
  0x1e   :  { %104 = vmatpush.msra.mxu0 %v81_v9  ;;  %238 = vmatpush.msra.mxu1 %v154_v42  ;;  %v145_v55 = vld [vmem:[#allocation2 + $0x90] sm:$0xff]  ;;  %v147_v57 = vld [vmem:[#allocation2 + $0xa0] sm:$0xff]  ;;  %v142_v59 = vld [vmem:[#allocation2 + $0x78] sm:$0xff] }
  0x1f   :  { %302 = vmatpush.msra.mxu3 %v156_v44  ;;  %271 = vmatpush.msra.mxu2 %v152_v48  ;;  %v3149_v58 = vld [vmem:[#allocation4 + $0x90] sm:$0xff]  ;;  %v143_v60 = vld [vmem:[#allocation2 + $0x80] sm:$0xff]  ;;  %v144_v61 = vld [vmem:[#allocation2 + $0x88] sm:$0xff] }
  0x20   :  { %105 = vmatpush.msra.mxu0 %v80_v10  ;;  %239 = vmatpush.msra.mxu1 %v151_v46  ;;  %v3152_v62 = vld [vmem:[#allocation4 + $0x78] sm:$0xff]  ;;  %v139_v0 = vld [vmem:[#allocation2 + $0x60] sm:$0xff]  ;;  %v140_v1 = vld [vmem:[#allocation2 + $0x68] sm:$0xff] }
  0x21   :  { %303 = vmatpush.msra.mxu3 %v153_v49  ;;  %272 = vmatpush.msra.mxu2 %v149_v52  ;;  %v73_v63 = vld [vmem:[%s4685_s0 + $0x18] sm:$0xff]  ;;  %v141_v2 = vld [vmem:[#allocation2 + $0x70] sm:$0xff]  ;;  %v3159_v3 = vld [vmem:[#allocation4 + $0x60] sm:$0xff] }
  0x22   :  { %106 = vmatpush.msra.mxu0 %v79_v11  ;;  %240 = vmatpush.msra.mxu1 %v148_v51  ;;  %v136_v4 = vld [vmem:[#allocation2 + $0x48] sm:$0xff]  ;;  %v137_v5 = vld [vmem:[#allocation2 + $0x50] sm:$0xff]  ;;  %v138_v6 = vld [vmem:[#allocation2 + $0x58] sm:$0xff] }
  0x23   :  { %304 = vmatpush.msra.mxu3 %v150_v53  ;;  %273 = vmatpush.msra.mxu2 %v146_v56  ;;  %v3161_v7 = vld [vmem:[#allocation4 + $0x48] sm:$0xff]  ;;  %v133_v8 = vld [vmem:[#allocation2 + $0x30] sm:$0xff]  ;;  %v134_v9 = vld [vmem:[#allocation2 + $0x38] sm:$0xff] }
  0x24   :  { %107 = vmatpush.msra.mxu0 %v78_v12  ;;  %241 = vmatpush.msra.mxu1 %v145_v55  ;;  %v135_v10 = vld [vmem:[#allocation2 + $0x40] sm:$0xff]  ;;  %v3164_v11 = vld [vmem:[#allocation4 + $0x30] sm:$0xff]  ;;  %v128_v18 = vld [vmem:[#allocation2 + $0x8] sm:$0xff] }
  0x25   :  { %305 = vmatpush.msra.mxu3 %v147_v57  ;;  %274 = vmatpush.msra.mxu2 %v143_v60  ;;  %4733 = vst [vmem:[#allocation8_spill] sm:$0xff] %v3164_v11  ;;  %v74_v12 = vld [vmem:[%s4685_s0 + $0x20] sm:$0xff]  ;;  %v129_v19 = vld [vmem:[#allocation2 + $0x10] sm:$0xff]  ;;  %v3180_v25 = vld [vmem:[#allocation4 + $0x158] sm:$0xff] }
  0x26   :  { %108 = vmatpush.msra.mxu0 %v77_v13  ;;  %242 = vmatpush.msra.mxu1 %v142_v59  ;;  %v130_v13 = vld [vmem:[#allocation2 + $0x18] sm:$0xff]  ;;  %v127_v17 = vld [vmem:[#allocation2] sm:$0xff]  ;;  %v3178_v23 = vld [vmem:[#allocation4 + $0x170] sm:$0xff] }
  0x27   :  { %306 = vmatpush.msra.mxu3 %v144_v61  ;;  %275 = vmatpush.msra.mxu2 %v140_v1  ;;  %v3174_v21 = vld [vmem:[#allocation4] sm:$0xff]  ;;  %v3194_v27 = vld [vmem:[#allocation4 + $0x128] sm:$0xff]  ;;  %v3196_v29 = vld [vmem:[#allocation4 + $0x178] sm:$0xff] }
  0x28   :  { %109 = vmatpush.msra.mxu0 %v76_v14  ;;  %243 = vmatpush.msra.mxu1 %v139_v0  ;;  %v131_v14 = vld [vmem:[#allocation2 + $0x20] sm:$0xff]  ;;  %4735 = vst [vmem:[#allocation10_spill] sm:$0xff] %v3174_v21  ;;  %v3198_v30 = vld [vmem:[#allocation4 + $0x110] sm:$0xff]  ;;  %v3209_v32 = vld [vmem:[#allocation4 + $0x148] sm:$0xff] }
  0x29   :  { %307 = vmatpush.msra.mxu3 %v141_v2  ;;  %276 = vmatpush.msra.mxu2 %v137_v5  ;;  %v3189_v26 = vld [vmem:[#allocation4 + $0x140] sm:$0xff]  ;;  %v3213_v34 = vld [vmem:[#allocation4 + $0xf8] sm:$0xff]  ;;  %v3218_v36 = vld [vmem:[#allocation4 + $0x130] sm:$0xff] }
  0x2a   :  { %110 = vmatpush.msra.mxu0 %v75_v15  ;;  %244 = vmatpush.msra.mxu1 %v136_v4  ;;  %v132_v15 = vld [vmem:[#allocation2 + $0x28] sm:$0xff]  ;;  %v3216_v35 = vld [vmem:[#allocation4 + $0xe0] sm:$0xff]  ;;  %v3225_v38 = vld [vmem:[#allocation4 + $0x118] sm:$0xff] }
  0x2b   :  { %111 = vmatmul.f32.vlgmr.msra.gmra.mxu0 %v70_v16  ;;  %308 = vmatpush.msra.mxu3 %v138_v6  ;;  %v3171_v16 = vld [vmem:[#allocation4 + $0x18] sm:$0xff]  ;;  %v3227_v39 = vld [vmem:[#allocation4 + $0xc8] sm:$0xff]  ;;  %v3229_v40 = vld [vmem:[#allocation4 + $0x100] sm:$0xff] }
  0x2c   :  { %335 = vmatpush.msrb.mxu0 %v3117_v20  ;;  %245 = vmatpush.msra.mxu1 %v133_v8  ;;  %4734 = vst [vmem:[#allocation9_spill] sm:$0xff] %v3171_v16  ;;  %v3233_v42 = vld [vmem:[#allocation4 + $0xb0] sm:$0xff]  ;;  %v3241_v43 = vld [vmem:[#allocation4 + $0xe8] sm:$0xff]  ;;  %v3245_v44 = vld [vmem:[#allocation4 + $0x98] sm:$0xff] }
  0x2d   :  { %277 = vmatpush.msra.mxu2 %v134_v9  ;;  %309 = vmatpush.msra.mxu3 %v135_v10  ;;  %v3247_v46 = vld [vmem:[#allocation4 + $0xd0] sm:$0xff]  ;;  %v3256_v48 = vld [vmem:[#allocation4 + $0xb8] sm:$0xff]  ;;  %v3258_v49 = vld [vmem:[#allocation4 + $0xa0] sm:$0xff] }
  0x2e   :  { %336 = vmatpush.msrb.mxu0 %v3120_v24  ;;  %246 = vmatpush.msra.mxu1 %v130_v13  ;;  %v3264_v51 = vld [vmem:[%s4687_s2] ss:$0 sm:$0xff]  ;;  %v3268_v52 = vld [vmem:[#allocation4 + $0x68] sm:$0xff]  ;;  %v3280_v57 = vld [vmem:[#allocation4 + $0x50] sm:$0xff] }
  0x2f   :  { %278 = vmatpush.msra.mxu2 %v131_v14  ;;  %310 = vmatpush.msra.mxu3 %v132_v15  ;;  %v3274_v55 = vld [vmem:[#allocation4 + $0x88] sm:$0xff]  ;;  %v3282_v59 = vld [vmem:[#allocation4 + $0x70] sm:$0xff]  ;;  %v3287_v60 = vld [vmem:[#allocation4 + $0x38] sm:$0xff] }
  0x30   :  { %337 = vmatpush.msrb.mxu0 %v3122_v28  ;;  %247 = vmatpush.msra.mxu1 %v127_v17  ;;  %4736 = vst [vmem:[#allocation11_spill] sm:$0xff] %v3287_v60  ;;  %v3289_v61 = vld [vmem:[#allocation4 + $0x58] sm:$0xff]  ;;  %v3294_v0 = vld [vmem:[#allocation4 + $0x40] sm:$0xff]  ;;  %v3298_v1 = vld [vmem:[#allocation4 + $0x8] sm:$0xff] }
  0x31   :  { %279 = vmatpush.msra.mxu2 %v128_v18  ;;  %311 = vmatpush.msra.mxu3 %v129_v19  ;;  %4738 = vst [vmem:[#allocation13_spill] sm:$0xff] %v3298_v1  ;;  %v3302_v2 = vld [vmem:[#allocation4 + $0x28] sm:$0xff]  ;;  %v3309_v6 = vld [vmem:[#allocation4 + $0x10] sm:$0xff]  ;;  %v223_v15 = vld [vmem:[%s4690_s5] sm:$0x7] }
  0x32   :  { %338 = vmatpush.msrb.mxu0 %v3129_v33  ;;  %355 = vmatpush.msrb.mxu1 %v3178_v23  ;;  %4739 = vst [vmem:[#allocation14_spill] sm:$0xff] %v3302_v2  ;;  %v224_v17 = vld [vmem:[%s4691_s6] sm:$0x7]  ;;  %v3420_v18 = vperm.slane %v223_v15, 0 }
  0x33   :  { %114 = vmatmul.f32.gmra.mxu0 %v71_v31  ;;  %442 = vmatpush.msrb.mxu3 %v3117_v20  ;;  %v3203_v31 = vld [vmem:[#allocation4 + $0x160] sm:$0xff]  ;;  %4740 = vst [vmem:[#allocation15_spill] sm:$0xff] %v3309_v6 }
  0x34   :  { %339 = vmatpush.msrb.mxu0 %v3131_v37  ;;  %356 = vmatpush.msrb.mxu1 %v3180_v25  ;;  %4741 = vst [vmem:[#allocation16_spill] sm:$0xff] %v3420_v18 }
  0x35   :  { %443 = vmatpush.msrb.mxu3 %v3120_v24  ;;  %375 = vmatpush.msrb.mxu2 %v3196_v29 }
  0x36   :  { %340 = vmatpush.msrb.mxu0 %v3134_v41  ;;  %357 = vmatpush.msrb.mxu1 %v3189_v26 }
  0x37   :  { %444 = vmatpush.msrb.mxu3 %v3122_v28  ;;  %376 = vmatpush.msrb.mxu2 %v3203_v31 }
  0x38   :  { %341 = vmatpush.msrb.mxu0 %v3137_v45  ;;  %358 = vmatpush.msrb.mxu1 %v3194_v27 }
  0x39   :  { %445 = vmatpush.msrb.mxu3 %v3129_v33  ;;  %377 = vmatpush.msrb.mxu2 %v3209_v32 }
  0x3a   :  { %342 = vmatpush.msrb.mxu0 %v3143_v50  ;;  %359 = vmatpush.msrb.mxu1 %v3198_v30 }
  0x3b   :  { %117 = vmatmul.f32.gmra.mxu0 %v72_v47  ;;  %446 = vmatpush.msrb.mxu3 %v3131_v37  ;;  %v3254_v47 = vld [vmem:[#allocation4 + $0x80] sm:$0xff] }
  0x3c   :  { %343 = vmatpush.msrb.mxu0 %v3146_v54  ;;  %360 = vmatpush.msrb.mxu1 %v3213_v34 }
  0x3d   :  { %447 = vmatpush.msrb.mxu3 %v3134_v41  ;;  %378 = vmatpush.msrb.mxu2 %v3218_v36 }
  0x3e   :  { %344 = vmatpush.msrb.mxu0 %v3149_v58  ;;  %361 = vmatpush.msrb.mxu1 %v3216_v35 }
  0x3f   :  { %448 = vmatpush.msrb.mxu3 %v3137_v45  ;;  %379 = vmatpush.msrb.mxu2 %v3225_v38 }
  0x40   :  { %345 = vmatpush.msrb.mxu0 %v3152_v62  ;;  %362 = vmatpush.msrb.mxu1 %v3227_v39 }
  0x41   :  { %449 = vmatpush.msrb.mxu3 %v3143_v50  ;;  %380 = vmatpush.msrb.mxu2 %v3229_v40 }
  0x42   :  { %346 = vmatpush.msrb.mxu0 %v3159_v3  ;;  %363 = vmatpush.msrb.mxu1 %v3233_v42 }
  0x43   :  { %120 = vmatmul.f32.gmra.mxu0 %v73_v63  ;;  %450 = vmatpush.msrb.mxu3 %v3146_v54  ;;  %v3291_v63 = vld [vmem:[#allocation4 + $0x20] sm:$0xff] }
  0x44   :  { %347 = vmatpush.msrb.mxu0 %v3161_v7  ;;  %381 = vmatpush.msrb.mxu2 %v3241_v43  ;;  %4737 = vst [vmem:[#allocation12_spill] sm:$0xff] %v3291_v63 }
  0x45   :  { %451 = vmatpush.msrb.mxu3 %v3149_v58  ;;  %364 = vmatpush.msrb.mxu1 %v3245_v44 }
  0x46   :  { %348 = vmatpush.msrb.mxu0 %v3164_v11  ;;  %382 = vmatpush.msrb.mxu2 %v3247_v46 }
  0x47   :  { %452 = vmatpush.msrb.mxu3 %v3152_v62  ;;  %365 = vmatpush.msrb.mxu1 %v3254_v47 }
  0x48   :  { %349 = vmatpush.msrb.mxu0 %v3171_v16  ;;  %383 = vmatpush.msrb.mxu2 %v3256_v48 }
  0x49   :  { %453 = vmatpush.msrb.mxu3 %v3159_v3  ;;  %366 = vmatpush.msrb.mxu1 %v3268_v52 }
  0x4a   :  { %350 = vmatpush.msrb.mxu0 %v3174_v21  ;;  %384 = vmatpush.msrb.mxu2 %v3258_v49 }
  0x4b   :  { %123 = vmatmul.f32.gmra.mxu0 %v74_v12  ;;  %454 = vmatpush.msrb.mxu3 %v3161_v7 }
  0x4c   :  { %462 = vmatpush.msra.mxu0 %v3178_v23  ;;  %385 = vmatpush.msrb.mxu2 %v3274_v55 }
  0x4d   :  { %455 = vmatpush.msrb.mxu3 %v3164_v11  ;;  %367 = vmatpush.msrb.mxu1 %v3280_v57 }
  0x4e   :  { %463 = vmatpush.msra.mxu0 %v3180_v25  ;;  %386 = vmatpush.msrb.mxu2 %v3282_v59 }
  0x4f   :  { %456 = vmatpush.msrb.mxu3 %v3171_v16  ;;  %368 = vmatpush.msrb.mxu1 %v3287_v60 }
  0x50   :  { %464 = vmatpush.msra.mxu0 %v3189_v26  ;;  %387 = vmatpush.msrb.mxu2 %v3289_v61 }
  0x51   :  { %457 = vmatpush.msrb.mxu3 %v3174_v21  ;;  %369 = vmatpush.msrb.mxu1 %v3291_v63 }
  0x52   :  { %465 = vmatpush.msra.mxu0 %v3194_v27  ;;  %388 = vmatpush.msrb.mxu2 %v3294_v0 }
  0x53   :  { %351 = vmatmul.f32.vlgmr.msrb.gmra.mxu0 %v4697_v22  ;;  %370 = vmatpush.msrb.mxu1 %v3298_v1 }
  0x54   :  { %466 = vmatpush.msra.mxu0 %v3198_v30  ;;  %389 = vmatpush.msrb.mxu2 %v3302_v2 }
  0x56   :  { %467 = vmatpush.msra.mxu0 %v3213_v34  ;;  %390 = vmatpush.msrb.mxu2 %v3309_v6 }
  0x58   :  { %468 = vmatpush.msra.mxu0 %v3216_v35 }
  0x5a   :  { %469 = vmatpush.msra.mxu0 %v3227_v39 }
  0x5c   :  { %470 = vmatpush.msra.mxu0 %v3233_v42 }
  0x5e   :  { %471 = vmatpush.msra.mxu0 %v3245_v44 }
  0x60   :  { %472 = vmatpush.msra.mxu0 %v3254_v47 }
  0x62   :  { %473 = vmatpush.msra.mxu0 %v3268_v52 }
  0x64   :  { %474 = vmatpush.msra.mxu0 %v3280_v57 }
  0x66   :  { %475 = vmatpush.msra.mxu0 %v3287_v60 }
  0x68   :  { %476 = vmatpush.msra.mxu0 %v3291_v63 }
  0x6a   :  { %477 = vmatpush.msra.mxu0 %v3298_v1 }
  0x6c   :  { %589 = vmatpush.msrb.mxu0 %v3196_v29 }
  0x6e   :  { %590 = vmatpush.msrb.mxu0 %v3203_v31 }
  0x70   :  { %591 = vmatpush.msrb.mxu0 %v3209_v32 }
  0x72   :  { %592 = vmatpush.msrb.mxu0 %v3218_v36 }
  0x74   :  { %593 = vmatpush.msrb.mxu0 %v3225_v38 }
  0x76   :  { %594 = vmatpush.msrb.mxu0 %v3229_v40 }
  0x78   :  { %595 = vmatpush.msrb.mxu0 %v3241_v43 }
  0x7a   :  { %596 = vmatpush.msrb.mxu0 %v3247_v46 }
  0x7c   :  { %597 = vmatpush.msrb.mxu0 %v3256_v48 }
  0x7e   :  { %598 = vmatpush.msrb.mxu0 %v3258_v49 }
  0x80   :  { %599 = vmatpush.msrb.mxu0 %v3274_v55 }
  0x82   :  { %600 = vmatpush.msrb.mxu0 %v3282_v59 }
  0x84   :  { %601 = vmatpush.msrb.mxu0 %v3289_v61 }
  0x86   :  { %602 = vmatpush.msrb.mxu0 %v3294_v0 }
  0x88   :  { %603 = vmatpush.msrb.mxu0 %v3302_v2 }
  0x8a   :  { %604 = vmatpush.msrb.mxu0 %v3309_v6 }
  0xa8   :  { %v112_v53 = vpop.f32.mrf.mxu0 }
  0xa9   :  { %v113_v56 = vadd.f32 %v3264_v51, %v112_v53 }
  0xab   :  { %248 = vmatmul.f32.vlgmr.msra.gmra.mxu1 %v113_v56  ;;  %280 = vmatmul.f32.vlgmr.msra.gmra.mxu2 %v113_v56 }
  0xac   :  { %312 = vmatmul.f32.vlgmr.msra.gmra.mxu3 %v113_v56  ;;  %482 = vmatpush.msra.mxu1 %v3196_v29 }
  0xad   :  { %569 = vmatpush.msra.mxu3 %v3178_v23  ;;  %549 = vmatpush.msra.mxu2 %v3117_v20 }
  0xae   :  { %483 = vmatpush.msra.mxu1 %v3203_v31 }
  0xaf   :  { %570 = vmatpush.msra.mxu3 %v3180_v25  ;;  %550 = vmatpush.msra.mxu2 %v3120_v24 }
  0xb0   :  { %v115_v4 = vpop.f32.mrf.mxu0  ;;  %484 = vmatpush.msra.mxu1 %v3209_v32 }
  0xb1   :  { %v116_v5 = vadd.f32 %v3264_v51, %v115_v4  ;;  %571 = vmatpush.msra.mxu3 %v3189_v26  ;;  %551 = vmatpush.msra.mxu2 %v3122_v28 }
  0xb2   :  { %485 = vmatpush.msra.mxu1 %v3218_v36 }
  0xb3   :  { %251 = vmatmul.f32.gmra.mxu1 %v116_v5  ;;  %283 = vmatmul.f32.gmra.mxu2 %v116_v5 }
  0xb4   :  { %315 = vmatmul.f32.gmra.mxu3 %v116_v5  ;;  %486 = vmatpush.msra.mxu1 %v3225_v38 }
  0xb5   :  { %572 = vmatpush.msra.mxu3 %v3194_v27  ;;  %552 = vmatpush.msra.mxu2 %v3129_v33 }
  0xb6   :  { %487 = vmatpush.msra.mxu1 %v3229_v40 }
  0xb7   :  { %573 = vmatpush.msra.mxu3 %v3198_v30  ;;  %553 = vmatpush.msra.mxu2 %v3131_v37 }
  0xb8   :  { %v118_v8 = vpop.f32.mrf.mxu0  ;;  %488 = vmatpush.msra.mxu1 %v3241_v43 }
  0xb9   :  { %v119_v9 = vadd.f32 %v3264_v51, %v118_v8  ;;  %574 = vmatpush.msra.mxu3 %v3213_v34  ;;  %554 = vmatpush.msra.mxu2 %v3134_v41 }
  0xba   :  { %489 = vmatpush.msra.mxu1 %v3247_v46 }
  0xbb   :  { %254 = vmatmul.f32.gmra.mxu1 %v119_v9  ;;  %286 = vmatmul.f32.gmra.mxu2 %v119_v9 }
  0xbc   :  { %318 = vmatmul.f32.gmra.mxu3 %v119_v9  ;;  %490 = vmatpush.msra.mxu1 %v3256_v48 }
  0xbd   :  { %575 = vmatpush.msra.mxu3 %v3216_v35  ;;  %555 = vmatpush.msra.mxu2 %v3137_v45 }
  0xbe   :  { %491 = vmatpush.msra.mxu1 %v3258_v49 }
  0xbf   :  { %576 = vmatpush.msra.mxu3 %v3227_v39  ;;  %556 = vmatpush.msra.mxu2 %v3143_v50 }
  0xc0   :  { %v121_v10 = vpop.f32.mrf.mxu0  ;;  %492 = vmatpush.msra.mxu1 %v3274_v55 }
  0xc1   :  { %v122_v12 = vadd.f32 %v3264_v51, %v121_v10  ;;  %577 = vmatpush.msra.mxu3 %v3233_v42  ;;  %557 = vmatpush.msra.mxu2 %v3146_v54 }
  0xc2   :  { %493 = vmatpush.msra.mxu1 %v3282_v59 }
  0xc3   :  { %257 = vmatmul.f32.gmra.mxu1 %v122_v12  ;;  %289 = vmatmul.f32.gmra.mxu2 %v122_v12 }
  0xc4   :  { %321 = vmatmul.f32.gmra.mxu3 %v122_v12  ;;  %494 = vmatpush.msra.mxu1 %v3289_v61 }
  0xc5   :  { %578 = vmatpush.msra.mxu3 %v3245_v44  ;;  %558 = vmatpush.msra.mxu2 %v3149_v58 }
  0xc6   :  { %495 = vmatpush.msra.mxu1 %v3294_v0 }
  0xc7   :  { %579 = vmatpush.msra.mxu3 %v3254_v47  ;;  %559 = vmatpush.msra.mxu2 %v3152_v62 }
  0xc8   :  { %v124_v13 = vpop.f32.mrf.mxu0  ;;  %496 = vmatpush.msra.mxu1 %v3302_v2 }
  0xc9   :  { %v125_v14 = vadd.f32 %v3264_v51, %v124_v13  ;;  %580 = vmatpush.msra.mxu3 %v3268_v52  ;;  %560 = vmatpush.msra.mxu2 %v3159_v3  ;;  %v3422_v51 = vperm.slane %v224_v17, 0  ;;  %v227_v13 = vperm.slane %v223_v15, 1 }
  0xca   :  { %497 = vmatpush.msra.mxu1 %v3309_v6 }
  0xcb   :  { %260 = vmatmul.f32.gmra.mxu1 %v125_v14  ;;  %292 = vmatmul.f32.gmra.mxu2 %v125_v14  ;;  %4742 = vst [vmem:[#allocation17_spill] sm:$0xff] %v3422_v51 }
  0xcc   :  { %324 = vmatmul.f32.gmra.mxu3 %v125_v14  ;;  %561 = vmatpush.msra.mxu2 %v3161_v7 }
  0xcd   :  { %581 = vmatpush.msra.mxu3 %v3280_v57 }
  0xce   :  { %562 = vmatpush.msra.mxu2 %v3164_v11 }
  0xcf   :  { %582 = vmatpush.msra.mxu3 %v3287_v60 }
  0xd0   :  { %563 = vmatpush.msra.mxu2 %v3171_v16  ;;  %v352_v53 = vpop.f32.mrf.mxu0 }
  0xd1   :  { %583 = vmatpush.msra.mxu3 %v3291_v63  ;;  %v353_v4 = vadd.f32 %v352_v53, %v3422_v51 }
  0xd2   :  { %564 = vmatpush.msra.mxu2 %v3174_v21 }
  0xd3   :  { %371 = vmatmul.f32.vlgmr.msrb.gmra.mxu1 %v4697_v22  ;;  %391 = vmatmul.f32.vlgmr.msrb.gmra.mxu2 %v4697_v22 }
  0xd4   :  { %656 = vmatpush.msrb.mxu1 %v3117_v20  ;;  %584 = vmatpush.msra.mxu3 %v3298_v1 }
  0xd5   :  { %676 = vmatpush.msrb.mxu2 %v3178_v23 }
  0xd6   :  { %657 = vmatpush.msrb.mxu1 %v3120_v24 }
  0xd7   :  { %677 = vmatpush.msrb.mxu2 %v3180_v25 }
  0xd8   :  { %658 = vmatpush.msrb.mxu1 %v3122_v28 }
  0xd9   :  { %678 = vmatpush.msrb.mxu2 %v3189_v26 }
  0xda   :  { %659 = vmatpush.msrb.mxu1 %v3129_v33 }
  0xdb   :  { %679 = vmatpush.msrb.mxu2 %v3194_v27 }
  0xdc   :  { %660 = vmatpush.msrb.mxu1 %v3131_v37 }
  0xdd   :  { %680 = vmatpush.msrb.mxu2 %v3198_v30 }
  0xde   :  { %661 = vmatpush.msrb.mxu1 %v3134_v41 }
  0xdf   :  { %681 = vmatpush.msrb.mxu2 %v3213_v34 }
  0xe0   :  { %662 = vmatpush.msrb.mxu1 %v3137_v45 }
  0xe1   :  { %682 = vmatpush.msrb.mxu2 %v3216_v35 }
  0xe2   :  { %663 = vmatpush.msrb.mxu1 %v3143_v50 }
  0xe3   :  { %683 = vmatpush.msrb.mxu2 %v3227_v39 }
  0xe4   :  { %664 = vmatpush.msrb.mxu1 %v3146_v54 }
  0xe5   :  { %684 = vmatpush.msrb.mxu2 %v3233_v42 }
  0xe6   :  { %665 = vmatpush.msrb.mxu1 %v3149_v58 }
  0xe7   :  { %685 = vmatpush.msrb.mxu2 %v3245_v44 }
  0xe8   :  { %666 = vmatpush.msrb.mxu1 %v3152_v62 }
  0xe9   :  { %686 = vmatpush.msrb.mxu2 %v3254_v47 }
  0xea   :  { %667 = vmatpush.msrb.mxu1 %v3159_v3 }
  0xeb   :  { %687 = vmatpush.msrb.mxu2 %v3268_v52 }
  0xec   :  { %668 = vmatpush.msrb.mxu1 %v3161_v7 }
  0xed   :  { %688 = vmatpush.msrb.mxu2 %v3280_v57 }
  0xee   :  { %669 = vmatpush.msrb.mxu1 %v3164_v11 }
  0xef   :  { %689 = vmatpush.msrb.mxu2 %v3287_v60  ;;  %v3458_v60 = vperm.slane %v224_v17, 2 }
  0xf0   :  { %670 = vmatpush.msrb.mxu1 %v3171_v16 }
  0xf1   :  { %690 = vmatpush.msrb.mxu2 %v3291_v63 }
  0xf2   :  { %671 = vmatpush.msrb.mxu1 %v3174_v21 }
  0xf3   :  { %691 = vmatpush.msrb.mxu2 %v3298_v1 }
 0x128   :  { %v249_v19 = vpop.f32.mrf.mxu1 }
 0x129   :  { %v250_v56 = vadd.f32 %v249_v19, %v3420_v18  ;;  %v3435_v19 = vperm.slane %v223_v15, 2 }
 0x12b   :  { %v395_v9 = vadd.f32 %v353_v4, %v250_v56 }
 0x12d   :  { %v396_v12 = vsub.f32 0.0, %v395_v9 }
 0x12e   :  { %v281_v5 = vpop.f32.mrf.mxu2 }
 0x12f   :  { %v313_v8 = vpop.f32.mrf.mxu3  ;;  %v397_v21 = vmul.f32 1.442695, %v396_v12 }
 0x130   :  { %v3426_v10 = vpop.f32.mrf.mxu1 }
 0x131   :  { %4743 = vst [vmem:[#allocation18_spill] sm:$0xff] %v3426_v10  ;;  %2748 = vpow2.f32 %v397_v21 }
 0x136   :  { %v284_v14 = vpop.f32.mrf.mxu2 }
 0x137   :  { %v3428_v22 = vadd.f32 %v284_v14, %v227_v13  ;;  %v3430_v1 = vpop.f32.mrf.mxu3 }
 0x138   :  { %4745 = vst [vmem:[#allocation20_spill] sm:$0xff] %v3430_v1  ;;  %v255_v6 = vpop.f32.mrf.mxu1  ;;  %v2749_v1 = vpop.eup %2748 }
 0x139   :  { %4744 = vst [vmem:[#allocation19_spill] sm:$0xff] %v3428_v22  ;;  %v3433_v63 = vadd.f32 %v255_v6, %v3420_v18  ;;  %v399_v12 = vadd.f32 1.0, %v2749_v1  ;;  %v282_v1 = vadd.f32 %v281_v5, %v227_v13 }
 0x13b   :  { %4746 = vst [vmem:[#allocation21_spill] sm:$0xff] %v3433_v63  ;;  %2750 = vrcp.f32 %v399_v12  ;;  %v411_v11 = vand.u32 2147483648, %v399_v12  ;;  %vm405_vm1 = vweird.f32 %v399_v12 }
 0x13e   :  { %v287_v53 = vpop.f32.mrf.mxu2 }
 0x13f   :  { %v3437_v51 = vadd.f32 %v287_v53, %v227_v13  ;;  %v319_v56 = vpop.f32.mrf.mxu3 }
 0x140   :  { %v3440_v4 = vadd.f32 %v319_v56, %v3435_v19  ;;  %v258_v9 = vpop.f32.mrf.mxu1  ;;  %v3453_v56 = vperm.slane %v224_v17, 1  ;;  %v314_v17 = vadd.f32 %v313_v8, %v3435_v19 }
 0x141   :  { %4747 = vst [vmem:[#allocation22_spill] sm:$0xff] %v3437_v51  ;;  %v3443_v14 = vadd.f32 %v258_v9, %v3420_v18  ;;  %v2751_v51 = vpop.eup %2750 }
 0x142   :  { %4748 = vst [vmem:[#allocation23_spill] sm:$0xff] %v3440_v4  ;;  %vm406_vm0 = vweird.f32 %v2751_v51 }
 0x143   :  { %4749 = vst [vmem:[#allocation24_spill] sm:$0xff] %v3443_v14  ;;  %vm407_vm2 = vmor %vm405_vm1, %vm406_vm0 }
 0x146   :  { %v290_v10 = vpop.f32.mrf.mxu2 }
 0x147   :  { %v3445_v22 = vadd.f32 %v290_v10, %v227_v13  ;;  %v322_v6 = vpop.f32.mrf.mxu3 }
 0x148   :  { %v3448_v21 = vadd.f32 %v322_v6, %v3435_v19  ;;  %v261_v15 = vpop.f32.mrf.mxu1 }
 0x149   :  { %4750 = vst [vmem:[#allocation25_spill] sm:$0xff] %v3445_v22  ;;  %v3451_v53 = vadd.f32 %v261_v15, %v3420_v18  ;;  %v401_v22 = vmul.f32 %v2751_v51, %v399_v12 }
 0x14a   :  { %4751 = vst [vmem:[#allocation26_spill] sm:$0xff] %v3448_v21 }
 0x14b   :  { %4752 = vst [vmem:[#allocation27_spill] sm:$0xff] %v3451_v53  ;;  %v402_v6 = vsub.f32 1.0, %v401_v22 }
 0x14d   :  { %v403_v2 = vmul.f32 %v2751_v51, %v402_v6 }
 0x14e   :  { %v293_v4 = vpop.f32.mrf.mxu2 }
 0x14f   :  { %v3455_v9 = vadd.f32 %v293_v4, %v227_v13  ;;  %v404_v15 = vadd.f32 %v2751_v51, %v403_v2 }
 0x150   :  { %v372_v14 = vpop.f32.mrf.mxu1 }
 0x151   :  { %4753 = vst [vmem:[#allocation28_spill] sm:$0xff] %v3455_v9  ;;  %v373_v10 = vadd.f32 %v372_v14, %v3453_v56  ;;  %v409_v9 = vand.u32 2147483647, %v399_v12  ;;  %v408_v13 = vsel %vm407_vm2, %v2751_v51, %v404_v15 }
 0x153   :  { %v415_v63 = vadd.f32 %v373_v10, %v282_v1  ;;  %vm410_vm3 = vcmp.eq.f32.partialorder %v409_v9, 8.507059e+37 }
 0x155   :  { %v416_v16 = vsub.f32 0.0, %v415_v63  ;;  %v412_v63 = vor.u32 1.1754944e-38, %v411_v11 }
 0x156   :  { %v392_v18 = vpop.f32.mrf.mxu2 }
 0x157   :  { %v417_v21 = vmul.f32 1.442695, %v416_v16  ;;  %v393_v5 = vadd.f32 %v392_v18, %v3458_v60  ;;  %v413_v16 = vsel %vm410_vm3, %v412_v63, %v408_v13 }
 0x159   :  { %2752 = vpow2.f32 %v417_v21  ;;  %v435_v22 = vmul.f32 %v413_v16, %v393_v5 }
 0x15b   :  { %v436_v21 = vadd.f32 %v435_v22, %v314_v17 }
 0x15f   :  { %v2753_v53 = vpop.eup %2752 }
 0x160   :  { %v419_v4 = vadd.f32 1.0, %v2753_v53 }
 0x162   :  { %2754 = vrcp.f32 %v419_v4  ;;  %v431_v10 = vand.u32 2147483648, %v419_v4  ;;  %v429_v53 = vand.u32 2147483647, %v419_v4  ;;  %vm425_vm5 = vweird.f32 %v419_v4 }
 0x163   :  { %2756 = vtanh.f32 %v436_v21 }
 0x164   :  { %v432_v18 = vor.u32 1.1754944e-38, %v431_v10  ;;  %vm430_vm7 = vcmp.eq.f32.partialorder %v429_v53, 8.507059e+37 }
 0x168   :  { %v2755_v14 = vpop.eup %2754 }
 0x169   :  { %v421_v2 = vmul.f32 %v2755_v14, %v419_v4  ;;  %vm426_vm4 = vweird.f32 %v2755_v14  ;;  %v2757_v15 = vpop.eup %2756 }
 0x16a   :  { %vm427_vm6 = vmor %vm425_vm5, %vm426_vm4 }
 0x16b   :  { %v422_v1 = vsub.f32 1.0, %v421_v2 }
 0x16d   :  { %v423_v6 = vmul.f32 %v2755_v14, %v422_v1 }
 0x16f   :  { %v424_v12 = vadd.f32 %v2755_v14, %v423_v6 }
 0x171   :  { %v428_v51 = vsel %vm427_vm6, %v2755_v14, %v424_v12 }
 0x172   :  { %v433_v11 = vsel %vm430_vm7, %v432_v18, %v428_v51 }
 0x173   :  { %v438_v9 = vsub.f32 1.0, %v433_v11  ;;  %v440_v13 = vmul.f32 0.0, %v433_v11 }
 0x175   :  { %v439_v5 = vmul.f32 %v2757_v15, %v438_v9 }
 0x177   :  { %v3462_v8 = vadd.f32 %v440_v13, %v439_v5  ;;  %v4766_v13 = vld [vmem:[#allocation20_spill] sm:$0xff] }
 0x179   :  { %870 = vadd.xlane.f32.xlu0 %v3462_v8  ;;  %458 = vmatmul.f32.vlgmr.msrb.gmra.mxu3 %v3462_v8 }
 0x17a   :  { %478 = vmatmul.f32.vlgmr.msra.gmra.mxu0 %v3462_v8  ;;  %498 = vmatmul.f32.vlgmr.msra.gmra.mxu1 %v3462_v8 }
 0x17b   :  { %696 = vmatpush.msrb.mxu3 %v3196_v29  ;;  %763 = vmatpush.msra.mxu0 %v3117_v20  ;;  %v4754_v20 = vld [vmem:[#allocation8_spill] sm:$0xff] }
 0x17c   :  { %783 = vmatpush.msra.mxu1 %v3178_v23 }
 0x17d   :  { %697 = vmatpush.msrb.mxu3 %v3203_v31  ;;  %764 = vmatpush.msra.mxu0 %v3120_v24  ;;  %v4755_v24 = vld [vmem:[#allocation11_spill] sm:$0xff] }
 0x17e   :  { %784 = vmatpush.msra.mxu1 %v3180_v25 }
 0x17f   :  { %698 = vmatpush.msrb.mxu3 %v3209_v32  ;;  %765 = vmatpush.msra.mxu0 %v3122_v28  ;;  %v4756_v28 = vld [vmem:[#allocation14_spill] sm:$0xff] }
 0x180   :  { %785 = vmatpush.msra.mxu1 %v3189_v26  ;;  %v4763_v26 = vld [vmem:[#allocation16_spill] sm:$0xff] }
 0x181   :  { %699 = vmatpush.msrb.mxu3 %v3218_v36  ;;  %766 = vmatpush.msra.mxu0 %v3129_v33  ;;  %v4757_v33 = vld [vmem:[#allocation9_spill] sm:$0xff] }
 0x182   :  { %786 = vmatpush.msra.mxu1 %v3194_v27  ;;  %v4764_v27 = vld [vmem:[#allocation18_spill] sm:$0xff] }
 0x183   :  { %700 = vmatpush.msrb.mxu3 %v3225_v38  ;;  %767 = vmatpush.msra.mxu0 %v3131_v37  ;;  %v4758_v37 = vld [vmem:[#allocation12_spill] sm:$0xff] }
 0x184   :  { %787 = vmatpush.msra.mxu1 %v3198_v30  ;;  %v253_v30 = vadd.f32 %v4764_v27, %v4763_v26  ;;  %v4768_v27 = vld [vmem:[#allocation21_spill] sm:$0xff] }
 0x185   :  { %701 = vmatpush.msrb.mxu3 %v3229_v40  ;;  %768 = vmatpush.msra.mxu0 %v3134_v41  ;;  %v4759_v41 = vld [vmem:[#allocation15_spill] sm:$0xff] }
 0x186   :  { %788 = vmatpush.msra.mxu1 %v3213_v34  ;;  %v4765_v34 = vld [vmem:[#allocation17_spill] sm:$0xff] }
 0x187   :  { %702 = vmatpush.msrb.mxu3 %v3241_v43  ;;  %769 = vmatpush.msra.mxu0 %v3137_v45  ;;  %v4760_v45 = vld [vmem:[#allocation10_spill] sm:$0xff] }
 0x188   :  { %789 = vmatpush.msra.mxu1 %v3216_v35 }
 0x189   :  { %703 = vmatpush.msrb.mxu3 %v3247_v46  ;;  %770 = vmatpush.msra.mxu0 %v3143_v50  ;;  %v4761_v50 = vld [vmem:[#allocation13_spill] sm:$0xff] }
 0x18a   :  { %790 = vmatpush.msra.mxu1 %v3227_v39 }
 0x18b   :  { %704 = vmatpush.msrb.mxu3 %v3256_v48  ;;  %771 = vmatpush.msra.mxu0 %v3146_v54  ;;  %v3516_v54 = vpop.f32.mrf.mxu3 }
 0x18c   :  { %791 = vmatpush.msra.mxu1 %v3233_v42 }
 0x18d   :  { %705 = vmatpush.msrb.mxu3 %v3258_v49  ;;  %772 = vmatpush.msra.mxu0 %v3149_v58 }
 0x18e   :  { %792 = vmatpush.msra.mxu1 %v3245_v44 }
 0x18f   :  { %706 = vmatpush.msrb.mxu3 %v3274_v55  ;;  %773 = vmatpush.msra.mxu0 %v3152_v62 }
 0x190   :  { %793 = vmatpush.msra.mxu1 %v3254_v47 }
 0x191   :  { %707 = vmatpush.msrb.mxu3 %v3282_v59  ;;  %774 = vmatpush.msra.mxu0 %v3159_v3  ;;  %v4762_v3 = vld [vmem:[#allocation19_spill] sm:$0xff] }
 0x192   :  { %794 = vmatpush.msra.mxu1 %v3268_v52 }
 0x193   :  { %708 = vmatpush.msrb.mxu3 %v3289_v61  ;;  %775 = vmatpush.msra.mxu0 %v3161_v7 }
 0x194   :  { %795 = vmatpush.msra.mxu1 %v3280_v57 }
 0x195   :  { %709 = vmatpush.msrb.mxu3 %v3294_v0  ;;  %776 = vmatpush.msra.mxu0 %v4754_v20  ;;  %v317_v20 = vadd.f32 %v4766_v13, %v3435_v19 }
 0x196   :  { %796 = vmatpush.msra.mxu1 %v4755_v24 }
 0x197   :  { %710 = vmatpush.msrb.mxu3 %v4756_v28  ;;  %777 = vmatpush.msra.mxu0 %v4757_v33 }
 0x198   :  { %797 = vmatpush.msra.mxu1 %v4758_v37 }
 0x199   :  { %711 = vmatpush.msrb.mxu3 %v4759_v41  ;;  %778 = vmatpush.msra.mxu0 %v4760_v45 }
 0x19a   :  { %798 = vmatpush.msra.mxu1 %v4761_v50 }
 0x1f7   :  { %v479_v58 = vpop.f32.mrf.mxu0  ;;  %v499_v12 = vpop.f32.mrf.mxu1 }
 0x1f8   :  { %v480_v62 = vadd.f32 %v479_v58, %v3453_v56  ;;  %v500_v11 = vadd.f32 %v499_v12, %v3458_v60 }
 0x1fa   :  { %v522_v7 = vadd.f32 %v480_v62, %v4762_v3 }
 0x1fc   :  { %v523_v23 = vsub.f32 0.0, %v522_v7  ;;  %v459_v25 = vpop.f32.mrf.mxu3 }
 0x1fd   :  { %v460_v35 = vadd.f32 %v459_v25, %v4765_v34 }
 0x1fe   :  { %v524_v39 = vmul.f32 1.442695, %v523_v23 }
 0x1ff   :  { %v502_v42 = vadd.f32 %v460_v35, %v253_v30  ;;  %v4769_v35 = vld [vmem:[#allocation22_spill] sm:$0xff] }
 0x200   :  { %2758 = vpow2.f32 %v524_v39 }
 0x201   :  { %v503_v44 = vsub.f32 0.0, %v502_v42 }
 0x203   :  { %v504_v47 = vmul.f32 1.442695, %v503_v44 }
 0x205   :  { %2760 = vpow2.f32 %v504_v47 }
 0x206   :  { %v2759_v52 = vpop.eup %2758 }
 0x207   :  { %v526_v57 = vadd.f32 1.0, %v2759_v52 }
 0x209   :  { %2762 = vrcp.f32 %v526_v57  ;;  %v538_v24 = vand.u32 2147483648, %v526_v57  ;;  %vm532_vm13 = vweird.f32 %v526_v57  ;;  %v536_v37 = vand.u32 2147483647, %v526_v57 }
 0x20b   :  { %v2761_v4 = vpop.eup %2760  ;;  %v539_v58 = vor.u32 1.1754944e-38, %v538_v24  ;;  %vm537_vm15 = vcmp.eq.f32.partialorder %v536_v37, 8.507059e+37  ;;  %v4770_v37 = vld [vmem:[#allocation23_spill] sm:$0xff] }
 0x20c   :  { %v506_v63 = vadd.f32 1.0, %v2761_v4 }
 0x20e   :  { %2764 = vrcp.f32 %v506_v63  ;;  %v518_v1 = vand.u32 2147483648, %v506_v63  ;;  %v516_v6 = vand.u32 2147483647, %v506_v63  ;;  %vm512_vm9 = vweird.f32 %v506_v63 }
 0x20f   :  { %v2763_v16 = vpop.eup %2762 }
 0x210   :  { %v528_v22 = vmul.f32 %v2763_v16, %v526_v57  ;;  %v519_v51 = vor.u32 1.1754944e-38, %v518_v1  ;;  %vm517_vm11 = vcmp.eq.f32.partialorder %v516_v6, 8.507059e+37  ;;  %vm533_vm12 = vweird.f32 %v2763_v16 }
 0x211   :  { %vm534_vm14 = vmor %vm532_vm13, %vm533_vm12 }
 0x212   :  { %v529_v2 = vsub.f32 1.0, %v528_v22 }
 0x214   :  { %v2765_v14 = vpop.eup %2764  ;;  %v530_v53 = vmul.f32 %v2763_v16, %v529_v2 }
 0x215   :  { %v508_v17 = vmul.f32 %v2765_v14, %v506_v63  ;;  %vm513_vm8 = vweird.f32 %v2765_v14 }
 0x216   :  { %vm514_vm10 = vmor %vm512_vm9, %vm513_vm8  ;;  %v531_v15 = vadd.f32 %v2763_v16, %v530_v53 }
 0x217   :  { %v509_v21 = vsub.f32 1.0, %v508_v17 }
 0x218   :  { %v535_v50 = vsel %vm534_vm14, %v2763_v16, %v531_v15 }
 0x219   :  { %v510_v10 = vmul.f32 %v2765_v14, %v509_v21  ;;  %v540_v62 = vsel %vm537_vm15, %v539_v58, %v535_v50 }
 0x21a   :  { %v545_v3 = vsub.f32 1.0, %v540_v62  ;;  %v547_v25 = vmul.f32 %v540_v62, %v3462_v8 }
 0x21b   :  { %v511_v18 = vadd.f32 %v2765_v14, %v510_v10 }
 0x21d   :  { %v515_v9 = vsel %vm514_vm10, %v2765_v14, %v511_v18 }
 0x21e   :  { %v520_v5 = vsel %vm517_vm11, %v519_v51, %v515_v9 }
 0x21f   :  { %v542_v33 = vmul.f32 %v520_v5, %v500_v11 }
 0x221   :  { %v543_v45 = vadd.f32 %v542_v33, %v317_v20 }
 0x223   :  { %2766 = vtanh.f32 %v543_v45 }
 0x229   :  { %v2767_v7 = vpop.eup %2766 }
 0x22a   :  { %v546_v23 = vmul.f32 %v2767_v7, %v545_v3 }
 0x22c   :  { %v3527_v26 = vadd.f32 %v547_v25, %v546_v23 }
 0x22e   :  { %872 = vadd.xlane.f32.xlu0 %v3527_v26  ;;  %565 = vmatmul.f32.vlgmr.msra.gmra.mxu2 %v3527_v26 }
 0x22f   :  { %585 = vmatmul.f32.vlgmr.msra.gmra.mxu3 %v3527_v26  ;;  %605 = vmatmul.f32.vlgmr.msrb.gmra.mxu0 %v3527_v26 }
 0x230   :  { %803 = vmatpush.msra.mxu2 %v3196_v29  ;;  %v2999_v29 = vmov 128.0  }
 0x231   :  { %2768 = vrcp.f32 %v2999_v29 }
 0x232   :  { %804 = vmatpush.msra.mxu2 %v3203_v31 }
 0x234   :  { %805 = vmatpush.msra.mxu2 %v3209_v32 }
 0x236   :  { %806 = vmatpush.msra.mxu2 %v3218_v36 }
 0x237   :  { %v2769_v31 = vpop.eup %2768 }
 0x238   :  { %807 = vmatpush.msra.mxu2 %v3225_v38  ;;  %v881_v32 = vmul.f32 128.0, %v2769_v31  ;;  %vm885_vm0 = vweird.f32 %v2769_v31 }
 0x23a   :  { %808 = vmatpush.msra.mxu2 %v3229_v40  ;;  %v882_v36 = vsub.f32 1.0, %v881_v32  ;;  %v3549_v40 = vpop.xlane.xlu0 %870 }
 0x23c   :  { %809 = vmatpush.msra.mxu2 %v3241_v43  ;;  %v883_v38 = vmul.f32 %v2769_v31, %v882_v36  ;;  %v4771_v36 = vld [vmem:[#allocation24_spill] sm:$0xff] }
 0x23e   :  { %810 = vmatpush.msra.mxu2 %v3247_v46  ;;  %v884_v43 = vadd.f32 %v2769_v31, %v883_v38 }
 0x240   :  { %811 = vmatpush.msra.mxu2 %v3256_v48  ;;  %v3551_v46 = vsel %vm885_vm0, %v2769_v31, %v884_v43 }
 0x241   :  { %4767 = vst [vmem:[#allocation8_spill] sm:$0xff] %v3551_v46 }
 0x242   :  { %812 = vmatpush.msra.mxu2 %v3258_v49 }
 0x244   :  { %813 = vmatpush.msra.mxu2 %v3274_v55 }
 0x246   :  { %814 = vmatpush.msra.mxu2 %v3282_v59 }
 0x248   :  { %815 = vmatpush.msra.mxu2 %v3289_v61 }
 0x24a   :  { %816 = vmatpush.msra.mxu2 %v3294_v0 }
 0x24c   :  { %817 = vmatpush.msra.mxu2 %v4756_v28 }
 0x24e   :  { %818 = vmatpush.msra.mxu2 %v4759_v41 }
 0x2a1   :  { %v873_v48 = vpop.xlane.xlu0 %872 }
 0x2a2   :  { %v888_v49 = vmul.f32 %v3551_v46, %v873_v48 }
 0x2a4   :  { %v3555_v55 = vsub.f32 %v3527_v26, %v888_v49 }
 0x2a6   :  { %v898_v59 = vmul.f32 %v3555_v55, %v3555_v55 }
 0x2a8   :  { %904 = vadd.xlane.f32.xlu0 %v898_v59  ;;  %v4772_v59 = vld [vmem:[#allocation25_spill] sm:$0xff] }
 0x2ac   :  { %v606_v12 = vpop.f32.mrf.mxu0 }
 0x2ad   :  { %v607_v9 = vadd.f32 %v606_v12, %v3458_v60 }
 0x2b1   :  { %v566_v61 = vpop.f32.mrf.mxu2 }
 0x2b2   :  { %v567_v0 = vadd.f32 %v566_v61, %v4765_v34  ;;  %v586_v28 = vpop.f32.mrf.mxu3 }
 0x2b3   :  { %v587_v41 = vadd.f32 %v586_v28, %v3453_v56 }
 0x2b4   :  { %v609_v30 = vadd.f32 %v567_v0, %v4768_v27 }
 0x2b5   :  { %v629_v39 = vadd.f32 %v587_v41, %v4769_v35 }
 0x2b6   :  { %v610_v42 = vsub.f32 0.0, %v609_v30 }
 0x2b7   :  { %v630_v44 = vsub.f32 0.0, %v629_v39 }
 0x2b8   :  { %v611_v47 = vmul.f32 1.442695, %v610_v42 }
 0x2b9   :  { %v631_v52 = vmul.f32 1.442695, %v630_v44 }
 0x2ba   :  { %2770 = vpow2.f32 %v611_v47 }
 0x2bb   :  { %2772 = vpow2.f32 %v631_v52 }
 0x2c0   :  { %v2771_v57 = vpop.eup %2770 }
 0x2c1   :  { %v2773_v4 = vpop.eup %2772  ;;  %v613_v63 = vadd.f32 1.0, %v2771_v57 }
 0x2c2   :  { %v633_v16 = vadd.f32 1.0, %v2773_v4 }
 0x2c3   :  { %2774 = vrcp.f32 %v613_v63  ;;  %v625_v1 = vand.u32 2147483648, %v613_v63  ;;  %v623_v53 = vand.u32 2147483647, %v613_v63  ;;  %vm619_vm2 = vweird.f32 %v613_v63 }
 0x2c4   :  { %2776 = vrcp.f32 %v633_v16  ;;  %v645_v24 = vand.u32 2147483648, %v633_v16  ;;  %vm639_vm6 = vweird.f32 %v633_v16  ;;  %v643_v33 = vand.u32 2147483647, %v633_v16 }
 0x2c5   :  { %v626_v11 = vor.u32 1.1754944e-38, %v625_v1  ;;  %vm624_vm4 = vcmp.eq.f32.partialorder %v623_v53, 8.507059e+37 }
 0x2c6   :  { %v646_v58 = vor.u32 1.1754944e-38, %v645_v24  ;;  %vm644_vm8 = vcmp.eq.f32.partialorder %v643_v33, 8.507059e+37 }
 0x2c9   :  { %v2775_v22 = vpop.eup %2774 }
 0x2ca   :  { %v2777_v14 = vpop.eup %2776  ;;  %v615_v17 = vmul.f32 %v2775_v22, %v613_v63  ;;  %vm620_vm1 = vweird.f32 %v2775_v22 }
 0x2cb   :  { %v635_v2 = vmul.f32 %v2777_v14, %v633_v16  ;;  %vm621_vm3 = vmor %vm619_vm2, %vm620_vm1  ;;  %vm640_vm5 = vweird.f32 %v2777_v14 }
 0x2cc   :  { %v616_v21 = vsub.f32 1.0, %v615_v17  ;;  %vm641_vm7 = vmor %vm639_vm6, %vm640_vm5 }
 0x2cd   :  { %v636_v10 = vsub.f32 1.0, %v635_v2 }
 0x2ce   :  { %v617_v6 = vmul.f32 %v2775_v22, %v616_v21 }
 0x2cf   :  { %v637_v18 = vmul.f32 %v2777_v14, %v636_v10 }
 0x2d0   :  { %v618_v51 = vadd.f32 %v2775_v22, %v617_v6 }
 0x2d1   :  { %v638_v13 = vadd.f32 %v2777_v14, %v637_v18  ;;  %v4773_v18 = vld [vmem:[#allocation26_spill] sm:$0xff] }
 0x2d2   :  { %v622_v15 = vsel %vm621_vm3, %v2775_v22, %v618_v51 }
 0x2d3   :  { %v627_v5 = vsel %vm624_vm4, %v626_v11, %v622_v15  ;;  %v642_v50 = vsel %vm641_vm7, %v2777_v14, %v638_v13 }
 0x2d4   :  { %v649_v20 = vmul.f32 %v627_v5, %v607_v9  ;;  %v647_v62 = vsel %vm644_vm8, %v646_v58, %v642_v50 }
 0x2d5   :  { %v652_v3 = vsub.f32 1.0, %v647_v62  ;;  %v654_v25 = vmul.f32 %v647_v62, %v3527_v26 }
 0x2d6   :  { %v650_v45 = vadd.f32 %v649_v20, %v4770_v37 }
 0x2d8   :  { %2778 = vtanh.f32 %v650_v45 }
 0x2de   :  { %v2779_v7 = vpop.eup %2778 }
 0x2df   :  { %v653_v23 = vmul.f32 %v2779_v7, %v652_v3 }
 0x2e1   :  { %v3566_v29 = vadd.f32 %v654_v25, %v653_v23 }
 0x2e3   :  { %874 = vadd.xlane.f32.xlu1 %v3566_v29  ;;  %672 = vmatmul.f32.vlgmr.msrb.gmra.mxu1 %v3566_v29 }
 0x2e4   :  { %692 = vmatmul.f32.vlgmr.msrb.gmra.mxu2 %v3566_v29  ;;  %712 = vmatmul.f32.vlgmr.msrb.gmra.mxu3 %v3566_v29 }
 0x356   :  { %v875_v24 = vpop.xlane.xlu1 %874 }
 0x357   :  { %v889_v45 = vmul.f32 %v3551_v46, %v875_v24  ;;  %v1047_v24 = vld [vmem:[#allocation2 + $0x2f0] sm:$0xff] }
 0x358   :  { %1141 = vmatpush.msrb.mxu0 %v1047_v24 }
 0x359   :  { %v3587_v58 = vsub.f32 %v3566_v29, %v889_v45  ;;  %v1044_v45 = vld [vmem:[#allocation2 + $0x2d8] sm:$0xff] }
 0x35a   :  { %1142 = vmatpush.msrb.mxu0 %v1044_v45  ;;  %v1009_v45 = vld [vmem:[#allocation2 + $0x1c0] sm:$0xff] }
 0x35b   :  { %v899_v62 = vmul.f32 %v3587_v58, %v3587_v58 }
 0x360   :  { %v673_v31 = vpop.f32.mrf.mxu1 }
 0x361   :  { %v674_v32 = vadd.f32 %v673_v31, %v4765_v34  ;;  %v4774_v31 = vld [vmem:[#allocation27_spill] sm:$0xff] }
 0x363   :  { %v716_v38 = vadd.f32 %v674_v32, %v4771_v36  ;;  %v4775_v36 = vld [vmem:[#allocation28_spill] sm:$0xff] }
 0x365   :  { %v717_v43 = vsub.f32 0.0, %v716_v38 }
 0x367   :  { %v718_v48 = vmul.f32 1.442695, %v717_v43  ;;  %v693_v49 = vpop.f32.mrf.mxu2  ;;  %v713_v4 = vpop.f32.mrf.mxu3 }
 0x368   :  { %v694_v26 = vadd.f32 %v693_v49, %v3453_v56  ;;  %v714_v17 = vadd.f32 %v713_v4, %v3458_v60 }
 0x369   :  { %2780 = vpow2.f32 %v718_v48 }
 0x36a   :  { %v736_v61 = vadd.f32 %v694_v26, %v4772_v59 }
 0x36c   :  { %v737_v0 = vsub.f32 0.0, %v736_v61 }
 0x36e   :  { %v738_v28 = vmul.f32 1.442695, %v737_v0 }
 0x36f   :  { %v2781_v41 = vpop.eup %2780 }
 0x370   :  { %v720_v27 = vadd.f32 1.0, %v2781_v41  ;;  %2782 = vpow2.f32 %v738_v28 }
 0x372   :  { %2784 = vrcp.f32 %v720_v27  ;;  %v732_v47 = vand.u32 2147483648, %v720_v27  ;;  %v730_v57 = vand.u32 2147483647, %v720_v27  ;;  %vm726_vm10 = vweird.f32 %v720_v27 }
 0x374   :  { %v733_v14 = vor.u32 1.1754944e-38, %v732_v47  ;;  %vm731_vm12 = vcmp.eq.f32.partialorder %v730_v57, 8.507059e+37 }
 0x376   :  { %v2783_v30 = vpop.eup %2782 }
 0x377   :  { %v740_v35 = vadd.f32 1.0, %v2783_v30 }
 0x378   :  { %v2785_v39 = vpop.eup %2784 }
 0x379   :  { %2786 = vrcp.f32 %v740_v35  ;;  %v722_v42 = vmul.f32 %v2785_v39, %v720_v27  ;;  %vm727_vm9 = vweird.f32 %v2785_v39  ;;  %v752_v10 = vand.u32 2147483648, %v740_v35 }
 0x37a   :  { %vm728_vm11 = vmor %vm726_vm10, %vm727_vm9  ;;  %v750_v12 = vand.u32 2147483647, %v740_v35  ;;  %vm746_vm14 = vweird.f32 %v740_v35 }
 0x37b   :  { %v723_v44 = vsub.f32 1.0, %v722_v42  ;;  %v753_v9 = vor.u32 1.1754944e-38, %v752_v10 }
 0x37c   :  { %vm751_vm0 = vcmp.eq.f32.partialorder %v750_v12, 8.507059e+37 }
 0x37d   :  { %v724_v52 = vmul.f32 %v2785_v39, %v723_v44 }
 0x37f   :  { %v2787_v63 = vpop.eup %2786  ;;  %v725_v16 = vadd.f32 %v2785_v39, %v724_v52 }
 0x380   :  { %v742_v22 = vmul.f32 %v2787_v63, %v740_v35  ;;  %vm747_vm13 = vweird.f32 %v2787_v63 }
 0x381   :  { %v729_v2 = vsel %vm728_vm11, %v2785_v39, %v725_v16  ;;  %vm748_vm15 = vmor %vm746_vm14, %vm747_vm13 }
 0x382   :  { %v743_v21 = vsub.f32 1.0, %v742_v22  ;;  %v734_v1 = vsel %vm731_vm12, %v733_v14, %v729_v2  ;;  %v326_v14 = vadd.f32 %v3516_v54, %v3435_v19 }
 0x383   :  { %v756_v6 = vmul.f32 %v734_v1, %v714_v17 }
 0x384   :  { %v744_v53 = vmul.f32 %v2787_v63, %v743_v21 }
 0x385   :  { %v757_v51 = vadd.f32 %v756_v6, %v4773_v18 }
 0x386   :  { %v745_v11 = vadd.f32 %v2787_v63, %v744_v53 }
 0x387   :  { %2788 = vtanh.f32 %v757_v51 }
 0x388   :  { %v749_v15 = vsel %vm748_vm15, %v2787_v63, %v745_v11  ;;  %v887_v11 = vmul.f32 %v3551_v46, %v3549_v40 }
 0x389   :  { %v754_v5 = vsel %vm751_vm0, %v753_v9, %v749_v15 }
 0x38a   :  { %v759_v13 = vsub.f32 1.0, %v754_v5  ;;  %v761_v37 = vmul.f32 %v754_v5, %v3566_v29  ;;  %v3605_v54 = vsub.f32 %v3462_v8, %v887_v11  ;;  %v3615_v8 = vld [vmem:[#allocation4 + $0x2e8] sm:$0xff] }
 0x38b   :  { %1212 = vmatpush.msrb.mxu2 %v3615_v8 }
 0x38c   :  { %v897_v5 = vmul.f32 %v3605_v54, %v3605_v54 }
 0x38d   :  { %v2789_v20 = vpop.eup %2788 }
 0x38e   :  { %v760_v33 = vmul.f32 %v2789_v20, %v759_v13  ;;  %v1046_v20 = vld [vmem:[#allocation2 + $0x2e8] sm:$0xff] }
 0x38f   :  { %1109 = vmatpush.msra.mxu3 %v1046_v20  ;;  %v3657_v20 = vld [vmem:[#allocation4 + $0x1c8] sm:$0xff] }
 0x390   :  { %v3580_v50 = vadd.f32 %v761_v37, %v760_v33  ;;  %v1048_v33 = vld [vmem:[#allocation2 + $0x2f8] sm:$0xff]  ;;  %v1043_v37 = vld [vmem:[#allocation2 + $0x2d0] sm:$0xff] }
 0x391   :  { %1173 = vmatpush.msrb.mxu1 %v1048_v33  ;;  %1110 = vmatpush.msra.mxu3 %v1043_v37  ;;  %v1007_v33 = vld [vmem:[#allocation2 + $0x1b0] sm:$0xff]  ;;  %v1008_v37 = vld [vmem:[#allocation2 + $0x1b8] sm:$0xff] }
 0x392   :  { %876 = vadd.xlane.f32.xlu1 %v3580_v50  ;;  %779 = vmatmul.f32.vlgmr.msra.gmra.mxu0 %v3580_v50 }
 0x393   :  { %799 = vmatmul.f32.vlgmr.msra.gmra.mxu1 %v3580_v50  ;;  %819 = vmatmul.f32.vlgmr.msra.gmra.mxu2 %v3580_v50 }
 0x39a   :  { %906 = vadd.xlane.f32.xlu1 %v899_v62  ;;  %v1045_v62 = vld [vmem:[#allocation2 + $0x2e0] sm:$0xff] }
 0x39b   :  { %1174 = vmatpush.msrb.mxu1 %v1045_v62  ;;  %v3663_v62 = vld [vmem:[#allocation4 + $0x1b0] sm:$0xff] }
 0x405   :  { %v877_v9 = vpop.xlane.xlu1 %876 }
 0x406   :  { %v890_v15 = vmul.f32 %v3551_v46, %v877_v9 }
 0x408   :  { %v3611_v13 = vsub.f32 %v3580_v50, %v890_v15  ;;  %v1010_v15 = vld [vmem:[#allocation2 + $0x1c8] sm:$0xff] }
 0x40a   :  { %v900_v40 = vmul.f32 %v3611_v13, %v3611_v13 }
 0x40f   :  { %v780_v3 = vpop.f32.mrf.mxu0 }
 0x410   :  { %v781_v7 = vadd.f32 %v780_v3, %v4765_v34  ;;  %v800_v23 = vpop.f32.mrf.mxu1  ;;  %v1040_v3 = vld [vmem:[#allocation2 + $0x2b8] sm:$0xff] }
 0x411   :  { %v801_v25 = vadd.f32 %v800_v23, %v3453_v56  ;;  %v1042_v23 = vld [vmem:[#allocation2 + $0x2c8] sm:$0xff]  ;;  %1111 = vmatpush.msra.mxu3 %v1040_v3 }
 0x412   :  { %v823_v32 = vadd.f32 %v781_v7, %v4774_v31  ;;  %v1041_v7 = vld [vmem:[#allocation2 + $0x2c0] sm:$0xff]  ;;  %1175 = vmatpush.msrb.mxu1 %v1042_v23 }
 0x413   :  { %v843_v38 = vadd.f32 %v801_v25, %v4775_v36  ;;  %1143 = vmatpush.msrb.mxu0 %v1041_v7  ;;  %v3621_v25 = vld [vmem:[#allocation4 + $0x2b8] sm:$0xff]  ;;  %v1037_v31 = vld [vmem:[#allocation2 + $0x2a0] sm:$0xff]  ;;  %v1039_v36 = vld [vmem:[#allocation2 + $0x2b0] sm:$0xff] }
 0x414   :  { %v824_v43 = vsub.f32 0.0, %v823_v32  ;;  %v1038_v32 = vld [vmem:[#allocation2 + $0x2a8] sm:$0xff]  ;;  %1112 = vmatpush.msra.mxu3 %v1037_v31  ;;  %1176 = vmatpush.msrb.mxu1 %v1039_v36  ;;  %v1005_v23 = vld [vmem:[#allocation2 + $0x1a0] sm:$0xff] }
 0x415   :  { %v844_v48 = vsub.f32 0.0, %v843_v38  ;;  %1144 = vmatpush.msrb.mxu0 %v1038_v32  ;;  %v3624_v38 = vld [vmem:[#allocation4 + $0x2a0] sm:$0xff]  ;;  %v1006_v31 = vld [vmem:[#allocation2 + $0x1a8] sm:$0xff]  ;;  %v3670_v32 = vld [vmem:[#allocation4 + $0x198] sm:$0xff] }
 0x416   :  { %v825_v49 = vmul.f32 1.442695, %v824_v43  ;;  %v820_v44 = vpop.f32.mrf.mxu2  ;;  %v1034_v43 = vld [vmem:[#allocation2 + $0x288] sm:$0xff]  ;;  %4776 = vst [vmem:[#allocation11_spill] sm:$0xff] %v3670_v32  ;;  %v1001_v36 = vld [vmem:[#allocation2 + $0x180] sm:$0xff] }
 0x417   :  { %v845_v26 = vmul.f32 1.442695, %v844_v48  ;;  %v821_v4 = vadd.f32 %v820_v44, %v3458_v60  ;;  %v1035_v48 = vld [vmem:[#allocation2 + $0x290] sm:$0xff]  ;;  %1113 = vmatpush.msra.mxu3 %v1034_v43  ;;  %v1002_v43 = vld [vmem:[#allocation2 + $0x188] sm:$0xff] }
 0x418   :  { %2790 = vpow2.f32 %v825_v49  ;;  %v1036_v49 = vld [vmem:[#allocation2 + $0x298] sm:$0xff]  ;;  %1145 = vmatpush.msrb.mxu0 %v1035_v48 }
 0x419   :  { %2792 = vpow2.f32 %v845_v26  ;;  %v3627_v26 = vld [vmem:[#allocation4 + $0x288] sm:$0xff]  ;;  %1177 = vmatpush.msrb.mxu1 %v1036_v49  ;;  %v1003_v49 = vld [vmem:[#allocation2 + $0x190] sm:$0xff] }
 0x41e   :  { %v2791_v29 = vpop.eup %2790 }
 0x41f   :  { %v2793_v59 = vpop.eup %2792  ;;  %v827_v61 = vadd.f32 1.0, %v2791_v29  ;;  %v1031_v29 = vld [vmem:[#allocation2 + $0x270] sm:$0xff] }
 0x420   :  { %v847_v0 = vadd.f32 1.0, %v2793_v59  ;;  %v1032_v59 = vld [vmem:[#allocation2 + $0x278] sm:$0xff]  ;;  %1114 = vmatpush.msra.mxu3 %v1031_v29  ;;  %v3674_v29 = vld [vmem:[#allocation4 + $0x180] sm:$0xff] }
 0x421   :  { %2794 = vrcp.f32 %v827_v61  ;;  %v839_v30 = vand.u32 2147483648, %v827_v61  ;;  %v837_v42 = vand.u32 2147483647, %v827_v61  ;;  %vm833_vm2 = vweird.f32 %v827_v61  ;;  %1146 = vmatpush.msrb.mxu0 %v1032_v59  ;;  %4777 = vst [vmem:[#allocation14_spill] sm:$0xff] %v3674_v29 }
 0x422   :  { %2796 = vrcp.f32 %v847_v0  ;;  %v859_v2 = vand.u32 2147483648, %v847_v0  ;;  %vm853_vm6 = vweird.f32 %v847_v0  ;;  %v857_v21 = vand.u32 2147483647, %v847_v0 }
 0x423   :  { %v840_v57 = vor.u32 1.1754944e-38, %v839_v30  ;;  %vm838_vm4 = vcmp.eq.f32.partialorder %v837_v42, 8.507059e+37  ;;  %v1025_v30 = vld [vmem:[#allocation2 + $0x240] sm:$0xff] }
 0x424   :  { %v860_v6 = vor.u32 1.1754944e-38, %v859_v2  ;;  %vm858_vm8 = vcmp.eq.f32.partialorder %v857_v21, 8.507059e+37  ;;  %v3636_v42 = vld [vmem:[#allocation4 + $0x240] sm:$0xff]  ;;  %v1016_v2 = vld [vmem:[#allocation2 + $0x1f8] sm:$0xff] }
 0x425   :  { %v1017_v21 = vld [vmem:[#allocation2 + $0x200] sm:$0xff] }
 0x427   :  { %v2795_v34 = vpop.eup %2794 }
 0x428   :  { %v2797_v28 = vpop.eup %2796  ;;  %v829_v41 = vmul.f32 %v2795_v34, %v827_v61  ;;  %vm834_vm1 = vweird.f32 %v2795_v34  ;;  %v1033_v61 = vld [vmem:[#allocation2 + $0x280] sm:$0xff] }
 0x429   :  { %v849_v56 = vmul.f32 %v2797_v28, %v847_v0  ;;  %vm835_vm3 = vmor %vm833_vm2, %vm834_vm1  ;;  %vm854_vm5 = vweird.f32 %v2797_v28  ;;  %v3630_v0 = vld [vmem:[#allocation4 + $0x270] sm:$0xff]  ;;  %1178 = vmatpush.msrb.mxu1 %v1033_v61 }
 0x42a   :  { %v830_v27 = vsub.f32 1.0, %v829_v41  ;;  %vm855_vm7 = vmor %vm853_vm6, %vm854_vm5  ;;  %v1030_v41 = vld [vmem:[#allocation2 + $0x268] sm:$0xff] }
 0x42b   :  { %v850_v35 = vsub.f32 1.0, %v849_v56  ;;  %v905_v56 = vpop.xlane.xlu0 %904  ;;  %1179 = vmatpush.msrb.mxu1 %v1030_v41 }
 0x42c   :  { %v831_v39 = vmul.f32 %v2795_v34, %v830_v27  ;;  %v3633_v27 = vld [vmem:[#allocation4 + $0x258] sm:$0xff]  ;;  %v913_v44 = vmul.f32 %v905_v56, %v3551_v46  ;;  %v4778_v56 = vmov 0.0  }
 0x42d   :  { %v851_v47 = vmul.f32 %v2797_v28, %v850_v35  ;;  %v1026_v35 = vld [vmem:[#allocation2 + $0x248] sm:$0xff] }
 0x42e   :  { %v832_v52 = vadd.f32 %v2795_v34, %v831_v39  ;;  %v1027_v39 = vld [vmem:[#allocation2 + $0x250] sm:$0xff] }
 0x42f   :  { %v852_v22 = vadd.f32 %v2797_v28, %v851_v47  ;;  %1180 = vmatpush.msrb.mxu1 %v1027_v39  ;;  %v1022_v47 = vld [vmem:[#allocation2 + $0x228] sm:$0xff] }
 0x430   :  { %v836_v63 = vsel %vm835_vm3, %v2795_v34, %v832_v52  ;;  %v1028_v34 = vld [vmem:[#allocation2 + $0x258] sm:$0xff]  ;;  %v1023_v52 = vld [vmem:[#allocation2 + $0x230] sm:$0xff] }
 0x431   :  { %v841_v16 = vsel %vm838_vm4, %v840_v57, %v836_v63  ;;  %v856_v10 = vsel %vm855_vm7, %v2797_v28, %v852_v22  ;;  %v1029_v28 = vld [vmem:[#allocation2 + $0x260] sm:$0xff]  ;;  %1115 = vmatpush.msra.mxu3 %v1028_v34  ;;  %v1024_v57 = vld [vmem:[#allocation2 + $0x238] sm:$0xff]  ;;  %v1019_v63 = vld [vmem:[#allocation2 + $0x210] sm:$0xff] }
 0x432   :  { %v863_v17 = vmul.f32 %v841_v16, %v821_v4  ;;  %v861_v53 = vsel %vm858_vm8, %v860_v6, %v856_v10  ;;  %1147 = vmatpush.msrb.mxu0 %v1029_v28  ;;  %v3640_v4 = vld [vmem:[#allocation4 + $0x228] sm:$0xff]  ;;  %1181 = vmatpush.msrb.mxu1 %v1024_v57  ;;  %v1020_v16 = vld [vmem:[#allocation2 + $0x218] sm:$0xff]  ;;  %v1021_v22 = vld [vmem:[#allocation2 + $0x220] sm:$0xff]  ;;  %v907_v10 = vpop.xlane.xlu1 %906 }
 0x433   :  { %v866_v60 = vsub.f32 1.0, %v861_v53  ;;  %v868_v51 = vmul.f32 %v861_v53, %v3580_v50  ;;  %v3618_v50 = vld [vmem:[#allocation4 + $0x2d0] sm:$0xff]  ;;  %1116 = vmatpush.msra.mxu3 %v1025_v30  ;;  %v3648_v6 = vld [vmem:[#allocation4 + $0x1f8] sm:$0xff]  ;;  %v1013_v53 = vld [vmem:[#allocation2 + $0x1e0] sm:$0xff]  ;;  %v914_v11 = vmul.f32 %v907_v10, %v3551_v46 }
 0x434   :  { %v864_v1 = vadd.f32 %v863_v17, %v326_v14  ;;  %1213 = vmatpush.msrb.mxu2 %v3618_v50  ;;  %1148 = vmatpush.msrb.mxu0 %v1026_v35  ;;  %v3643_v14 = vld [vmem:[#allocation4 + $0x210] sm:$0xff]  ;;  %v3645_v17 = vadd.f32 1e-05, %v913_v44  ;;  %v3679_v34 = vld [vmem:[#allocation4 + $0x2f8] sm:$0xff]  ;;  %v3686_v30 = vld [vmem:[#allocation4 + $0x2e0] sm:$0xff] }
 0x435   :  { %1117 = vmatpush.msra.mxu3 %v1022_v47  ;;  %1182 = vmatpush.msrb.mxu1 %v1021_v22  ;;  %v3665_v3 = vadd.f32 1e-05, %v914_v11  ;;  %v3690_v35 = vld [vmem:[#allocation4 + $0x2c8] sm:$0xff]  ;;  %v3697_v47 = vld [vmem:[#allocation4 + $0x2b0] sm:$0xff] }
 0x436   :  { %2798 = vtanh.f32 %v864_v1  ;;  %1214 = vmatpush.msrb.mxu2 %v3621_v25  ;;  %1149 = vmatpush.msrb.mxu0 %v1023_v52  ;;  %v1018_v1 = vld [vmem:[#allocation2 + $0x208] sm:$0xff]  ;;  %v3720_v11 = vld [vmem:[#allocation4 + $0x250] sm:$0xff]  ;;  %vm938_vm11 = vweird.f32 %v3645_v17 }
 0x437   :  { %1118 = vmatpush.msra.mxu3 %v1019_v63  ;;  %1183 = vmatpush.msrb.mxu1 %v1018_v1  ;;  %2800 = vrsqrt.f32 %v3645_v17  ;;  %v3702_v63 = vld [vmem:[#allocation4 + $0x298] sm:$0xff]  ;;  %v3710_v1 = vld [vmem:[#allocation4 + $0x280] sm:$0xff]  ;;  %vm948_vm0 = vweird.f32 %v3665_v3 }
 0x438   :  { %1215 = vmatpush.msrb.mxu2 %v3624_v38  ;;  %1150 = vmatpush.msrb.mxu0 %v1020_v16  ;;  %2802 = vrsqrt.f32 %v3665_v3 }
 0x439   :  { %1119 = vmatpush.msra.mxu3 %v1016_v2 }
 0x43a   :  { %1216 = vmatpush.msrb.mxu2 %v3627_v26  ;;  %1151 = vmatpush.msrb.mxu0 %v1017_v21 }
 0x43b   :  { %1120 = vmatpush.msra.mxu3 %v1013_v53  ;;  %v3715_v53 = vld [vmem:[#allocation4 + $0x268] sm:$0xff] }
 0x43c   :  { %v2799_v12 = vpop.eup %2798  ;;  %1217 = vmatpush.msrb.mxu2 %v3630_v0 }
 0x43d   :  { %v867_v18 = vmul.f32 %v2799_v12, %v866_v60  ;;  %v1014_v60 = vld [vmem:[#allocation2 + $0x1e8] sm:$0xff]  ;;  %v1015_v12 = vld [vmem:[#allocation2 + $0x1f0] sm:$0xff]  ;;  %1121 = vmatpush.msra.mxu3 %v1010_v15  ;;  %v3672_v48 = vpop.eup %2800  ;;  %v3725_v15 = vld [vmem:[#allocation4 + $0x238] sm:$0xff] }
 0x43e   :  { %1218 = vmatpush.msrb.mxu2 %v3633_v27  ;;  %1152 = vmatpush.msrb.mxu0 %v1014_v60  ;;  %v933_v28 = vmul.f32 %v3672_v48, %v3645_v17  ;;  %v3695_v44 = vpop.eup %2802  ;;  %vm939_vm9 = vweird.f32 %v3672_v48 }
 0x43f   :  { %v3601_v19 = vadd.f32 %v868_v51, %v867_v18  ;;  %v3651_v51 = vld [vmem:[#allocation4 + $0x1e0] sm:$0xff]  ;;  %1184 = vmatpush.msrb.mxu1 %v1015_v12  ;;  %1122 = vmatpush.msra.mxu3 %v1007_v33  ;;  %v943_v22 = vmul.f32 %v3695_v44, %v3665_v3  ;;  %vm3735_vm12 = vmor %vm938_vm11, %vm939_vm9  ;;  %vm949_vm15 = vweird.f32 %v3695_v44 }
 0x440   :  { %1219 = vmatpush.msrb.mxu2 %v3636_v42  ;;  %v934_v39 = vmul.f32 %v3672_v48, %v933_v28  ;;  %v3757_v28 = vld [vmem:[#allocation4 + $0x1f0] sm:$0xff]  ;;  %vm950_vm1 = vmor %vm948_vm0, %vm949_vm15 }
 0x441   :  { %878 = vadd.xlane.f32.xlu2 %v3601_v19  ;;  %v944_v12 = vmul.f32 %v3695_v44, %v943_v22 }
 0x442   :  { %1220 = vmatpush.msrb.mxu2 %v3640_v4  ;;  %v935_v16 = vmul.f32 0.5, %v934_v39  ;;  %v3768_v39 = vld [vmem:[#allocation4 + $0x1d8] sm:$0xff] }
 0x444   :  { %1221 = vmatpush.msrb.mxu2 %v3643_v14  ;;  %v936_v60 = vsub.f32 1.5, %v935_v16 }
 0x446   :  { %1222 = vmatpush.msrb.mxu2 %v3648_v6 }
 0x448   :  { %1223 = vmatpush.msrb.mxu2 %v3651_v51 }
 0x449   :  { %902 = vadd.xlane.f32.xlu2 %v897_v5  ;;  %v1011_v5 = vld [vmem:[#allocation2 + $0x1d0] sm:$0xff] }
 0x44a   :  { %1153 = vmatpush.msrb.mxu0 %v1011_v5  ;;  %1224 = vmatpush.msrb.mxu2 %v3657_v20  ;;  %v937_v5 = vmul.f32 %v3672_v48, %v936_v60  ;;  %v3784_v60 = vld [vmem:[#allocation4 + $0x1a8] sm:$0xff] }
 0x44b   :  { %4781 = vst [vmem:[#allocation9_spill] sm:$0xff] %v3784_v60 }
 0x44c   :  { %1154 = vmatpush.msrb.mxu0 %v1008_v37  ;;  %1225 = vmatpush.msrb.mxu2 %v3663_v62  ;;  %v941_v17 = vsel %vm3735_vm12, %v3672_v48, %v937_v5 }
 0x44e   :  { %1155 = vmatpush.msrb.mxu0 %v1005_v23  ;;  %1226 = vmatpush.msrb.mxu2 %v3670_v32 }
 0x450   :  { %1156 = vmatpush.msrb.mxu0 %v1002_v43  ;;  %1227 = vmatpush.msrb.mxu2 %v3674_v29 }
 0x451   :  { %908 = vadd.xlane.f32.xlu2 %v900_v40  ;;  %v1012_v40 = vld [vmem:[#allocation2 + $0x1d8] sm:$0xff]  ;;  %1228 = vmatmul.f32.vlgmr.msrb.gmra.mxu2 %v4778_v56 }
 0x452   :  { %1185 = vmatpush.msrb.mxu1 %v1012_v40  ;;  %1319 = vmatpush.msra.mxu0 %v3615_v8  ;;  %v945_v40 = vmul.f32 0.5, %v944_v12 }
 0x453   :  { %1252 = vmatpush.msra.mxu2 %v3679_v34 }
 0x454   :  { %1186 = vmatpush.msrb.mxu1 %v1009_v45  ;;  %1320 = vmatpush.msra.mxu0 %v3618_v50  ;;  %v3733_v45 = vld [vmem:[#allocation4 + $0x220] sm:$0xff] }
 0x455   :  { %1253 = vmatpush.msra.mxu2 %v3686_v30 }
 0x456   :  { %1187 = vmatpush.msrb.mxu1 %v1006_v31  ;;  %1321 = vmatpush.msra.mxu0 %v3621_v25  ;;  %v3743_v31 = vld [vmem:[#allocation4 + $0x208] sm:$0xff] }
 0x457   :  { %1254 = vmatpush.msra.mxu2 %v3690_v35 }
 0x458   :  { %1188 = vmatpush.msrb.mxu1 %v1003_v49  ;;  %1322 = vmatpush.msra.mxu0 %v3624_v38 }
 0x459   :  { %1255 = vmatpush.msra.mxu2 %v3697_v47 }
 0x45a   :  { %1323 = vmatpush.msra.mxu0 %v3627_v26 }
 0x45b   :  { %1256 = vmatpush.msra.mxu2 %v3702_v63 }
 0x45c   :  { %1324 = vmatpush.msra.mxu0 %v3630_v0 }
 0x45d   :  { %1257 = vmatpush.msra.mxu2 %v3710_v1 }
 0x45e   :  { %1325 = vmatpush.msra.mxu0 %v3633_v27 }
 0x45f   :  { %1258 = vmatpush.msra.mxu2 %v3715_v53 }
 0x460   :  { %1326 = vmatpush.msra.mxu0 %v3636_v42 }
 0x461   :  { %1259 = vmatpush.msra.mxu2 %v3720_v11 }
 0x462   :  { %1327 = vmatpush.msra.mxu0 %v3640_v4 }
 0x463   :  { %1260 = vmatpush.msra.mxu2 %v3725_v15 }
 0x464   :  { %1328 = vmatpush.msra.mxu0 %v3643_v14 }
 0x465   :  { %1261 = vmatpush.msra.mxu2 %v3733_v45 }
 0x466   :  { %1329 = vmatpush.msra.mxu0 %v3648_v6 }
 0x467   :  { %1262 = vmatpush.msra.mxu2 %v3743_v31 }
 0x468   :  { %1330 = vmatpush.msra.mxu0 %v3651_v51 }
 0x469   :  { %1263 = vmatpush.msra.mxu2 %v3757_v28 }
 0x46a   :  { %1331 = vmatpush.msra.mxu0 %v3657_v20 }
 0x46b   :  { %1264 = vmatpush.msra.mxu2 %v3768_v39 }
 0x46c   :  { %1332 = vmatpush.msra.mxu0 %v3663_v62 }
 0x46e   :  { %1333 = vmatpush.msra.mxu0 %v3670_v32 }
 0x470   :  { %1334 = vmatpush.msra.mxu0 %v3674_v29 }
 0x4b4   :  { %v879_v18 = vpop.xlane.xlu2 %878 }
 0x4b5   :  { %v891_v9 = vmul.f32 %v3551_v46, %v879_v18 }
 0x4b7   :  { %v3660_v24 = vsub.f32 %v3601_v19, %v891_v9  ;;  %v1004_v19 = vld [vmem:[#allocation2 + $0x198] sm:$0xff] }
 0x4b8   :  { %1123 = vmatpush.msra.mxu3 %v1004_v19 }
 0x4b9   :  { %v901_v7 = vmul.f32 %v3660_v24, %v3660_v24 }
 0x4ba   :  { %1124 = vmatpush.msra.mxu3 %v1001_v36  ;;  %v946_v36 = vsub.f32 1.5, %v945_v40 }
 0x4bb   :  { %910 = vadd.xlane.f32.xlu0 %v901_v7 }
 0x4bc   :  { %v903_v59 = vpop.xlane.xlu2 %902 }
 0x4bd   :  { %v912_v61 = vmul.f32 %v903_v59, %v3551_v46 }
 0x4bf   :  { %v917_v41 = vadd.f32 1e-05, %v912_v61  ;;  %v3755_v61 = vld [vmem:[%s4692_s7] ss:$0 sm:$0xff] }
 0x4c1   :  { %2804 = vrsqrt.f32 %v917_v41  ;;  %vm928_vm13 = vweird.f32 %v917_v41 }
 0x4c4   :  { %v909_v52 = vpop.xlane.xlu2 %908 }
 0x4c5   :  { %v915_v57 = vmul.f32 %v909_v52, %v3551_v46  ;;  %v3770_v52 = vld [vmem:[#allocation4 + $0x2f0] sm:$0xff] }
 0x4c6   :  { %1232 = vmatpush.msrb.mxu3 %v3770_v52  ;;  %1339 = vmatpush.msra.mxu1 %v3770_v52 }
 0x4c7   :  { %v2805_v2 = vpop.eup %2804  ;;  %v3708_v21 = vadd.f32 1e-05, %v915_v57  ;;  %v947_v57 = vmul.f32 %v3695_v44, %v946_v36  ;;  %v3829_v36 = vld [vmem:[#allocation4 + $0x2c0] sm:$0xff] }
 0x4c8   :  { %v923_v10 = vmul.f32 %v2805_v2, %v917_v41  ;;  %vm929_vm10 = vweird.f32 %v2805_v2  ;;  %v3765_v41 = vld [vmem:[%s4693_s8] ss:$0 sm:$0xff] }
 0x4c9   :  { %2806 = vrsqrt.f32 %v3708_v21  ;;  %vm930_vm14 = vmor %vm928_vm13, %vm929_vm10  ;;  %v951_v12 = vsel %vm950_vm1, %v3695_v44, %v947_v57  ;;  %vm958_vm3 = vweird.f32 %v3708_v21  ;;  %v3861_v57 = vld [vmem:[#allocation4 + $0x230] sm:$0xff] }
 0x4ca   :  { %v924_v18 = vmul.f32 %v2805_v2, %v923_v10  ;;  %v974_v5 = vmul.f32 %v951_v12, %v3587_v58 }
 0x4cc   :  { %v925_v9 = vmul.f32 0.5, %v924_v18  ;;  %v983_v44 = vmul.f32 %v3755_v61, %v974_v5 }
 0x4ce   :  { %v926_v33 = vsub.f32 1.5, %v925_v9  ;;  %v3789_v9 = vld [vmem:[#allocation4 + $0x190] sm:$0xff]  ;;  %v992_v7 = vadd.f32 %v3765_v41, %v983_v44 }
 0x4cf   :  { %v3730_v37 = vpop.eup %2806  ;;  %4782 = vst [vmem:[#allocation12_spill] sm:$0xff] %v3789_v9 }
 0x4d0   :  { %v927_v19 = vmul.f32 %v2805_v2, %v926_v33  ;;  %v953_v23 = vmul.f32 %v3730_v37, %v3708_v21  ;;  %vm959_vm2 = vweird.f32 %v3730_v37 }
 0x4d1   :  { %vm960_vm4 = vmor %vm958_vm3, %vm959_vm2 }
 0x4d2   :  { %v931_v43 = vsel %vm930_vm14, %v2805_v2, %v927_v19  ;;  %v954_v49 = vmul.f32 %v3730_v37, %v953_v23  ;;  %v3777_v2 = vld [vmem:[#allocation4 + $0x1c0] sm:$0xff]  ;;  %v997_v19 = vmax.f32 %v992_v7, 0.0 }
 0x4d3   :  { %v972_v59 = vmul.f32 %v931_v43, %v3605_v54  ;;  %v973_v54 = vmul.f32 %v941_v17, %v3555_v55  ;;  %1265 = vmatpush.msra.mxu2 %v3777_v2  ;;  %v3825_v17 = vld [vmem:[#allocation4 + $0x2d8] sm:$0xff]  ;;  %v3835_v43 = vld [vmem:[#allocation4 + $0x2a8] sm:$0xff] }
 0x4d4   :  { %v955_v16 = vmul.f32 0.5, %v954_v49  ;;  %1233 = vmatpush.msrb.mxu3 %v3825_v17  ;;  %1340 = vmatpush.msra.mxu1 %v3825_v17  ;;  %v3841_v49 = vld [vmem:[#allocation4 + $0x290] sm:$0xff] }
 0x4d5   :  { %v981_v48 = vmul.f32 %v3755_v61, %v972_v59  ;;  %v982_v10 = vmul.f32 %v3755_v61, %v973_v54  ;;  %1266 = vmatpush.msra.mxu2 %v3784_v60  ;;  %v3847_v59 = vld [vmem:[#allocation4 + $0x278] sm:$0xff]  ;;  %v3858_v54 = vld [vmem:[#allocation4 + $0x248] sm:$0xff] }
 0x4d6   :  { %v956_v18 = vsub.f32 1.5, %v955_v16  ;;  %1234 = vmatpush.msrb.mxu3 %v3829_v36  ;;  %1341 = vmatpush.msra.mxu1 %v3829_v36  ;;  %v3867_v16 = vld [vmem:[#allocation4 + $0x218] sm:$0xff] }
 0x4d7   :  { %v990_v22 = vadd.f32 %v3765_v41, %v981_v48  ;;  %v991_v3 = vadd.f32 %v3765_v41, %v982_v10  ;;  %1267 = vmatpush.msra.mxu2 %v3789_v9  ;;  %v3853_v48 = vld [vmem:[#allocation4 + $0x260] sm:$0xff]  ;;  %v3885_v10 = vld [vmem:[#allocation4 + $0x1d0] sm:$0xff] }
 0x4d8   :  { %v957_v40 = vmul.f32 %v3730_v37, %v956_v18  ;;  %1268 = vmatmul.f32.vlgmr.msra.gmra.mxu2 %v4778_v56  ;;  %1235 = vmatpush.msrb.mxu3 %v3835_v43 }
 0x4d9   :  { %v995_v55 = vmax.f32 %v990_v22, 0.0  ;;  %1426 = vmatpush.msrb.mxu2 %v3615_v8  ;;  %v996_v58 = vmax.f32 %v991_v3, 0.0  ;;  %1342 = vmatpush.msra.mxu1 %v3835_v43  ;;  %v3873_v22 = vld [vmem:[#allocation4 + $0x200] sm:$0xff]  ;;  %v3892_v3 = vld [vmem:[#allocation4 + $0x1b8] sm:$0xff] }
 0x4da   :  { %v961_v33 = vsel %vm960_vm4, %v3730_v37, %v957_v40  ;;  %1236 = vmatpush.msrb.mxu3 %v3841_v49  ;;  %4783 = vst [vmem:[#allocation15_spill] sm:$0xff] %v3892_v3  ;;  %v3898_v40 = vld [vmem:[#allocation4 + $0x1a0] sm:$0xff] }
 0x4db   :  { %1125 = vmatmul.f32.vlgmr.msra.gmra.mxu3 %v995_v55  ;;  %1157 = vmatmul.f32.vlgmr.msrb.gmra.mxu0 %v995_v55  ;;  %v975_v21 = vmul.f32 %v961_v33, %v3611_v13  ;;  %4784 = vst [vmem:[#allocation10_spill] sm:$0xff] %v3898_v40 }
 0x4dc   :  { %1189 = vmatmul.f32.vlgmr.msrb.gmra.mxu1 %v995_v55  ;;  %1446 = vmatpush.msrb.mxu0 %v3770_v52  ;;  %v3879_v55 = vld [vmem:[#allocation4 + $0x1e8] sm:$0xff] }
 0x4dd   :  { %1427 = vmatpush.msrb.mxu2 %v3618_v50  ;;  %v984_v23 = vmul.f32 %v3755_v61, %v975_v21  ;;  %1343 = vmatpush.msra.mxu1 %v3841_v49 }
 0x4de   :  { %1447 = vmatpush.msrb.mxu0 %v3825_v17  ;;  %1237 = vmatpush.msrb.mxu3 %v3847_v59 }
 0x4df   :  { %1428 = vmatpush.msrb.mxu2 %v3621_v25  ;;  %v993_v37 = vadd.f32 %v3765_v41, %v984_v23  ;;  %1344 = vmatpush.msra.mxu1 %v3847_v59 }
 0x4e0   :  { %1448 = vmatpush.msrb.mxu0 %v3829_v36  ;;  %1238 = vmatpush.msrb.mxu3 %v3853_v48 }
 0x4e1   :  { %1429 = vmatpush.msrb.mxu2 %v3624_v38  ;;  %v998_v13 = vmax.f32 %v993_v37, 0.0  ;;  %1345 = vmatpush.msra.mxu1 %v3853_v48 }
 0x4e2   :  { %1449 = vmatpush.msrb.mxu0 %v3835_v43  ;;  %1239 = vmatpush.msrb.mxu3 %v3858_v54 }
 0x4e3   :  { %1128 = vmatmul.f32.gmra.mxu3 %v996_v58  ;;  %1160 = vmatmul.f32.gmra.mxu0 %v996_v58 }
 0x4e4   :  { %1192 = vmatmul.f32.gmra.mxu1 %v996_v58  ;;  %1430 = vmatpush.msrb.mxu2 %v3627_v26  ;;  %v3904_v58 = vld [vmem:[#allocation4 + $0x188] sm:$0xff] }
 0x4e5   :  { %1450 = vmatpush.msrb.mxu0 %v3841_v49  ;;  %1346 = vmatpush.msra.mxu1 %v3858_v54  ;;  %4785 = vst [vmem:[#allocation13_spill] sm:$0xff] %v3904_v58 }
 0x4e6   :  { %1431 = vmatpush.msrb.mxu2 %v3630_v0  ;;  %1240 = vmatpush.msrb.mxu3 %v3861_v57 }
 0x4e7   :  { %1451 = vmatpush.msrb.mxu0 %v3847_v59  ;;  %1347 = vmatpush.msra.mxu1 %v3861_v57 }
 0x4e8   :  { %1432 = vmatpush.msrb.mxu2 %v3633_v27  ;;  %1241 = vmatpush.msrb.mxu3 %v3867_v16 }
 0x4e9   :  { %1452 = vmatpush.msrb.mxu0 %v3853_v48  ;;  %1348 = vmatpush.msra.mxu1 %v3867_v16 }
 0x4ea   :  { %1433 = vmatpush.msrb.mxu2 %v3636_v42  ;;  %1242 = vmatpush.msrb.mxu3 %v3873_v22 }
 0x4eb   :  { %1131 = vmatmul.f32.gmra.mxu3 %v997_v19  ;;  %1163 = vmatmul.f32.gmra.mxu0 %v997_v19 }
 0x4ec   :  { %1195 = vmatmul.f32.gmra.mxu1 %v997_v19  ;;  %1434 = vmatpush.msrb.mxu2 %v3640_v4 }
 0x4ed   :  { %1453 = vmatpush.msrb.mxu0 %v3858_v54  ;;  %1349 = vmatpush.msra.mxu1 %v3873_v22 }
 0x4ee   :  { %1435 = vmatpush.msrb.mxu2 %v3643_v14  ;;  %1243 = vmatpush.msrb.mxu3 %v3879_v55 }
 0x4ef   :  { %1454 = vmatpush.msrb.mxu0 %v3861_v57  ;;  %1350 = vmatpush.msra.mxu1 %v3879_v55 }
 0x4f0   :  { %1436 = vmatpush.msrb.mxu2 %v3648_v6  ;;  %1244 = vmatpush.msrb.mxu3 %v3885_v10 }
 0x4f1   :  { %1455 = vmatpush.msrb.mxu0 %v3867_v16  ;;  %1351 = vmatpush.msra.mxu1 %v3885_v10 }
 0x4f2   :  { %1437 = vmatpush.msrb.mxu2 %v3651_v51  ;;  %1245 = vmatpush.msrb.mxu3 %v3892_v3 }
 0x4f3   :  { %1134 = vmatmul.f32.gmra.mxu3 %v998_v13  ;;  %1166 = vmatmul.f32.gmra.mxu0 %v998_v13 }
 0x4f4   :  { %1198 = vmatmul.f32.gmra.mxu1 %v998_v13  ;;  %1438 = vmatpush.msrb.mxu2 %v3657_v20 }
 0x4f5   :  { %1456 = vmatpush.msrb.mxu0 %v3873_v22  ;;  %1352 = vmatpush.msra.mxu1 %v3892_v3 }
 0x4f6   :  { %1439 = vmatpush.msrb.mxu2 %v3663_v62  ;;  %1246 = vmatpush.msrb.mxu3 %v3898_v40 }
 0x4f7   :  { %1457 = vmatpush.msrb.mxu0 %v3879_v55  ;;  %1353 = vmatpush.msra.mxu1 %v3898_v40 }
 0x4f8   :  { %1440 = vmatpush.msrb.mxu2 %v3670_v32  ;;  %1247 = vmatpush.msrb.mxu3 %v3904_v58 }
 0x4f9   :  { %1458 = vmatpush.msrb.mxu0 %v3885_v10  ;;  %1354 = vmatpush.msra.mxu1 %v3904_v58 }
 0x4fa   :  { %1441 = vmatpush.msrb.mxu2 %v3674_v29  ;;  %1359 = vmatpush.msra.mxu3 %v3679_v34 }
 0x4fb   :  { %1459 = vmatpush.msrb.mxu0 %v3892_v3  ;;  %1466 = vmatpush.msrb.mxu1 %v3679_v34 }
 0x4fc   :  { %1553 = vmatpush.msra.mxu2 %v3770_v52  ;;  %1360 = vmatpush.msra.mxu3 %v3686_v30 }
 0x4fd   :  { %1460 = vmatpush.msrb.mxu0 %v3898_v40  ;;  %1467 = vmatpush.msrb.mxu1 %v3686_v30 }
 0x4fe   :  { %1554 = vmatpush.msra.mxu2 %v3825_v17  ;;  %1361 = vmatpush.msra.mxu3 %v3690_v35 }
 0x4ff   :  { %1461 = vmatpush.msrb.mxu0 %v3904_v58  ;;  %1468 = vmatpush.msrb.mxu1 %v3690_v35 }
 0x500   :  { %1555 = vmatpush.msra.mxu2 %v3829_v36  ;;  %1362 = vmatpush.msra.mxu3 %v3697_v47 }
 0x501   :  { %1469 = vmatpush.msrb.mxu1 %v3697_v47 }
 0x502   :  { %1556 = vmatpush.msra.mxu2 %v3835_v43  ;;  %1363 = vmatpush.msra.mxu3 %v3702_v63 }
 0x503   :  { %1470 = vmatpush.msrb.mxu1 %v3702_v63 }
 0x504   :  { %1557 = vmatpush.msra.mxu2 %v3841_v49  ;;  %1364 = vmatpush.msra.mxu3 %v3710_v1 }
 0x505   :  { %1471 = vmatpush.msrb.mxu1 %v3710_v1 }
 0x506   :  { %1558 = vmatpush.msra.mxu2 %v3847_v59  ;;  %1365 = vmatpush.msra.mxu3 %v3715_v53 }
 0x507   :  { %1472 = vmatpush.msrb.mxu1 %v3715_v53 }
 0x508   :  { %1559 = vmatpush.msra.mxu2 %v3853_v48  ;;  %1366 = vmatpush.msra.mxu3 %v3720_v11 }
 0x509   :  { %1473 = vmatpush.msrb.mxu1 %v3720_v11 }
 0x50a   :  { %1560 = vmatpush.msra.mxu2 %v3858_v54  ;;  %1367 = vmatpush.msra.mxu3 %v3725_v15 }
 0x50b   :  { %1474 = vmatpush.msrb.mxu1 %v3725_v15 }
 0x50c   :  { %1561 = vmatpush.msra.mxu2 %v3861_v57  ;;  %1368 = vmatpush.msra.mxu3 %v3733_v45 }
 0x50d   :  { %1475 = vmatpush.msrb.mxu1 %v3733_v45 }
 0x50e   :  { %1562 = vmatpush.msra.mxu2 %v3867_v16  ;;  %1369 = vmatpush.msra.mxu3 %v3743_v31 }
 0x50f   :  { %1476 = vmatpush.msrb.mxu1 %v3743_v31 }
 0x510   :  { %1563 = vmatpush.msra.mxu2 %v3873_v22  ;;  %1370 = vmatpush.msra.mxu3 %v3757_v28 }
 0x511   :  { %1477 = vmatpush.msrb.mxu1 %v3757_v28 }
 0x512   :  { %1564 = vmatpush.msra.mxu2 %v3879_v55  ;;  %1371 = vmatpush.msra.mxu3 %v3768_v39 }
 0x513   :  { %1478 = vmatpush.msrb.mxu1 %v3768_v39 }
 0x514   :  { %1565 = vmatpush.msra.mxu2 %v3885_v10  ;;  %1372 = vmatpush.msra.mxu3 %v3777_v2 }
 0x515   :  { %1479 = vmatpush.msrb.mxu1 %v3777_v2 }
 0x516   :  { %1566 = vmatpush.msra.mxu2 %v3892_v3  ;;  %1373 = vmatpush.msra.mxu3 %v3784_v60 }
 0x517   :  { %1480 = vmatpush.msrb.mxu1 %v3784_v60 }
 0x518   :  { %1567 = vmatpush.msra.mxu2 %v3898_v40  ;;  %1374 = vmatpush.msra.mxu3 %v3789_v9 }
 0x519   :  { %1481 = vmatpush.msrb.mxu1 %v3789_v9 }
 0x51a   :  { %1568 = vmatpush.msra.mxu2 %v3904_v58 }
 0x52e   :  { %v911_v12 = vpop.xlane.xlu0 %910 }
 0x52f   :  { %v916_v18 = vmul.f32 %v911_v12, %v3551_v46 }
 0x531   :  { %v921_v5 = vadd.f32 1e-05, %v916_v18 }
 0x533   :  { %2808 = vrsqrt.f32 %v921_v5  ;;  %vm968_vm6 = vweird.f32 %v921_v5 }
 0x539   :  { %v2809_v44 = vpop.eup %2808 }
 0x53a   :  { %v963_v33 = vmul.f32 %v2809_v44, %v921_v5  ;;  %vm969_vm5 = vweird.f32 %v2809_v44 }
 0x53b   :  { %vm970_vm7 = vmor %vm968_vm6, %vm969_vm5 }
 0x53c   :  { %v964_v7 = vmul.f32 %v2809_v44, %v963_v33 }
 0x53e   :  { %v965_v21 = vmul.f32 0.5, %v964_v7  ;;  %v1229_v7 = vpop.f32.mrf.mxu2 }
 0x540   :  { %v966_v19 = vsub.f32 1.5, %v965_v21 }
 0x542   :  { %v967_v23 = vmul.f32 %v2809_v44, %v966_v19 }
 0x544   :  { %v971_v37 = vsel %vm970_vm7, %v2809_v44, %v967_v23 }
 0x545   :  { %v976_v13 = vmul.f32 %v971_v37, %v3660_v24 }
 0x547   :  { %v985_v12 = vmul.f32 %v3755_v61, %v976_v13  ;;  %v2727_v61 = vld [vmem:[%s4691_s6 + $0x3] sm:$0x7] }
 0x548   :  { %v3976_v33 = vperm.slane %v2727_v61, 0 }
 0x549   :  { %v994_v18 = vadd.f32 %v3765_v41, %v985_v12  ;;  %v2726_v41 = vld [vmem:[%s4690_s5 + $0x3] sm:$0x7] }
 0x54a   :  { %v3974_v44 = vperm.slane %v2726_v41, 0  ;;  %4787 = vst [vmem:[#allocation16_spill] sm:$0xff] %v3976_v33  ;;  %v1230_v19 = vadd.f32 %v1229_v7, %v3976_v33  ;;  %v3988_v9 = vperm.slane %v2726_v41, 1 }
 0x54b   :  { %v999_v5 = vmax.f32 %v994_v18, 0.0 }
 0x54c   :  { %4786 = vst [vmem:[#allocation19_spill] sm:$0xff] %v3974_v44 }
 0x54d   :  { %1137 = vmatmul.f32.gmra.mxu3 %v999_v5  ;;  %1169 = vmatmul.f32.gmra.mxu0 %v999_v5  ;;  %4792 = vst [vmem:[#allocation22_spill] sm:$0xff] %v3988_v9 }
 0x54e   :  { %1201 = vmatmul.f32.gmra.mxu1 %v999_v5 }
 0x555   :  { %1248 = vmatmul.f32.vlgmr.msrb.gmra.mxu3 %v4778_v56 }
 0x556   :  { %1533 = vmatpush.msrb.mxu3 %v3615_v8 }
 0x558   :  { %1534 = vmatpush.msrb.mxu3 %v3618_v50  ;;  %v1158_v7 = vpop.f32.mrf.mxu0 }
 0x55a   :  { %1535 = vmatpush.msrb.mxu3 %v3621_v25 }
 0x55b   :  { %v1269_v60 = vpop.f32.mrf.mxu2 }
 0x55c   :  { %1536 = vmatpush.msrb.mxu3 %v3624_v38 }
 0x55e   :  { %1537 = vmatpush.msrb.mxu3 %v3627_v26  ;;  %v1126_v24 = vpop.f32.mrf.mxu3 }
 0x55f   :  { %v1127_v21 = vadd.f32 %v1126_v24, %v3974_v44  ;;  %v3990_v24 = vperm.slane %v2727_v61, 1  ;;  %v3994_v44 = vperm.slane %v2727_v61, 2 }
 0x560   :  { %1538 = vmatpush.msrb.mxu3 %v3630_v0 }
 0x561   :  { %v1272_v37 = vadd.f32 %v1230_v19, %v1127_v21  ;;  %4793 = vst [vmem:[#allocation23_spill] sm:$0xff] %v3990_v24  ;;  %v1159_v19 = vadd.f32 %v1158_v7, %v3988_v9 }
 0x562   :  { %1539 = vmatpush.msrb.mxu3 %v3633_v27 }
 0x563   :  { %v1273_v13 = vsub.f32 0.0, %v1272_v37 }
 0x564   :  { %1540 = vmatpush.msrb.mxu3 %v3636_v42 }
 0x565   :  { %v1274_v12 = vmul.f32 1.442695, %v1273_v13 }
 0x566   :  { %1541 = vmatpush.msrb.mxu3 %v3640_v4  ;;  %v3980_v23 = vpop.f32.mrf.mxu3 }
 0x567   :  { %4788 = vst [vmem:[#allocation18_spill] sm:$0xff] %v3980_v23  ;;  %2810 = vpow2.f32 %v1274_v12 }
 0x568   :  { %1542 = vmatpush.msrb.mxu3 %v3643_v14 }
 0x56a   :  { %1543 = vmatpush.msrb.mxu3 %v3648_v6 }
 0x56c   :  { %1544 = vmatpush.msrb.mxu3 %v3651_v51 }
 0x56d   :  { %v2811_v5 = vpop.eup %2810 }
 0x56e   :  { %1545 = vmatpush.msrb.mxu3 %v3657_v20  ;;  %v3982_v18 = vpop.f32.mrf.mxu3  ;;  %v1276_v46 = vadd.f32 1.0, %v2811_v5 }
 0x56f   :  { %4789 = vst [vmem:[#allocation17_spill] sm:$0xff] %v3982_v18 }
 0x570   :  { %1546 = vmatpush.msrb.mxu3 %v3663_v62  ;;  %2812 = vrcp.f32 %v1276_v46  ;;  %vm1282_vm9 = vweird.f32 %v1276_v46  ;;  %v1286_v40 = vand.u32 2147483647, %v1276_v46 }
 0x572   :  { %1547 = vmatpush.msrb.mxu3 %v3670_v32  ;;  %vm1287_vm11 = vcmp.eq.f32.partialorder %v1286_v40, 8.507059e+37 }
 0x574   :  { %1548 = vmatpush.msrb.mxu3 %v3674_v29 }
 0x576   :  { %v3984_v56 = vpop.f32.mrf.mxu3  ;;  %v2813_v29 = vpop.eup %2812 }
 0x577   :  { %4790 = vst [vmem:[#allocation20_spill] sm:$0xff] %v3984_v56  ;;  %v1278_v33 = vmul.f32 %v2813_v29, %v1276_v46  ;;  %vm1283_vm8 = vweird.f32 %v2813_v29 }
 0x578   :  { %vm1284_vm10 = vmor %vm1282_vm9, %vm1283_vm8 }
 0x579   :  { %v1279_v12 = vsub.f32 1.0, %v1278_v33 }
 0x57b   :  { %v1280_v5 = vmul.f32 %v2813_v29, %v1279_v12 }
 0x57d   :  { %v1281_v23 = vadd.f32 %v2813_v29, %v1280_v5 }
 0x57f   :  { %v1285_v3 = vsel %vm1284_vm10, %v2813_v29, %v1281_v23 }
 0x5d0   :  { %v3986_v58 = vpop.f32.mrf.mxu3 }
 0x5d1   :  { %4791 = vst [vmem:[#allocation21_spill] sm:$0xff] %v3986_v58  ;;  %v1288_v58 = vand.u32 2147483648, %v1276_v46 }
 0x5d3   :  { %v1289_v9 = vor.u32 1.1754944e-38, %v1288_v58 }
 0x5d5   :  { %v1290_v33 = vsel %vm1287_vm11, %v1289_v9, %v1285_v3 }
 0x5d8   :  { %v1249_v21 = vpop.f32.mrf.mxu3 }
 0x5d9   :  { %v1250_v37 = vadd.f32 %v1249_v21, %v3990_v24  ;;  %v1270_v21 = vadd.f32 %v1269_v60, %v3994_v44 }
 0x5db   :  { %v1292_v13 = vadd.f32 %v1250_v37, %v1159_v19  ;;  %v1312_v19 = vmul.f32 %v1290_v33, %v1270_v21 }
 0x5dd   :  { %v1293_v18 = vsub.f32 0.0, %v1292_v13 }
 0x5df   :  { %v1294_v56 = vmul.f32 1.442695, %v1293_v18  ;;  %v3997_v18 = vperm.slane %v2726_v41, 2 }
 0x5e1   :  { %2814 = vpow2.f32 %v1294_v56  ;;  %v1190_v56 = vpop.f32.mrf.mxu1 }
 0x5e2   :  { %v1191_v61 = vadd.f32 %v1190_v56, %v3997_v18 }
 0x5e4   :  { %v1313_v46 = vadd.f32 %v1312_v19, %v1191_v61 }
 0x5e7   :  { %v2815_v32 = vpop.eup %2814 }
 0x5e8   :  { %v1296_v7 = vadd.f32 1.0, %v2815_v32 }
 0x5ea   :  { %2816 = vrcp.f32 %v1296_v7  ;;  %v1308_v5 = vand.u32 2147483648, %v1296_v7  ;;  %v1306_v32 = vand.u32 2147483647, %v1296_v7  ;;  %vm1302_vm13 = vweird.f32 %v1296_v7 }
 0x5eb   :  { %2818 = vtanh.f32 %v1313_v46 }
 0x5ec   :  { %v1309_v60 = vor.u32 1.1754944e-38, %v1308_v5  ;;  %vm1307_vm15 = vcmp.eq.f32.partialorder %v1306_v32, 8.507059e+37 }
 0x5f0   :  { %v2817_v37 = vpop.eup %2816 }
 0x5f1   :  { %v1298_v13 = vmul.f32 %v2817_v37, %v1296_v7  ;;  %vm1303_vm12 = vweird.f32 %v2817_v37  ;;  %v2819_v58 = vpop.eup %2818 }
 0x5f2   :  { %vm1304_vm14 = vmor %vm1302_vm13, %vm1303_vm12 }
 0x5f3   :  { %v1299_v12 = vsub.f32 1.0, %v1298_v13 }
 0x5f5   :  { %v1300_v24 = vmul.f32 %v2817_v37, %v1299_v12 }
 0x5f7   :  { %v1301_v29 = vadd.f32 %v2817_v37, %v1300_v24 }
 0x5f9   :  { %v1305_v9 = vsel %vm1304_vm14, %v2817_v37, %v1301_v29 }
 0x5fa   :  { %v1310_v3 = vsel %vm1307_vm15, %v1309_v60, %v1305_v9 }
 0x5fb   :  { %v1315_v40 = vsub.f32 1.0, %v1310_v3  ;;  %v1317_v23 = vmul.f32 0.0, %v1310_v3 }
 0x5fd   :  { %v1316_v41 = vmul.f32 %v2819_v58, %v1315_v40 }
 0x5ff   :  { %v4000_v21 = vadd.f32 %v1317_v23, %v1316_v41 }
 0x601   :  { %1747 = vadd.xlane.f32.xlu1 %v4000_v21  ;;  %1335 = vmatmul.f32.vlgmr.msra.gmra.mxu0 %v4000_v21 }
 0x602   :  { %1355 = vmatmul.f32.vlgmr.msra.gmra.mxu1 %v4000_v21  ;;  %1375 = vmatmul.f32.vlgmr.msra.gmra.mxu3 %v4000_v21 }
 0x603   :  { %1573 = vmatpush.msra.mxu0 %v3679_v34  ;;  %1640 = vmatpush.msra.mxu1 %v3615_v8  ;;  %v4794_v8 = vld [vmem:[#allocation15_spill] sm:$0xff] }
 0x604   :  { %1660 = vmatpush.msra.mxu3 %v3770_v52 }
 0x605   :  { %1574 = vmatpush.msra.mxu0 %v3686_v30  ;;  %1641 = vmatpush.msra.mxu1 %v3618_v50  ;;  %v4795_v50 = vld [vmem:[#allocation9_spill] sm:$0xff] }
 0x606   :  { %1661 = vmatpush.msra.mxu3 %v3825_v17 }
 0x607   :  { %1575 = vmatpush.msra.mxu0 %v3690_v35  ;;  %1642 = vmatpush.msra.mxu1 %v3621_v25  ;;  %v4796_v25 = vld [vmem:[#allocation11_spill] sm:$0xff] }
 0x608   :  { %1662 = vmatpush.msra.mxu3 %v3829_v36  ;;  %v4801_v36 = vld [vmem:[#allocation19_spill] sm:$0xff] }
 0x609   :  { %1576 = vmatpush.msra.mxu0 %v3697_v47  ;;  %1643 = vmatpush.msra.mxu1 %v3624_v38  ;;  %v4797_v38 = vld [vmem:[#allocation10_spill] sm:$0xff] }
 0x60a   :  { %1663 = vmatpush.msra.mxu3 %v3835_v43  ;;  %v4802_v43 = vld [vmem:[#allocation18_spill] sm:$0xff] }
 0x60b   :  { %1577 = vmatpush.msra.mxu0 %v3702_v63  ;;  %1644 = vmatpush.msra.mxu1 %v3627_v26  ;;  %v4798_v26 = vld [vmem:[#allocation12_spill] sm:$0xff] }
 0x60c   :  { %1664 = vmatpush.msra.mxu3 %v3841_v49  ;;  %v1130_v49 = vadd.f32 %v4802_v43, %v4801_v36 }
 0x60d   :  { %1578 = vmatpush.msra.mxu0 %v3710_v1  ;;  %1645 = vmatpush.msra.mxu1 %v3630_v0  ;;  %v4799_v0 = vld [vmem:[#allocation14_spill] sm:$0xff] }
 0x60e   :  { %1665 = vmatpush.msra.mxu3 %v3847_v59  ;;  %v4803_v59 = vld [vmem:[#allocation16_spill] sm:$0xff] }
 0x60f   :  { %1579 = vmatpush.msra.mxu0 %v3715_v53  ;;  %1646 = vmatpush.msra.mxu1 %v3633_v27  ;;  %v4800_v27 = vld [vmem:[#allocation13_spill] sm:$0xff] }
 0x610   :  { %1666 = vmatpush.msra.mxu3 %v3853_v48 }
 0x611   :  { %1580 = vmatpush.msra.mxu0 %v3720_v11  ;;  %1647 = vmatpush.msra.mxu1 %v3636_v42  ;;  %v1161_v42 = vpop.f32.mrf.mxu0 }
 0x612   :  { %1667 = vmatpush.msra.mxu3 %v3858_v54 }
 0x613   :  { %1581 = vmatpush.msra.mxu0 %v3725_v15  ;;  %1648 = vmatpush.msra.mxu1 %v3640_v4  ;;  %v1193_v4 = vpop.f32.mrf.mxu1 }
 0x614   :  { %1668 = vmatpush.msra.mxu3 %v3861_v57  ;;  %v4804_v57 = vld [vmem:[#allocation22_spill] sm:$0xff] }
 0x615   :  { %1582 = vmatpush.msra.mxu0 %v3733_v45  ;;  %1649 = vmatpush.msra.mxu1 %v3643_v14 }
 0x616   :  { %1669 = vmatpush.msra.mxu3 %v3867_v16  ;;  %v1162_v16 = vadd.f32 %v1161_v42, %v4804_v57 }
 0x617   :  { %1583 = vmatpush.msra.mxu0 %v3743_v31  ;;  %1650 = vmatpush.msra.mxu1 %v3648_v6 }
 0x618   :  { %1670 = vmatpush.msra.mxu3 %v3873_v22  ;;  %v4805_v22 = vld [vmem:[#allocation23_spill] sm:$0xff] }
 0x619   :  { %1584 = vmatpush.msra.mxu0 %v3757_v28  ;;  %1651 = vmatpush.msra.mxu1 %v3651_v51  ;;  %v4054_v14 = vpop.f32.mrf.mxu0 }
 0x61a   :  { %1671 = vmatpush.msra.mxu3 %v3879_v55 }
 0x61b   :  { %1585 = vmatpush.msra.mxu0 %v3768_v39  ;;  %1652 = vmatpush.msra.mxu1 %v3657_v20  ;;  %v4056_v6 = vpop.f32.mrf.mxu1 }
 0x61c   :  { %1672 = vmatpush.msra.mxu3 %v3885_v10 }
 0x61d   :  { %1586 = vmatpush.msra.mxu0 %v3777_v2  ;;  %1653 = vmatpush.msra.mxu1 %v3663_v62 }
 0x61e   :  { %1673 = vmatpush.msra.mxu3 %v4794_v8 }
 0x61f   :  { %1587 = vmatpush.msra.mxu0 %v4795_v50  ;;  %1654 = vmatpush.msra.mxu1 %v4796_v25 }
 0x620   :  { %1674 = vmatpush.msra.mxu3 %v4797_v38 }
 0x621   :  { %1588 = vmatpush.msra.mxu0 %v4798_v26  ;;  %1655 = vmatpush.msra.mxu1 %v4799_v0  ;;  %v4058_v51 = vpop.f32.mrf.mxu0 }
 0x622   :  { %1675 = vmatpush.msra.mxu3 %v4800_v27 }
 0x623   :  { %v4060_v20 = vpop.f32.mrf.mxu1 }
 0x629   :  { %v4062_v62 = vpop.f32.mrf.mxu0 }
 0x62b   :  { %v4064_v52 = vpop.f32.mrf.mxu1 }
 0x67e   :  { %v1336_v17 = vpop.f32.mrf.mxu0 }
 0x67f   :  { %v1337_v48 = vadd.f32 %v1336_v17, %v4803_v59  ;;  %v1356_v54 = vpop.f32.mrf.mxu1  ;;  %v1194_v17 = vadd.f32 %v1193_v4, %v3997_v18 }
 0x680   :  { %v1357_v55 = vadd.f32 %v1356_v54, %v4805_v22 }
 0x681   :  { %v1379_v10 = vadd.f32 %v1337_v48, %v1130_v49 }
 0x682   :  { %v1399_v24 = vadd.f32 %v1357_v55, %v1162_v16 }
 0x683   :  { %v1380_v7 = vsub.f32 0.0, %v1379_v10 }
 0x684   :  { %v1400_v33 = vsub.f32 0.0, %v1399_v24 }
 0x685   :  { %v1381_v56 = vmul.f32 1.442695, %v1380_v7  ;;  %v1376_v23 = vpop.f32.mrf.mxu3 }
 0x686   :  { %v1401_v19 = vmul.f32 1.442695, %v1400_v33  ;;  %v1377_v38 = vadd.f32 %v1376_v23, %v3994_v44 }
 0x687   :  { %2820 = vpow2.f32 %v1381_v56 }
 0x688   :  { %2822 = vpow2.f32 %v1401_v19 }
 0x68d   :  { %v2821_v37 = vpop.eup %2820 }
 0x68e   :  { %v2823_v61 = vpop.eup %2822  ;;  %v1383_v13 = vadd.f32 1.0, %v2821_v37 }
 0x68f   :  { %v1403_v46 = vadd.f32 1.0, %v2823_v61 }
 0x690   :  { %2824 = vrcp.f32 %v1383_v13  ;;  %v1395_v3 = vand.u32 2147483648, %v1383_v13  ;;  %v1393_v58 = vand.u32 2147483647, %v1383_v13  ;;  %vm1389_vm1 = vweird.f32 %v1383_v13 }
 0x691   :  { %2826 = vrcp.f32 %v1403_v46  ;;  %v1415_v43 = vand.u32 2147483648, %v1403_v46  ;;  %vm1409_vm5 = vweird.f32 %v1403_v46  ;;  %v1413_v48 = vand.u32 2147483647, %v1403_v46 }
 0x692   :  { %v1396_v25 = vor.u32 1.1754944e-38, %v1395_v3  ;;  %vm1394_vm3 = vcmp.eq.f32.partialorder %v1393_v58, 8.507059e+37 }
 0x693   :  { %v1416_v55 = vor.u32 1.1754944e-38, %v1415_v43  ;;  %vm1414_vm7 = vcmp.eq.f32.partialorder %v1413_v48, 8.507059e+37 }
 0x696   :  { %v2825_v12 = vpop.eup %2824 }
 0x697   :  { %v2827_v5 = vpop.eup %2826  ;;  %v1385_v32 = vmul.f32 %v2825_v12, %v1383_v13  ;;  %vm1390_vm0 = vweird.f32 %v2825_v12 }
 0x698   :  { %v1405_v29 = vmul.f32 %v2827_v5, %v1403_v46  ;;  %vm1391_vm2 = vmor %vm1389_vm1, %vm1390_vm0  ;;  %vm1410_vm4 = vweird.f32 %v2827_v5 }
 0x699   :  { %v1386_v60 = vsub.f32 1.0, %v1385_v32  ;;  %vm1411_vm6 = vmor %vm1409_vm5, %vm1410_vm4 }
 0x69a   :  { %v1406_v9 = vsub.f32 1.0, %v1405_v29 }
 0x69b   :  { %v1387_v40 = vmul.f32 %v2825_v12, %v1386_v60 }
 0x69c   :  { %v1407_v41 = vmul.f32 %v2827_v5, %v1406_v9 }
 0x69d   :  { %v1388_v8 = vadd.f32 %v2825_v12, %v1387_v40 }
 0x69e   :  { %v1408_v42 = vadd.f32 %v2827_v5, %v1407_v41 }
 0x69f   :  { %v1392_v0 = vsel %vm1391_vm2, %v2825_v12, %v1388_v8 }
 0x6a0   :  { %v1397_v27 = vsel %vm1394_vm3, %v1396_v25, %v1392_v0  ;;  %v1412_v16 = vsel %vm1411_vm6, %v2827_v5, %v1408_v42  ;;  %v1197_v25 = vadd.f32 %v4056_v6, %v3997_v18 }
 0x6a1   :  { %v1419_v49 = vmul.f32 %v1397_v27, %v1377_v38  ;;  %v1417_v10 = vsel %vm1414_vm7, %v1416_v55, %v1412_v16  ;;  %v1748_v16 = vpop.xlane.xlu1 %1747 }
 0x6a2   :  { %v1422_v24 = vsub.f32 1.0, %v1417_v10  ;;  %v1424_v56 = vmul.f32 %v1417_v10, %v4000_v21 }
 0x6a3   :  { %v1420_v54 = vadd.f32 %v1419_v49, %v1194_v17 }
 0x6a5   :  { %2828 = vtanh.f32 %v1420_v54 }
 0x6ab   :  { %v2829_v7 = vpop.eup %2828 }
 0x6ac   :  { %v1423_v33 = vmul.f32 %v2829_v7, %v1422_v24  ;;  %v4807_v24 = vld [vmem:[#allocation8_spill] sm:$0xff] }
 0x6ad   :  { %v1757_v7 = vmul.f32 %v1748_v16, %v4807_v24 }
 0x6ae   :  { %v4074_v19 = vadd.f32 %v1424_v56, %v1423_v33 }
 0x6af   :  { %v4114_v33 = vsub.f32 %v4000_v21, %v1757_v7  ;;  %v1897_v21 = vld [vmem:[#allocation2 + $0x3c0] sm:$0xff]  ;;  %v1904_v7 = vld [vmem:[#allocation2 + $0x3f8] sm:$0xff] }
 0x6b0   :  { %1749 = vadd.xlane.f32.xlu2 %v4074_v19  ;;  %1442 = vmatmul.f32.vlgmr.msrb.gmra.mxu2 %v4074_v19 }
 0x6b1   :  { %1462 = vmatmul.f32.vlgmr.msrb.gmra.mxu0 %v4074_v19  ;;  %1482 = vmatmul.f32.vlgmr.msrb.gmra.mxu1 %v4074_v19  ;;  %v1767_v56 = vmul.f32 %v4114_v33, %v4114_v33 }
 0x6b2   :  { %1680 = vmatpush.msrb.mxu2 %v3679_v34 }
 0x6b4   :  { %1681 = vmatpush.msrb.mxu2 %v3686_v30  ;;  %v1165_v30 = vadd.f32 %v4054_v14, %v4804_v57 }
 0x6b6   :  { %1682 = vmatpush.msrb.mxu2 %v3690_v35 }
 0x6b8   :  { %1683 = vmatpush.msrb.mxu2 %v3697_v47 }
 0x6ba   :  { %1684 = vmatpush.msrb.mxu2 %v3702_v63 }
 0x6bc   :  { %1685 = vmatpush.msrb.mxu2 %v3710_v1 }
 0x6be   :  { %1686 = vmatpush.msrb.mxu2 %v3715_v53  ;;  %v4806_v53 = vld [vmem:[#allocation17_spill] sm:$0xff] }
 0x6c0   :  { %1687 = vmatpush.msrb.mxu2 %v3720_v11  ;;  %v1133_v11 = vadd.f32 %v4806_v53, %v4801_v36  ;;  %v1900_v53 = vld [vmem:[#allocation2 + $0x3d8] sm:$0xff] }
 0x6c2   :  { %1688 = vmatpush.msrb.mxu2 %v3725_v15 }
 0x6c4   :  { %1689 = vmatpush.msrb.mxu2 %v3733_v45 }
 0x6c6   :  { %1690 = vmatpush.msrb.mxu2 %v3743_v31 }
 0x6c8   :  { %1691 = vmatpush.msrb.mxu2 %v3757_v28 }
 0x6ca   :  { %1692 = vmatpush.msrb.mxu2 %v3768_v39 }
 0x6cc   :  { %1693 = vmatpush.msrb.mxu2 %v3777_v2 }
 0x6ce   :  { %1694 = vmatpush.msrb.mxu2 %v4795_v50 }
 0x6d0   :  { %1695 = vmatpush.msrb.mxu2 %v4798_v26 }
 0x72e   :  { %v1463_v34 = vpop.f32.mrf.mxu0  ;;  %v1483_v9 = vpop.f32.mrf.mxu1 }
 0x72f   :  { %v1464_v35 = vadd.f32 %v1463_v34, %v4805_v22  ;;  %v1484_v58 = vadd.f32 %v1483_v9, %v3994_v44  ;;  %v1918_v34 = vld [vmem:[#allocation2 + $0x468] sm:$0xff] }
 0x730   :  { %1981 = vmatpush.msrb.mxu0 %v1918_v34  ;;  %v1914_v9 = vld [vmem:[#allocation2 + $0x448] sm:$0xff]  ;;  %v4146_v34 = vld [vmem:[#allocation4 + $0x3f0] sm:$0xff] }
 0x731   :  { %v1506_v47 = vadd.f32 %v1464_v35, %v1165_v30  ;;  %v1915_v30 = vld [vmem:[#allocation2 + $0x450] sm:$0xff]  ;;  %v1912_v35 = vld [vmem:[#allocation2 + $0x438] sm:$0xff] }
 0x732   :  { %1982 = vmatpush.msrb.mxu0 %v1915_v30 }
 0x733   :  { %v1507_v63 = vsub.f32 0.0, %v1506_v47  ;;  %v1443_v1 = vpop.f32.mrf.mxu2  ;;  %v1909_v47 = vld [vmem:[#allocation2 + $0x420] sm:$0xff] }
 0x734   :  { %v1444_v15 = vadd.f32 %v1443_v1, %v4803_v59  ;;  %1983 = vmatpush.msrb.mxu0 %v1912_v35  ;;  %v1903_v1 = vld [vmem:[#allocation2 + $0x3f0] sm:$0xff]  ;;  %v1901_v35 = vld [vmem:[#allocation2 + $0x3e0] sm:$0xff] }
 0x735   :  { %v1508_v45 = vmul.f32 1.442695, %v1507_v63  ;;  %v1906_v63 = vld [vmem:[#allocation2 + $0x408] sm:$0xff] }
 0x736   :  { %v1486_v31 = vadd.f32 %v1444_v15, %v1133_v11  ;;  %1984 = vmatpush.msrb.mxu0 %v1909_v47  ;;  %v1894_v11 = vld [vmem:[#allocation2 + $0x3a8] sm:$0xff]  ;;  %v1891_v15 = vld [vmem:[#allocation2 + $0x390] sm:$0xff] }
 0x737   :  { %2830 = vpow2.f32 %v1508_v45  ;;  %v1888_v45 = vld [vmem:[#allocation2 + $0x378] sm:$0xff]  ;;  %v1902_v47 = vld [vmem:[#allocation2 + $0x3e8] sm:$0xff] }
 0x738   :  { %v1487_v28 = vsub.f32 0.0, %v1486_v31  ;;  %1985 = vmatpush.msrb.mxu0 %v1906_v63  ;;  %v1885_v31 = vld [vmem:[#allocation2 + $0x360] sm:$0xff]  ;;  %v4148_v63 = vld [vmem:[#allocation4 + $0x3d8] sm:$0xff] }
 0x73a   :  { %v1488_v39 = vmul.f32 1.442695, %v1487_v28  ;;  %1986 = vmatpush.msrb.mxu0 %v1903_v1 }
 0x73c   :  { %2832 = vpow2.f32 %v1488_v39  ;;  %1987 = vmatpush.msrb.mxu0 %v1900_v53  ;;  %v1882_v39 = vld [vmem:[#allocation2 + $0x348] sm:$0xff] }
 0x73d   :  { %v2831_v2 = vpop.eup %2830 }
 0x73e   :  { %v1510_v50 = vadd.f32 1.0, %v2831_v2  ;;  %1988 = vmatpush.msrb.mxu0 %v1897_v21  ;;  %v1879_v2 = vld [vmem:[#allocation2 + $0x330] sm:$0xff]  ;;  %v1898_v21 = vld [vmem:[#allocation2 + $0x3c8] sm:$0xff] }
 0x740   :  { %2834 = vrcp.f32 %v1510_v50  ;;  %v1522_v38 = vand.u32 2147483648, %v1510_v50  ;;  %vm1516_vm13 = vweird.f32 %v1510_v50  ;;  %v1520_v27 = vand.u32 2147483647, %v1510_v50  ;;  %1989 = vmatpush.msrb.mxu0 %v1894_v11  ;;  %v1899_v11 = vld [vmem:[#allocation2 + $0x3d0] sm:$0xff] }
 0x742   :  { %v2833_v26 = vpop.eup %2832  ;;  %v1523_v43 = vor.u32 1.1754944e-38, %v1522_v38  ;;  %vm1521_vm15 = vcmp.eq.f32.partialorder %v1520_v27, 8.507059e+37  ;;  %1990 = vmatpush.msrb.mxu0 %v1891_v15  ;;  %v1910_v38 = vld [vmem:[#allocation2 + $0x428] sm:$0xff]  ;;  %v4139_v27 = vld [vmem:[#allocation4 + $0x420] sm:$0xff] }
 0x743   :  { %v1490_v4 = vadd.f32 1.0, %v2833_v26  ;;  %v1873_v26 = vld [vmem:[#allocation2 + $0x300] sm:$0xff] }
 0x744   :  { %1991 = vmatpush.msrb.mxu0 %v1888_v45  ;;  %v4151_v15 = vld [vmem:[#allocation4 + $0x3c0] sm:$0xff] }
 0x745   :  { %2836 = vrcp.f32 %v1490_v4  ;;  %v1502_v5 = vand.u32 2147483648, %v1490_v4  ;;  %v1500_v29 = vand.u32 2147483647, %v1490_v4  ;;  %vm1496_vm9 = vweird.f32 %v1490_v4 }
 0x746   :  { %v2835_v14 = vpop.eup %2834  ;;  %1992 = vmatpush.msrb.mxu0 %v1885_v31  ;;  %v1895_v31 = vld [vmem:[#allocation2 + $0x3b0] sm:$0xff] }
 0x747   :  { %v1512_v37 = vmul.f32 %v2835_v14, %v1510_v50  ;;  %v1503_v40 = vor.u32 1.1754944e-38, %v1502_v5  ;;  %vm1501_vm11 = vcmp.eq.f32.partialorder %v1500_v29, 8.507059e+37  ;;  %vm1517_vm12 = vweird.f32 %v2835_v14  ;;  %v1876_v50 = vld [vmem:[#allocation2 + $0x318] sm:$0xff]  ;;  %v1917_v5 = vld [vmem:[#allocation2 + $0x460] sm:$0xff] }
 0x748   :  { %vm1518_vm14 = vmor %vm1516_vm13, %vm1517_vm12  ;;  %1993 = vmatpush.msrb.mxu0 %v1882_v39  ;;  %v1896_v39 = vld [vmem:[#allocation2 + $0x3b8] sm:$0xff] }
 0x749   :  { %v1513_v46 = vsub.f32 1.0, %v1512_v37 }
 0x74a   :  { %1994 = vmatpush.msrb.mxu0 %v1879_v2  ;;  %v4154_v2 = vld [vmem:[#allocation4 + $0x3a8] sm:$0xff] }
 0x74b   :  { %v2837_v61 = vpop.eup %2836  ;;  %v1514_v60 = vmul.f32 %v2835_v14, %v1513_v46  ;;  %v4123_v46 = vld [vmem:[#allocation4 + $0x468] sm:$0xff] }
 0x74c   :  { %v1492_v13 = vmul.f32 %v2837_v61, %v1490_v4  ;;  %vm1497_vm8 = vweird.f32 %v2837_v61  ;;  %1995 = vmatpush.msrb.mxu0 %v1876_v50 }
 0x74d   :  { %vm1498_vm10 = vmor %vm1496_vm9, %vm1497_vm8  ;;  %v1515_v23 = vadd.f32 %v2835_v14, %v1514_v60  ;;  %v1913_v60 = vld [vmem:[#allocation2 + $0x440] sm:$0xff] }
 0x74e   :  { %v1493_v12 = vsub.f32 1.0, %v1492_v13  ;;  %1996 = vmatpush.msrb.mxu0 %v1873_v26  ;;  %v1920_v13 = vld [vmem:[#allocation2 + $0x478] sm:$0xff] }
 0x74f   :  { %v1519_v17 = vsel %vm1518_vm14, %v2835_v14, %v1515_v23  ;;  %v1892_v26 = vld [vmem:[#allocation2 + $0x398] sm:$0xff] }
 0x750   :  { %v1494_v32 = vmul.f32 %v2837_v61, %v1493_v12  ;;  %v1524_v49 = vsel %vm1521_vm15, %v1523_v43, %v1519_v17  ;;  %v1916_v12 = vld [vmem:[#allocation2 + $0x458] sm:$0xff] }
 0x751   :  { %v1529_v48 = vsub.f32 1.0, %v1524_v49  ;;  %v1531_v10 = vmul.f32 %v1524_v49, %v4074_v19 }
 0x752   :  { %v1495_v3 = vadd.f32 %v2837_v61, %v1494_v32  ;;  %v4127_v32 = vld [vmem:[#allocation4 + $0x450] sm:$0xff] }
 0x754   :  { %v1499_v41 = vsel %vm1498_vm10, %v2837_v61, %v1495_v3  ;;  %v1919_v61 = vld [vmem:[#allocation2 + $0x470] sm:$0xff]  ;;  %v4130_v3 = vld [vmem:[#allocation4 + $0x438] sm:$0xff] }
 0x755   :  { %v1504_v8 = vsel %vm1501_vm11, %v1503_v40, %v1499_v41  ;;  %2013 = vmatpush.msrb.mxu1 %v1919_v61  ;;  %v4808_v40 = vld [vmem:[#allocation20_spill] sm:$0xff]  ;;  %v4163_v61 = vld [vmem:[#allocation4 + $0x390] sm:$0xff] }
 0x756   :  { %v1526_v0 = vmul.f32 %v1504_v8, %v1484_v58  ;;  %v1136_v58 = vadd.f32 %v4808_v40, %v4801_v36  ;;  %v1168_v8 = vadd.f32 %v4058_v51, %v4804_v57  ;;  %v4143_v51 = vld [vmem:[#allocation4 + $0x408] sm:$0xff] }
 0x757   :  { %2014 = vmatpush.msrb.mxu1 %v1916_v12  ;;  %v1889_v12 = vld [vmem:[#allocation2 + $0x380] sm:$0xff] }
 0x758   :  { %v1527_v42 = vadd.f32 %v1526_v0, %v1197_v25  ;;  %v1911_v0 = vld [vmem:[#allocation2 + $0x430] sm:$0xff] }
 0x759   :  { %2015 = vmatpush.msrb.mxu1 %v1913_v60  ;;  %v4167_v60 = vld [vmem:[#allocation4 + $0x378] sm:$0xff] }
 0x75a   :  { %2838 = vtanh.f32 %v1527_v42 }
 0x75b   :  { %2016 = vmatpush.msrb.mxu1 %v1910_v38  ;;  %v1883_v38 = vld [vmem:[#allocation2 + $0x350] sm:$0xff] }
 0x760   :  { %v2839_v54 = vpop.eup %2838 }
 0x761   :  { %v1530_v55 = vmul.f32 %v2839_v54, %v1529_v48  ;;  %v1907_v48 = vld [vmem:[#allocation2 + $0x410] sm:$0xff]  ;;  %v1908_v54 = vld [vmem:[#allocation2 + $0x418] sm:$0xff] }
 0x762   :  { %2017 = vmatpush.msrb.mxu1 %v1907_v48  ;;  %v4186_v48 = vld [vmem:[#allocation4 + $0x330] sm:$0xff] }
 0x763   :  { %v4107_v6 = vadd.f32 %v1531_v10, %v1530_v55 }
 0x764   :  { %2018 = vmatpush.msrb.mxu1 %v1904_v7 }
 0x765   :  { %1751 = vadd.xlane.f32.xlu0 %v4107_v6  ;;  %1549 = vmatmul.f32.vlgmr.msrb.gmra.mxu3 %v4107_v6 }
 0x766   :  { %1569 = vmatmul.f32.vlgmr.msra.gmra.mxu2 %v4107_v6  ;;  %1589 = vmatmul.f32.vlgmr.msra.gmra.mxu0 %v4107_v6 }
 0x767   :  { %2045 = vmatpush.msrb.mxu3 %v1920_v13  ;;  %2084 = vmatpush.msra.mxu2 %v4123_v46 }
 0x768   :  { %2019 = vmatpush.msrb.mxu1 %v1901_v35 }
 0x769   :  { %2046 = vmatpush.msrb.mxu3 %v1917_v5  ;;  %2085 = vmatpush.msra.mxu2 %v4127_v32  ;;  %v1890_v5 = vld [vmem:[#allocation2 + $0x388] sm:$0xff] }
 0x76a   :  { %2020 = vmatpush.msrb.mxu1 %v1898_v21 }
 0x76b   :  { %2047 = vmatpush.msrb.mxu3 %v1914_v9  ;;  %2086 = vmatpush.msra.mxu2 %v4130_v3 }
 0x76c   :  { %2021 = vmatpush.msrb.mxu1 %v1895_v31 }
 0x76d   :  { %1772 = vadd.xlane.f32.xlu0 %v1767_v56  ;;  %2048 = vmatpush.msrb.mxu3 %v1911_v0  ;;  %v1905_v56 = vld [vmem:[#allocation2 + $0x400] sm:$0xff]  ;;  %v1884_v0 = vld [vmem:[#allocation2 + $0x358] sm:$0xff] }
 0x76e   :  { %2087 = vmatpush.msra.mxu2 %v4139_v27  ;;  %2022 = vmatpush.msrb.mxu1 %v1892_v26 }
 0x76f   :  { %2049 = vmatpush.msrb.mxu3 %v1908_v54 }
 0x770   :  { %2088 = vmatpush.msra.mxu2 %v4143_v51  ;;  %2023 = vmatpush.msrb.mxu1 %v1889_v12 }
 0x771   :  { %2050 = vmatpush.msrb.mxu3 %v1905_v56  ;;  %v1874_v56 = vld [vmem:[#allocation2 + $0x308] sm:$0xff] }
 0x772   :  { %2089 = vmatpush.msra.mxu2 %v4146_v34 }
 0x773   :  { %2051 = vmatpush.msrb.mxu3 %v1902_v47 }
 0x774   :  { %2090 = vmatpush.msra.mxu2 %v4148_v63 }
 0x775   :  { %2052 = vmatpush.msrb.mxu3 %v1899_v11 }
 0x776   :  { %2091 = vmatpush.msra.mxu2 %v4151_v15 }
 0x777   :  { %2053 = vmatpush.msrb.mxu3 %v1896_v39 }
 0x778   :  { %2092 = vmatpush.msra.mxu2 %v4154_v2 }
 0x77a   :  { %2093 = vmatpush.msra.mxu2 %v4163_v61 }
 0x77c   :  { %2094 = vmatpush.msra.mxu2 %v4167_v60 }
 0x7d8   :  { %v4118_v28 = vpop.xlane.xlu0 %1751 }
 0x7e0   :  { %v1773_v4 = vpop.xlane.xlu0 %1772 }
 0x7e1   :  { %v1782_v14 = vmul.f32 %v1773_v4, %v4807_v24  ;;  %v1893_v4 = vld [vmem:[#allocation2 + $0x3a0] sm:$0xff] }
 0x7e2   :  { %2054 = vmatpush.msrb.mxu3 %v1893_v4 }
 0x7e3   :  { %v4121_v37 = vadd.f32 1e-05, %v1782_v14  ;;  %v4161_v14 = vld [vmem:[%s4692_s7 + $0x1] ss:$0 sm:$0xff] }
 0x7e4   :  { %2055 = vmatpush.msrb.mxu3 %v1890_v5 }
 0x7e5   :  { %2840 = vrsqrt.f32 %v4121_v37  ;;  %vm1798_vm1 = vweird.f32 %v4121_v37 }
 0x7e8   :  { %v1550_v29 = vpop.f32.mrf.mxu3 }
 0x7e9   :  { %v1551_v41 = vadd.f32 %v1550_v29, %v4803_v59  ;;  %v1570_v23 = vpop.f32.mrf.mxu2 }
 0x7ea   :  { %v1571_v25 = vadd.f32 %v1570_v23, %v4805_v22  ;;  %v1887_v23 = vld [vmem:[#allocation2 + $0x370] sm:$0xff] }
 0x7eb   :  { %v2841_v42 = vpop.eup %2840  ;;  %v1593_v17 = vadd.f32 %v1551_v41, %v1136_v58  ;;  %v4172_v58 = vld [vmem:[%s4693_s8 + $0x1] ss:$0 sm:$0xff]  ;;  %v1886_v41 = vld [vmem:[#allocation2 + $0x368] sm:$0xff]  ;;  %2056 = vmatpush.msrb.mxu3 %v1887_v23 }
 0x7ec   :  { %v1793_v43 = vmul.f32 %v2841_v42, %v4121_v37  ;;  %v1613_v49 = vadd.f32 %v1571_v25, %v1168_v8  ;;  %vm1799_vm0 = vweird.f32 %v2841_v42  ;;  %2024 = vmatpush.msrb.mxu1 %v1886_v41 }
 0x7ed   :  { %v1594_v16 = vsub.f32 0.0, %v1593_v17  ;;  %vm1800_vm2 = vmor %vm1798_vm1, %vm1799_vm0  ;;  %2057 = vmatpush.msrb.mxu3 %v1884_v0 }
 0x7ee   :  { %v1794_v55 = vmul.f32 %v2841_v42, %v1793_v43  ;;  %v1614_v10 = vsub.f32 0.0, %v1613_v49  ;;  %v1880_v43 = vld [vmem:[#allocation2 + $0x338] sm:$0xff]  ;;  %v1881_v49 = vld [vmem:[#allocation2 + $0x340] sm:$0xff]  ;;  %2025 = vmatpush.msrb.mxu1 %v1883_v38 }
 0x7ef   :  { %v1595_v30 = vmul.f32 1.442695, %v1594_v16  ;;  %v1877_v16 = vld [vmem:[#allocation2 + $0x320] sm:$0xff]  ;;  %2058 = vmatpush.msrb.mxu3 %v1881_v49 }
 0x7f0   :  { %v1795_v1 = vmul.f32 0.5, %v1794_v55  ;;  %v1615_v53 = vmul.f32 1.442695, %v1614_v10  ;;  %v1878_v55 = vld [vmem:[#allocation2 + $0x328] sm:$0xff]  ;;  %2026 = vmatpush.msrb.mxu1 %v1880_v43  ;;  %v4191_v10 = vld [vmem:[#allocation4 + $0x318] sm:$0xff] }
 0x7f1   :  { %2842 = vpow2.f32 %v1595_v30  ;;  %v1875_v30 = vld [vmem:[#allocation2 + $0x310] sm:$0xff]  ;;  %2059 = vmatpush.msrb.mxu3 %v1878_v55 }
 0x7f2   :  { %v1796_v45 = vsub.f32 1.5, %v1795_v1  ;;  %2844 = vpow2.f32 %v1615_v53  ;;  %2027 = vmatpush.msrb.mxu1 %v1877_v16  ;;  %v4195_v1 = vld [vmem:[#allocation4 + $0x300] sm:$0xff]  ;;  %v1750_v16 = vpop.xlane.xlu2 %1749 }
 0x7f3   :  { %2060 = vmatpush.msrb.mxu3 %v1875_v30 }
 0x7f4   :  { %v1797_v50 = vmul.f32 %v2841_v42, %v1796_v45  ;;  %2028 = vmatpush.msrb.mxu1 %v1874_v56 }
 0x7f6   :  { %v1801_v13 = vsel %vm1800_vm2, %v2841_v42, %v1797_v50  ;;  %v4182_v42 = vld [vmem:[#allocation4 + $0x348] sm:$0xff]  ;;  %v1590_v50 = vpop.f32.mrf.mxu0 }
 0x7f7   :  { %v2843_v37 = vpop.eup %2842  ;;  %v1842_v29 = vmul.f32 %v1801_v13, %v4114_v33  ;;  %v4178_v33 = vld [vmem:[#allocation4 + $0x360] sm:$0xff]  ;;  %v1591_v12 = vadd.f32 %v1590_v50, %v3994_v44 }
 0x7f8   :  { %v2845_v9 = vpop.eup %2844  ;;  %v1597_v40 = vadd.f32 1.0, %v2843_v37  ;;  %2095 = vmatpush.msra.mxu2 %v4178_v33 }
 0x7f9   :  { %v4175_v8 = vadd.f32 1.0, %v2845_v9  ;;  %v1852_v25 = vmul.f32 %v4161_v14, %v1842_v29  ;;  %v1200_v9 = vadd.f32 %v4060_v20, %v3997_v18 }
 0x7fa   :  { %2846 = vrcp.f32 %v1597_v40  ;;  %2096 = vmatpush.msra.mxu2 %v4182_v42  ;;  %v1609_v11 = vand.u32 2147483648, %v1597_v40  ;;  %v1607_v39 = vand.u32 2147483647, %v1597_v40  ;;  %vm1603_vm4 = vweird.f32 %v1597_v40 }
 0x7fb   :  { %2848 = vrcp.f32 %v4175_v8  ;;  %v1862_v17 = vadd.f32 %v4172_v58, %v1852_v25  ;;  %v1629_v23 = vand.u32 2147483648, %v4175_v8  ;;  %vm1623_vm8 = vweird.f32 %v4175_v8 }
 0x7fc   :  { %2097 = vmatpush.msra.mxu2 %v4186_v48  ;;  %v1610_v13 = vor.u32 1.1754944e-38, %v1609_v11  ;;  %vm1608_vm6 = vcmp.eq.f32.partialorder %v1607_v39, 8.507059e+37  ;;  %v1627_v25 = vand.u32 2147483647, %v4175_v8 }
 0x7fd   :  { %v4188_v54 = vmax.f32 %v1862_v17, 0.0  ;;  %v1630_v0 = vor.u32 1.1754944e-38, %v1629_v23 }
 0x7fe   :  { %2098 = vmatpush.msra.mxu2 %v4191_v10  ;;  %vm1628_vm10 = vcmp.eq.f32.partialorder %v1627_v25, 8.507059e+37 }
 0x7ff   :  { %1997 = vmatmul.f32.vlgmr.msrb.gmra.mxu0 %v4188_v54 }
 0x800   :  { %v2847_v7 = vpop.eup %2846  ;;  %2099 = vmatpush.msra.mxu2 %v4195_v1 }
 0x801   :  { %v2849_v35 = vpop.eup %2848  ;;  %v1599_v47 = vmul.f32 %v2847_v7, %v1597_v40  ;;  %vm1604_vm3 = vweird.f32 %v2847_v7 }
 0x802   :  { %v1619_v53 = vmul.f32 %v2849_v35, %v4175_v8  ;;  %vm1605_vm5 = vmor %vm1603_vm4, %vm1604_vm3  ;;  %vm1624_vm7 = vweird.f32 %v2849_v35 }
 0x803   :  { %v1600_v21 = vsub.f32 1.0, %v1599_v47  ;;  %vm1625_vm9 = vmor %vm1623_vm8, %vm1624_vm7 }
 0x804   :  { %v1620_v45 = vsub.f32 1.0, %v1619_v53 }
 0x805   :  { %v1601_v31 = vmul.f32 %v2847_v7, %v1600_v21 }
 0x806   :  { %v1621_v26 = vmul.f32 %v2849_v35, %v1620_v45 }
 0x807   :  { %v1602_v4 = vadd.f32 %v2847_v7, %v1601_v31  ;;  %v4810_v31 = vld [vmem:[#allocation21_spill] sm:$0xff] }
 0x808   :  { %v1622_v29 = vadd.f32 %v2849_v35, %v1621_v26  ;;  %v1139_v39 = vadd.f32 %v4810_v31, %v4801_v36 }
 0x809   :  { %v1606_v5 = vsel %vm1605_vm5, %v2847_v7, %v1602_v4  ;;  %v1758_v7 = vmul.f32 %v1750_v16, %v4807_v24 }
 0x80a   :  { %v1611_v37 = vsel %vm1608_vm6, %v1610_v13, %v1606_v5  ;;  %v1626_v38 = vsel %vm1625_vm9, %v2849_v35, %v1622_v29  ;;  %v4809_v35 = vmov 0.0  }
 0x80b   :  { %v1633_v41 = vmul.f32 %v1611_v37, %v1591_v12  ;;  %v1631_v17 = vsel %vm1628_vm10, %v1630_v0, %v1626_v38  ;;  %v1763_v8 = vsub.f32 %v4074_v19, %v1758_v7  ;;  %v1171_v37 = vadd.f32 %v4062_v62, %v4804_v57 }
 0x80c   :  { %v1636_v43 = vsub.f32 1.0, %v1631_v17  ;;  %v1638_v20 = vmul.f32 %v1631_v17, %v4107_v6 }
 0x80d   :  { %v1634_v40 = vadd.f32 %v1633_v41, %v1200_v9  ;;  %v1768_v30 = vmul.f32 %v1763_v8, %v1763_v8 }
 0x80f   :  { %2850 = vtanh.f32 %v1634_v40 }
 0x815   :  { %v2851_v49 = vpop.eup %2850 }
 0x816   :  { %v1637_v55 = vmul.f32 %v2851_v49, %v1636_v43 }
 0x818   :  { %v4208_v56 = vadd.f32 %v1638_v20, %v1637_v55 }
 0x81a   :  { %1753 = vadd.xlane.f32.xlu1 %v4208_v56  ;;  %1656 = vmatmul.f32.vlgmr.msra.gmra.mxu1 %v4208_v56 }
 0x81b   :  { %1676 = vmatmul.f32.vlgmr.msra.gmra.mxu3 %v4208_v56  ;;  %1696 = vmatmul.f32.vlgmr.msrb.gmra.mxu2 %v4208_v56 }
 0x81c   :  { %2191 = vmatpush.msra.mxu3 %v4123_v46 }
 0x81e   :  { %2192 = vmatpush.msra.mxu3 %v4127_v32 }
 0x820   :  { %2193 = vmatpush.msra.mxu3 %v4130_v3 }
 0x822   :  { %1774 = vadd.xlane.f32.xlu1 %v1768_v30  ;;  %2029 = vmatmul.f32.vlgmr.msrb.gmra.mxu1 %v4188_v54 }
 0x823   :  { %2061 = vmatmul.f32.vlgmr.msrb.gmra.mxu3 %v4188_v54  ;;  %2100 = vmatmul.f32.vlgmr.msra.gmra.mxu2 %v4809_v35 }
 0x824   :  { %2194 = vmatpush.msra.mxu3 %v4139_v27 }
 0x826   :  { %2195 = vmatpush.msra.mxu3 %v4143_v51 }
 0x828   :  { %2196 = vmatpush.msra.mxu3 %v4146_v34 }
 0x82a   :  { %2197 = vmatpush.msra.mxu3 %v4148_v63 }
 0x82c   :  { %2198 = vmatpush.msra.mxu3 %v4151_v15 }
 0x82e   :  { %2199 = vmatpush.msra.mxu3 %v4154_v2 }
 0x830   :  { %2200 = vmatpush.msra.mxu3 %v4163_v61 }
 0x832   :  { %2201 = vmatpush.msra.mxu3 %v4167_v60 }
 0x834   :  { %2202 = vmatpush.msra.mxu3 %v4178_v33 }
 0x836   :  { %2203 = vmatpush.msra.mxu3 %v4182_v42 }
 0x838   :  { %2204 = vmatpush.msra.mxu3 %v4186_v48 }
 0x83a   :  { %2205 = vmatpush.msra.mxu3 %v4191_v10 }
 0x83c   :  { %2206 = vmatpush.msra.mxu3 %v4195_v1 }
 0x88d   :  { %v1754_v19 = vpop.xlane.xlu1 %1753 }
 0x88e   :  { %v1760_v54 = vmul.f32 %v1754_v19, %v4807_v24 }
 0x890   :  { %v4236_v47 = vsub.f32 %v4208_v56, %v1760_v54 }
 0x892   :  { %v1770_v53 = vmul.f32 %v4236_v47, %v4236_v47 }
 0x894   :  { %1778 = vadd.xlane.f32.xlu0 %v1770_v53 }
 0x895   :  { %v1775_v21 = vpop.xlane.xlu1 %1774 }
 0x896   :  { %v1783_v11 = vmul.f32 %v1775_v21, %v4807_v24 }
 0x897   :  { %v1657_v45 = vpop.f32.mrf.mxu1 }
 0x898   :  { %v1788_v50 = vadd.f32 1e-05, %v1783_v11  ;;  %v1658_v26 = vadd.f32 %v1657_v45, %v4803_v59 }
 0x89a   :  { %2852 = vrsqrt.f32 %v1788_v50  ;;  %v1700_v4 = vadd.f32 %v1658_v26, %v1139_v39  ;;  %vm1808_vm12 = vweird.f32 %v1788_v50 }
 0x89c   :  { %v1701_v13 = vsub.f32 0.0, %v1700_v4 }
 0x89e   :  { %v1702_v12 = vmul.f32 1.442695, %v1701_v13  ;;  %v1677_v5 = vpop.f32.mrf.mxu3  ;;  %v1697_v11 = vpop.f32.mrf.mxu2 }
 0x89f   :  { %v1678_v29 = vadd.f32 %v1677_v5, %v4805_v22 }
 0x8a0   :  { %v2853_v9 = vpop.eup %2852  ;;  %2854 = vpow2.f32 %v1702_v12  ;;  %v1203_v12 = vadd.f32 %v4064_v52, %v3997_v18  ;;  %v1759_v18 = vmul.f32 %v4118_v28, %v4807_v24 }
 0x8a1   :  { %v1803_v41 = vmul.f32 %v2853_v9, %v1788_v50  ;;  %v1720_v23 = vadd.f32 %v1678_v29, %v1171_v37  ;;  %vm1809_vm11 = vweird.f32 %v2853_v9  ;;  %v1698_v50 = vadd.f32 %v1697_v11, %v3994_v44 }
 0x8a2   :  { %vm1810_vm13 = vmor %vm1808_vm12, %vm1809_vm11 }
 0x8a3   :  { %v1804_v25 = vmul.f32 %v2853_v9, %v1803_v41  ;;  %v1721_v40 = vsub.f32 0.0, %v1720_v23 }
 0x8a5   :  { %v1805_v36 = vmul.f32 0.5, %v1804_v25  ;;  %v1722_v38 = vmul.f32 1.442695, %v1721_v40 }
 0x8a6   :  { %v2855_v0 = vpop.eup %2854 }
 0x8a7   :  { %v1806_v59 = vsub.f32 1.5, %v1805_v36  ;;  %v1704_v17 = vadd.f32 1.0, %v2855_v0  ;;  %2856 = vpow2.f32 %v1722_v38 }
 0x8a9   :  { %v1807_v43 = vmul.f32 %v2853_v9, %v1806_v59  ;;  %2858 = vrcp.f32 %v1704_v17  ;;  %v1716_v54 = vand.u32 2147483648, %v1704_v17  ;;  %v1714_v21 = vand.u32 2147483647, %v1704_v17 }
 0x8aa   :  { %vm1710_vm15 = vweird.f32 %v1704_v17 }
 0x8ab   :  { %v1811_v62 = vsel %vm1810_vm13, %v2853_v9, %v1807_v43  ;;  %v1717_v31 = vor.u32 1.1754944e-38, %v1716_v54  ;;  %vm1715_vm1 = vcmp.eq.f32.partialorder %v1714_v21, 8.507059e+37  ;;  %v4263_v54 = vld [vmem:[#allocation4 + $0x470] sm:$0xff] }
 0x8ac   :  { %v1843_v57 = vmul.f32 %v1811_v62, %v1763_v8  ;;  %2104 = vmatpush.msra.mxu0 %v4263_v54  ;;  %2211 = vmatpush.msrb.mxu2 %v4263_v54 }
 0x8ad   :  { %v2857_v22 = vpop.eup %2856  ;;  %2318 = vmatpush.msrb.mxu3 %v4263_v54 }
 0x8ae   :  { %v1724_v49 = vadd.f32 1.0, %v2857_v22  ;;  %v1853_v16 = vmul.f32 %v4161_v14, %v1843_v57 }
 0x8af   :  { %v2859_v55 = vpop.eup %2858 }
 0x8b0   :  { %2860 = vrcp.f32 %v1724_v49  ;;  %v1706_v20 = vmul.f32 %v2859_v55, %v1704_v17  ;;  %v1863_v7 = vadd.f32 %v4172_v58, %v1853_v16  ;;  %vm1711_vm14 = vweird.f32 %v2859_v55 }
 0x8b1   :  { %vm1712_vm0 = vmor %vm1710_vm15, %vm1711_vm14  ;;  %v1736_v37 = vand.u32 2147483648, %v1724_v49  ;;  %v1734_v9 = vand.u32 2147483647, %v1724_v49  ;;  %vm1730_vm3 = vweird.f32 %v1724_v49  ;;  %v1764_v17 = vsub.f32 %v4107_v6, %v1759_v18  ;;  %v4298_v18 = vld [vmem:[#allocation4 + $0x410] sm:$0xff] }
 0x8b2   :  { %v1707_v30 = vsub.f32 1.0, %v1706_v20  ;;  %v1868_v19 = vmax.f32 %v1863_v7, 0.0 }
 0x8b3   :  { %v1737_v25 = vor.u32 1.1754944e-38, %v1736_v37  ;;  %vm1735_vm5 = vcmp.eq.f32.partialorder %v1734_v9, 8.507059e+37  ;;  %v1769_v43 = vmul.f32 %v1764_v17, %v1764_v17 }
 0x8b4   :  { %v1708_v53 = vmul.f32 %v2859_v55, %v1707_v30  ;;  %2000 = vmatmul.f32.gmra.mxu0 %v1868_v19  ;;  %2032 = vmatmul.f32.gmra.mxu1 %v1868_v19 }
 0x8b5   :  { %2064 = vmatmul.f32.gmra.mxu3 %v1868_v19 }
 0x8b6   :  { %v2861_v8 = vpop.eup %2860  ;;  %v1709_v45 = vadd.f32 %v2859_v55, %v1708_v53 }
 0x8b7   :  { %v1726_v39 = vmul.f32 %v2861_v8, %v1724_v49  ;;  %vm1731_vm2 = vweird.f32 %v2861_v8 }
 0x8b8   :  { %v1713_v26 = vsel %vm1712_vm0, %v2859_v55, %v1709_v45  ;;  %vm1732_vm4 = vmor %vm1730_vm3, %vm1731_vm2 }
 0x8b9   :  { %v1718_v4 = vsel %vm1715_vm1, %v1717_v31, %v1713_v26  ;;  %v1727_v13 = vsub.f32 1.0, %v1726_v39 }
 0x8ba   :  { %v1740_v5 = vmul.f32 %v1718_v4, %v1698_v50 }
 0x8bb   :  { %v1728_v29 = vmul.f32 %v2861_v8, %v1727_v13 }
 0x8bc   :  { %v1741_v41 = vadd.f32 %v1740_v5, %v1203_v12 }
 0x8bd   :  { %v1729_v23 = vadd.f32 %v2861_v8, %v1728_v29 }
 0x8be   :  { %2862 = vtanh.f32 %v1741_v41 }
 0x8bf   :  { %v1733_v40 = vsel %vm1732_vm4, %v2861_v8, %v1729_v23 }
 0x8c0   :  { %v1738_v44 = vsel %vm1735_vm5, %v1737_v25, %v1733_v40  ;;  %v4273_v40 = vld [vmem:[#allocation4 + $0x478] sm:$0xff] }
 0x8c1   :  { %v1743_v36 = vsub.f32 1.0, %v1738_v44  ;;  %v1745_v59 = vmul.f32 %v1738_v44, %v4208_v56  ;;  %2124 = vmatpush.msra.mxu1 %v4273_v40  ;;  %v4276_v44 = vld [vmem:[#allocation4 + $0x458] sm:$0xff] }
 0x8c2   :  { %2105 = vmatpush.msra.mxu0 %v4276_v44  ;;  %2212 = vmatpush.msrb.mxu2 %v4276_v44 }
 0x8c3   :  { %2319 = vmatpush.msrb.mxu3 %v4276_v44 }
 0x8c4   :  { %v2863_v38 = vpop.eup %2862 }
 0x8c5   :  { %v1744_v0 = vmul.f32 %v2863_v38, %v1743_v36  ;;  %v4282_v36 = vld [vmem:[#allocation4 + $0x440] sm:$0xff]  ;;  %v4284_v38 = vld [vmem:[#allocation4 + $0x448] sm:$0xff] }
 0x8c6   :  { %2106 = vmatpush.msra.mxu0 %v4282_v36  ;;  %2213 = vmatpush.msrb.mxu2 %v4282_v36 }
 0x8c7   :  { %v1746_v52 = vadd.f32 %v1745_v59, %v1744_v0  ;;  %v4290_v0 = vld [vmem:[#allocation4 + $0x428] sm:$0xff]  ;;  %v4292_v59 = vld [vmem:[#allocation4 + $0x430] sm:$0xff]  ;;  %2320 = vmatpush.msrb.mxu3 %v4282_v36 }
 0x8c8   :  { %2107 = vmatpush.msra.mxu0 %v4290_v0  ;;  %2214 = vmatpush.msrb.mxu2 %v4290_v0 }
 0x8c9   :  { %1755 = vadd.xlane.f32.xlu2 %v1746_v52  ;;  %2321 = vmatpush.msrb.mxu3 %v4290_v0 }
 0x8ca   :  { %2108 = vmatpush.msra.mxu0 %v4298_v18  ;;  %2215 = vmatpush.msrb.mxu2 %v4298_v18 }
 0x8cb   :  { %2322 = vmatpush.msrb.mxu3 %v4298_v18 }
 0x8d1   :  { %1776 = vadd.xlane.f32.xlu2 %v1769_v43  ;;  %v4308_v43 = vld [vmem:[#allocation4 + $0x400] sm:$0xff] }
 0x907   :  { %v1779_v62 = vpop.xlane.xlu0 %1778 }
 0x908   :  { %v1785_v57 = vmul.f32 %v1779_v62, %v4807_v24  ;;  %v4314_v62 = vld [vmem:[#allocation4 + $0x3e0] sm:$0xff] }
 0x90a   :  { %v1790_v22 = vadd.f32 1e-05, %v1785_v57  ;;  %v4316_v57 = vld [vmem:[#allocation4 + $0x3c8] sm:$0xff] }
 0x90c   :  { %2864 = vrsqrt.f32 %v1790_v22  ;;  %vm1828_vm8 = vweird.f32 %v1790_v22 }
 0x912   :  { %v2865_v28 = vpop.eup %2864 }
 0x913   :  { %v1823_v7 = vmul.f32 %v2865_v28, %v1790_v22  ;;  %vm1829_vm6 = vweird.f32 %v2865_v28  ;;  %v4321_v22 = vld [vmem:[#allocation4 + $0x3e8] sm:$0xff] }
 0x914   :  { %vm1830_vm9 = vmor %vm1828_vm8, %vm1829_vm6 }
 0x915   :  { %v1824_v19 = vmul.f32 %v2865_v28, %v1823_v7  ;;  %v4346_v7 = vld [vmem:[#allocation4 + $0x388] sm:$0xff] }
 0x917   :  { %v1825_v53 = vmul.f32 0.5, %v1824_v19  ;;  %v4354_v19 = vld [vmem:[#allocation4 + $0x370] sm:$0xff] }
 0x919   :  { %v1826_v8 = vsub.f32 1.5, %v1825_v53 }
 0x91b   :  { %v1827_v39 = vmul.f32 %v2865_v28, %v1826_v8  ;;  %v4363_v8 = vld [vmem:[#allocation4 + $0x358] sm:$0xff] }
 0x91d   :  { %v1831_v4 = vsel %vm1830_vm9, %v2865_v28, %v1827_v39  ;;  %v4333_v28 = vld [vmem:[#allocation4 + $0x398] sm:$0xff]  ;;  %v4371_v39 = vld [vmem:[#allocation4 + $0x340] sm:$0xff] }
 0x91e   :  { %v1845_v37 = vmul.f32 %v1831_v4, %v4236_v47  ;;  %v4278_v47 = vld [vmem:[#allocation4 + $0x460] sm:$0xff]  ;;  %v4383_v4 = vld [vmem:[#allocation4 + $0x308] sm:$0xff] }
 0x91f   :  { %2125 = vmatpush.msra.mxu1 %v4278_v47 }
 0x920   :  { %v1855_v41 = vmul.f32 %v4161_v14, %v1845_v37 }
 0x921   :  { %2126 = vmatpush.msra.mxu1 %v4284_v38 }
 0x922   :  { %v1865_v23 = vadd.f32 %v4172_v58, %v1855_v41 }
 0x923   :  { %2127 = vmatpush.msra.mxu1 %v4292_v59 }
 0x924   :  { %v1870_v25 = vmax.f32 %v1865_v23, 0.0 }
 0x93c   :  { %v1756_v49 = vpop.xlane.xlu2 %1755 }
 0x93d   :  { %v1761_v16 = vmul.f32 %v1756_v49, %v4807_v24  ;;  %v4323_v49 = vld [vmem:[#allocation4 + $0x3d0] sm:$0xff] }
 0x93f   :  { %v4258_v55 = vsub.f32 %v1746_v52, %v1761_v16  ;;  %v4300_v52 = vld [vmem:[#allocation4 + $0x418] sm:$0xff]  ;;  %v4325_v16 = vld [vmem:[#allocation4 + $0x3b0] sm:$0xff] }
 0x940   :  { %2128 = vmatpush.msra.mxu1 %v4300_v52 }
 0x941   :  { %v1771_v56 = vmul.f32 %v4258_v55, %v4258_v55 }
 0x942   :  { %2129 = vmatpush.msra.mxu1 %v4308_v43 }
 0x943   :  { %1780 = vadd.xlane.f32.xlu1 %v1771_v56  ;;  %v4330_v56 = vld [vmem:[#allocation4 + $0x3b8] sm:$0xff] }
 0x944   :  { %v1777_v20 = vpop.xlane.xlu2 %1776  ;;  %2130 = vmatpush.msra.mxu1 %v4321_v22 }
 0x945   :  { %v1784_v6 = vmul.f32 %v1777_v20, %v4807_v24  ;;  %v4338_v20 = vld [vmem:[#allocation4 + $0x3a0] sm:$0xff] }
 0x946   :  { %2131 = vmatpush.msra.mxu1 %v4323_v49 }
 0x947   :  { %v1789_v30 = vadd.f32 1e-05, %v1784_v6  ;;  %v4341_v6 = vld [vmem:[#allocation4 + $0x380] sm:$0xff] }
 0x948   :  { %2132 = vmatpush.msra.mxu1 %v4330_v56 }
 0x949   :  { %2866 = vrsqrt.f32 %v1789_v30  ;;  %vm1818_vm10 = vweird.f32 %v1789_v30 }
 0x94a   :  { %2133 = vmatpush.msra.mxu1 %v4338_v20 }
 0x94c   :  { %2134 = vmatpush.msra.mxu1 %v4346_v7 }
 0x94e   :  { %2135 = vmatpush.msra.mxu1 %v4354_v19 }
 0x94f   :  { %v2867_v21 = vpop.eup %2866 }
 0x950   :  { %v1813_v11 = vmul.f32 %v2867_v21, %v1789_v30  ;;  %vm1819_vm7 = vweird.f32 %v2867_v21  ;;  %v4350_v30 = vld [vmem:[#allocation4 + $0x368] sm:$0xff]  ;;  %2136 = vmatpush.msra.mxu1 %v4363_v8 }
 0x951   :  { %vm1820_vm11 = vmor %vm1818_vm10, %vm1819_vm7 }
 0x952   :  { %v1814_v45 = vmul.f32 %v2867_v21, %v1813_v11  ;;  %2137 = vmatpush.msra.mxu1 %v4371_v39 }
 0x954   :  { %v1815_v31 = vmul.f32 0.5, %v1814_v45  ;;  %v4367_v45 = vld [vmem:[#allocation4 + $0x338] sm:$0xff] }
 0x956   :  { %v1816_v50 = vsub.f32 1.5, %v1815_v31 }
 0x958   :  { %v1817_v26 = vmul.f32 %v2867_v21, %v1816_v50  ;;  %v4375_v50 = vld [vmem:[#allocation4 + $0x320] sm:$0xff] }
 0x95a   :  { %v1821_v13 = vsel %vm1820_vm11, %v2867_v21, %v1817_v26  ;;  %v4358_v21 = vld [vmem:[#allocation4 + $0x350] sm:$0xff]  ;;  %v4379_v26 = vld [vmem:[#allocation4 + $0x328] sm:$0xff] }
 0x95b   :  { %v1844_v12 = vmul.f32 %v1821_v13, %v1764_v17  ;;  %v4306_v17 = vld [vmem:[#allocation4 + $0x3f8] sm:$0xff]  ;;  %v4387_v13 = vld [vmem:[#allocation4 + $0x310] sm:$0xff]  ;;  %2138 = vmatpush.msra.mxu1 %v4379_v26 }
 0x95c   :  { %2109 = vmatpush.msra.mxu0 %v4306_v17  ;;  %2216 = vmatpush.msrb.mxu2 %v4306_v17 }
 0x95d   :  { %v1854_v5 = vmul.f32 %v4161_v14, %v1844_v12  ;;  %2323 = vmatpush.msrb.mxu3 %v4306_v17  ;;  %2139 = vmatpush.msra.mxu1 %v4387_v13 }
 0x95e   :  { %2110 = vmatpush.msra.mxu0 %v4314_v62  ;;  %2217 = vmatpush.msrb.mxu2 %v4314_v62 }
 0x95f   :  { %v1864_v29 = vadd.f32 %v4172_v58, %v1854_v5  ;;  %2324 = vmatpush.msrb.mxu3 %v4314_v62  ;;  %2298 = vmatpush.msrb.mxu1 %v4123_v46 }
 0x960   :  { %2111 = vmatpush.msra.mxu0 %v4316_v57  ;;  %2218 = vmatpush.msrb.mxu2 %v4316_v57 }
 0x961   :  { %v1869_v9 = vmax.f32 %v1864_v29, 0.0  ;;  %2325 = vmatpush.msrb.mxu3 %v4316_v57  ;;  %2299 = vmatpush.msrb.mxu1 %v4127_v32 }
 0x962   :  { %2112 = vmatpush.msra.mxu0 %v4325_v16  ;;  %2219 = vmatpush.msrb.mxu2 %v4325_v16 }
 0x963   :  { %2003 = vmatmul.f32.gmra.mxu0 %v1869_v9  ;;  %2035 = vmatmul.f32.gmra.mxu1 %v1869_v9 }
 0x964   :  { %2067 = vmatmul.f32.gmra.mxu3 %v1869_v9  ;;  %2113 = vmatpush.msra.mxu0 %v4333_v28 }
 0x965   :  { %2326 = vmatpush.msrb.mxu3 %v4325_v16  ;;  %2220 = vmatpush.msrb.mxu2 %v4333_v28 }
 0x966   :  { %2114 = vmatpush.msra.mxu0 %v4341_v6  ;;  %2300 = vmatpush.msrb.mxu1 %v4130_v3 }
 0x967   :  { %2327 = vmatpush.msrb.mxu3 %v4333_v28  ;;  %2221 = vmatpush.msrb.mxu2 %v4341_v6 }
 0x968   :  { %2115 = vmatpush.msra.mxu0 %v4350_v30  ;;  %2301 = vmatpush.msrb.mxu1 %v4139_v27 }
 0x969   :  { %2328 = vmatpush.msrb.mxu3 %v4341_v6  ;;  %2222 = vmatpush.msrb.mxu2 %v4350_v30 }
 0x96a   :  { %2116 = vmatpush.msra.mxu0 %v4358_v21  ;;  %2302 = vmatpush.msrb.mxu1 %v4143_v51 }
 0x96b   :  { %2006 = vmatmul.f32.gmra.mxu0 %v1870_v25  ;;  %2038 = vmatmul.f32.gmra.mxu1 %v1870_v25 }
 0x96c   :  { %2070 = vmatmul.f32.gmra.mxu3 %v1870_v25  ;;  %2223 = vmatpush.msrb.mxu2 %v4358_v21 }
 0x96d   :  { %2329 = vmatpush.msrb.mxu3 %v4350_v30  ;;  %2117 = vmatpush.msra.mxu0 %v4367_v45 }
 0x96e   :  { %2224 = vmatpush.msrb.mxu2 %v4367_v45  ;;  %2303 = vmatpush.msrb.mxu1 %v4146_v34 }
 0x96f   :  { %2330 = vmatpush.msrb.mxu3 %v4358_v21  ;;  %2118 = vmatpush.msra.mxu0 %v4375_v50 }
 0x970   :  { %2225 = vmatpush.msrb.mxu2 %v4375_v50  ;;  %2304 = vmatpush.msrb.mxu1 %v4148_v63 }
 0x971   :  { %2331 = vmatpush.msrb.mxu3 %v4367_v45  ;;  %2119 = vmatpush.msra.mxu0 %v4383_v4 }
 0x972   :  { %2226 = vmatpush.msrb.mxu2 %v4383_v4  ;;  %2305 = vmatpush.msrb.mxu1 %v4151_v15 }
 0x973   :  { %2332 = vmatpush.msrb.mxu3 %v4375_v50  ;;  %2231 = vmatpush.msrb.mxu0 %v4273_v40 }
 0x974   :  { %2338 = vmatpush.msra.mxu2 %v4273_v40  ;;  %2306 = vmatpush.msrb.mxu1 %v4154_v2 }
 0x975   :  { %2232 = vmatpush.msrb.mxu0 %v4278_v47  ;;  %2333 = vmatpush.msrb.mxu3 %v4383_v4 }
 0x976   :  { %2339 = vmatpush.msra.mxu2 %v4278_v47  ;;  %2307 = vmatpush.msrb.mxu1 %v4163_v61 }
 0x977   :  { %2233 = vmatpush.msrb.mxu0 %v4284_v38 }
 0x978   :  { %2340 = vmatpush.msra.mxu2 %v4284_v38  ;;  %2308 = vmatpush.msrb.mxu1 %v4167_v60 }
 0x979   :  { %2234 = vmatpush.msrb.mxu0 %v4292_v59 }
 0x97a   :  { %2341 = vmatpush.msra.mxu2 %v4292_v59  ;;  %2309 = vmatpush.msrb.mxu1 %v4178_v33 }
 0x97b   :  { %2235 = vmatpush.msrb.mxu0 %v4300_v52 }
 0x97c   :  { %2342 = vmatpush.msra.mxu2 %v4300_v52  ;;  %2310 = vmatpush.msrb.mxu1 %v4182_v42 }
 0x97d   :  { %2236 = vmatpush.msrb.mxu0 %v4308_v43 }
 0x97e   :  { %2343 = vmatpush.msra.mxu2 %v4308_v43  ;;  %2311 = vmatpush.msrb.mxu1 %v4186_v48 }
 0x97f   :  { %2237 = vmatpush.msrb.mxu0 %v4321_v22 }
 0x980   :  { %2344 = vmatpush.msra.mxu2 %v4321_v22  ;;  %2312 = vmatpush.msrb.mxu1 %v4191_v10 }
 0x981   :  { %2238 = vmatpush.msrb.mxu0 %v4323_v49 }
 0x982   :  { %2345 = vmatpush.msra.mxu2 %v4323_v49  ;;  %2313 = vmatpush.msrb.mxu1 %v4195_v1 }
 0x983   :  { %2239 = vmatpush.msrb.mxu0 %v4330_v56 }
 0x984   :  { %2346 = vmatpush.msra.mxu2 %v4330_v56 }
 0x985   :  { %2240 = vmatpush.msrb.mxu0 %v4338_v20 }
 0x986   :  { %2347 = vmatpush.msra.mxu2 %v4338_v20 }
 0x987   :  { %2241 = vmatpush.msrb.mxu0 %v4346_v7 }
 0x988   :  { %2348 = vmatpush.msra.mxu2 %v4346_v7 }
 0x989   :  { %2242 = vmatpush.msrb.mxu0 %v4354_v19 }
 0x98a   :  { %2349 = vmatpush.msra.mxu2 %v4354_v19 }
 0x98b   :  { %2243 = vmatpush.msrb.mxu0 %v4363_v8 }
 0x98c   :  { %2350 = vmatpush.msra.mxu2 %v4363_v8 }
 0x98d   :  { %2244 = vmatpush.msrb.mxu0 %v4371_v39 }
 0x98e   :  { %2351 = vmatpush.msra.mxu2 %v4371_v39 }
 0x98f   :  { %2245 = vmatpush.msrb.mxu0 %v4379_v26 }
 0x990   :  { %2352 = vmatpush.msra.mxu2 %v4379_v26 }
 0x991   :  { %2246 = vmatpush.msrb.mxu0 %v4387_v13 }
 0x992   :  { %2353 = vmatpush.msra.mxu2 %v4387_v13 }
 0x9b6   :  { %v1781_v53 = vpop.xlane.xlu1 %1780 }
 0x9b7   :  { %v1786_v11 = vmul.f32 %v1781_v53, %v4807_v24 }
 0x9b9   :  { %v1791_v31 = vadd.f32 1e-05, %v1786_v11 }
 0x9bb   :  { %2868 = vrsqrt.f32 %v1791_v31  ;;  %vm1838_vm13 = vweird.f32 %v1791_v31 }
 0x9c1   :  { %v2869_v12 = vpop.eup %2868 }
 0x9c2   :  { %v1833_v5 = vmul.f32 %v2869_v12, %v1791_v31  ;;  %vm1839_vm12 = vweird.f32 %v2869_v12 }
 0x9c3   :  { %vm1840_vm14 = vmor %vm1838_vm13, %vm1839_vm12 }
 0x9c4   :  { %v1834_v37 = vmul.f32 %v2869_v12, %v1833_v5 }
 0x9c6   :  { %v1835_v29 = vmul.f32 0.5, %v1834_v37 }
 0x9c8   :  { %v1836_v9 = vsub.f32 1.5, %v1835_v29 }
 0x9ca   :  { %v1837_v41 = vmul.f32 %v2869_v12, %v1836_v9 }
 0x9cc   :  { %v1841_v23 = vsel %vm1840_vm14, %v2869_v12, %v1837_v41 }
 0x9cd   :  { %v1846_v25 = vmul.f32 %v1841_v23, %v4258_v55 }
 0x9cf   :  { %v1856_v53 = vmul.f32 %v4161_v14, %v1846_v25 }
 0x9d1   :  { %v1866_v11 = vadd.f32 %v4172_v58, %v1856_v53 }
 0x9d3   :  { %v1871_v55 = vmax.f32 %v1866_v11, 0.0 }
 0x9d5   :  { %2009 = vmatmul.f32.gmra.mxu0 %v1871_v55  ;;  %2041 = vmatmul.f32.gmra.mxu1 %v1871_v55 }
 0x9d6   :  { %2073 = vmatmul.f32.gmra.mxu3 %v1871_v55 }
 0x9dd   :  { %2120 = vmatmul.f32.vlgmr.msra.gmra.mxu0 %v4809_v35  ;;  %2140 = vmatmul.f32.vlgmr.msra.gmra.mxu1 %v4809_v35 }
 0x9de   :  { %2405 = vmatpush.msra.mxu0 %v4123_v46  ;;  %2425 = vmatpush.msra.mxu1 %v4263_v54  ;;  %v2731_v46 = vld [vmem:[%s4691_s6 + $0x6] sm:$0x7] }
 0x9df   :  { %v4510_v37 = vperm.slane %v2731_v46, 1 }
 0x9e0   :  { %2406 = vmatpush.msra.mxu0 %v4127_v32  ;;  %2426 = vmatpush.msra.mxu1 %v4276_v44  ;;  %v1998_v32 = vpop.f32.mrf.mxu0 }
 0x9e2   :  { %2407 = vmatpush.msra.mxu0 %v4130_v3  ;;  %2427 = vmatpush.msra.mxu1 %v4282_v36  ;;  %v2730_v3 = vld [vmem:[%s4690_s5 + $0x6] sm:$0x7] }
 0x9e3   :  { %v4506_v12 = vperm.slane %v2730_v3, 1 }
 0x9e4   :  { %2408 = vmatpush.msra.mxu0 %v4139_v27  ;;  %2428 = vmatpush.msra.mxu1 %v4290_v0  ;;  %v4488_v27 = vperm.slane %v2731_v46, 0 }
 0x9e6   :  { %2409 = vmatpush.msra.mxu0 %v4143_v51  ;;  %2429 = vmatpush.msra.mxu1 %v4298_v18  ;;  %v2101_v51 = vpop.f32.mrf.mxu2 }
 0x9e8   :  { %2410 = vmatpush.msra.mxu0 %v4146_v34  ;;  %2430 = vmatpush.msra.mxu1 %v4306_v17  ;;  %v4490_v34 = vperm.slane %v2730_v3, 0 }
 0x9ea   :  { %2411 = vmatpush.msra.mxu0 %v4148_v63  ;;  %2431 = vmatpush.msra.mxu1 %v4314_v62  ;;  %v2102_v63 = vadd.f32 %v2101_v51, %v4488_v27 }
 0x9ec   :  { %2412 = vmatpush.msra.mxu0 %v4151_v15  ;;  %2432 = vmatpush.msra.mxu1 %v4316_v57  ;;  %v1999_v15 = vadd.f32 %v1998_v32, %v4490_v34 }
 0x9ee   :  { %2413 = vmatpush.msra.mxu0 %v4154_v2  ;;  %2433 = vmatpush.msra.mxu1 %v4325_v16  ;;  %v4494_v2 = vpop.f32.mrf.mxu0  ;;  %v2144_v14 = vadd.f32 %v2102_v63, %v1999_v15  ;;  %v4516_v15 = vperm.slane %v2731_v46, 2 }
 0x9f0   :  { %2414 = vmatpush.msra.mxu0 %v4163_v61  ;;  %2434 = vmatpush.msra.mxu1 %v4333_v28  ;;  %v2030_v61 = vpop.f32.mrf.mxu1 }
 0x9f1   :  { %v2031_v41 = vadd.f32 %v2030_v61, %v4506_v12 }
 0x9f2   :  { %2415 = vmatpush.msra.mxu0 %v4167_v60  ;;  %2435 = vmatpush.msra.mxu1 %v4341_v6  ;;  %v2145_v60 = vsub.f32 0.0, %v2144_v14 }
 0x9f4   :  { %2416 = vmatpush.msra.mxu0 %v4178_v33  ;;  %2436 = vmatpush.msra.mxu1 %v4350_v30  ;;  %v2146_v33 = vmul.f32 1.442695, %v2145_v60 }
 0x9f6   :  { %2417 = vmatpush.msra.mxu0 %v4182_v42  ;;  %2437 = vmatpush.msra.mxu1 %v4358_v21  ;;  %v4496_v58 = vpop.f32.mrf.mxu0  ;;  %2870 = vpow2.f32 %v2146_v33 }
 0x9f8   :  { %2418 = vmatpush.msra.mxu0 %v4186_v48  ;;  %2438 = vmatpush.msra.mxu1 %v4367_v45  ;;  %v4498_v42 = vpop.f32.mrf.mxu1 }
 0x9fa   :  { %2419 = vmatpush.msra.mxu0 %v4191_v10  ;;  %2439 = vmatpush.msra.mxu1 %v4375_v50 }
 0x9fc   :  { %2420 = vmatpush.msra.mxu0 %v4195_v1  ;;  %2440 = vmatpush.msra.mxu1 %v4383_v4  ;;  %v2871_v10 = vpop.eup %2870 }
 0x9fd   :  { %v2148_v35 = vadd.f32 1.0, %v2871_v10 }
 0x9fe   :  { %v4500_v48 = vpop.f32.mrf.mxu0 }
 0x9ff   :  { %2872 = vrcp.f32 %v2148_v35  ;;  %v2160_v10 = vand.u32 2147483648, %v2148_v35  ;;  %vm2154_vm0 = vweird.f32 %v2148_v35  ;;  %v2158_v61 = vand.u32 2147483647, %v2148_v35 }
 0xa00   :  { %v4502_v1 = vpop.f32.mrf.mxu1 }
 0xa01   :  { %vm2159_vm2 = vcmp.eq.f32.partialorder %v2158_v61, 8.507059e+37 }
 0xa05   :  { %v2873_v29 = vpop.eup %2872 }
 0xa06   :  { %v2150_v25 = vmul.f32 %v2873_v29, %v2148_v35  ;;  %vm2155_vm15 = vweird.f32 %v2873_v29 }
 0xa07   :  { %vm2156_vm1 = vmor %vm2154_vm0, %vm2155_vm15 }
 0xa08   :  { %v4508_v5 = vpop.f32.mrf.mxu1  ;;  %v2151_v32 = vsub.f32 1.0, %v2150_v25  ;;  %v4519_v25 = vperm.slane %v2730_v3, 2 }
 0xa09   :  { %4812 = vst [vmem:[#allocation25_spill] sm:$0xff] %v4508_v5 }
 0xa0a   :  { %v2152_v63 = vmul.f32 %v2873_v29, %v2151_v32 }
 0xa0c   :  { %v2153_v14 = vadd.f32 %v2873_v29, %v2152_v63 }
 0xa52   :  { %v4504_v31 = vpop.f32.mrf.mxu0  ;;  %v4514_v11 = vpop.f32.mrf.mxu1 }
 0xa53   :  { %4811 = vst [vmem:[#allocation24_spill] sm:$0xff] %v4504_v31 }
 0xa54   :  { %4813 = vst [vmem:[#allocation26_spill] sm:$0xff] %v4514_v11 }
 0xa5a   :  { %v2121_v9 = vpop.f32.mrf.mxu0  ;;  %v2141_v33 = vpop.f32.mrf.mxu1 }
 0xa5b   :  { %v2122_v23 = vadd.f32 %v2121_v9, %v4510_v37  ;;  %v2142_v9 = vadd.f32 %v2141_v33, %v4516_v15 }
 0xa5d   :  { %v2164_v53 = vadd.f32 %v2122_v23, %v2031_v41  ;;  %v2157_v41 = vsel %vm2156_vm1, %v2873_v29, %v2153_v14  ;;  %v2161_v23 = vor.u32 1.1754944e-38, %v2160_v10 }
 0xa5f   :  { %v2165_v55 = vsub.f32 0.0, %v2164_v53  ;;  %v2062_v53 = vpop.f32.mrf.mxu3  ;;  %v2162_v46 = vsel %vm2159_vm2, %v2161_v23, %v2157_v41 }
 0xa61   :  { %v2166_v51 = vmul.f32 1.442695, %v2165_v55  ;;  %v2184_v55 = vmul.f32 %v2162_v46, %v2142_v9 }
 0xa63   :  { %2874 = vpow2.f32 %v2166_v51  ;;  %v2063_v51 = vadd.f32 %v2062_v53, %v4519_v25 }
 0xa65   :  { %v2185_v31 = vadd.f32 %v2184_v55, %v2063_v51  ;;  %v2002_v51 = vadd.f32 %v4494_v2, %v4490_v34 }
 0xa67   :  { %v2065_v53 = vpop.f32.mrf.mxu3 }
 0xa69   :  { %v2875_v60 = vpop.eup %2874 }
 0xa6a   :  { %v2168_v24 = vadd.f32 1.0, %v2875_v60 }
 0xa6c   :  { %2876 = vrcp.f32 %v2168_v24  ;;  %v2180_v11 = vand.u32 2147483648, %v2168_v24  ;;  %v2178_v5 = vand.u32 2147483647, %v2168_v24  ;;  %vm2174_vm4 = vweird.f32 %v2168_v24 }
 0xa6d   :  { %2878 = vtanh.f32 %v2185_v31  ;;  %v2927_v31 = vld [vmem:[#allocation4 + $0x450] sm:$0xff] }
 0xa6e   :  { %v2181_v3 = vor.u32 1.1754944e-38, %v2180_v11  ;;  %vm2179_vm6 = vcmp.eq.f32.partialorder %v2178_v5, 8.507059e+37  ;;  %v2928_v5 = vld [vmem:[#allocation4 + $0x438] sm:$0xff]  ;;  %v2929_v11 = vld [vmem:[#allocation4 + $0x420] sm:$0xff] }
 0xa72   :  { %v2877_v32 = vpop.eup %2876 }
 0xa73   :  { %v2170_v63 = vmul.f32 %v2877_v32, %v2168_v24  ;;  %vm2175_vm3 = vweird.f32 %v2877_v32  ;;  %v2879_v61 = vpop.eup %2878  ;;  %v2926_v24 = vld [vmem:[#allocation4 + $0x468] sm:$0xff] }
 0xa74   :  { %vm2176_vm5 = vmor %vm2174_vm4, %vm2175_vm3 }
 0xa75   :  { %v2171_v60 = vsub.f32 1.0, %v2170_v63 }
 0xa77   :  { %v2172_v35 = vmul.f32 %v2877_v32, %v2171_v60 }
 0xa79   :  { %v2173_v33 = vadd.f32 %v2877_v32, %v2172_v35 }
 0xa7b   :  { %v2177_v29 = vsel %vm2176_vm5, %v2877_v32, %v2173_v33 }
 0xa7c   :  { %v2182_v14 = vsel %vm2179_vm6, %v2181_v3, %v2177_v29 }
 0xa7d   :  { %v2187_v10 = vsub.f32 1.0, %v2182_v14  ;;  %v2189_v41 = vmul.f32 0.0, %v2182_v14 }
 0xa7f   :  { %v2188_v9 = vmul.f32 %v2879_v61, %v2187_v10 }
 0xa81   :  { %v4522_v23 = vadd.f32 %v2189_v41, %v2188_v9 }
 0xa83   :  { %2207 = vmatmul.f32.vlgmr.msra.gmra.mxu3 %v4522_v23  ;;  %2227 = vmatmul.f32.vlgmr.msrb.gmra.mxu2 %v4522_v23 }
 0xa84   :  { %2247 = vmatmul.f32.vlgmr.msrb.gmra.mxu0 %v4522_v23  ;;  %2445 = vmatpush.msra.mxu3 %v4273_v40 }
 0xa85   :  { %2512 = vmatpush.msrb.mxu2 %v2926_v24  ;;  %2532 = vmatpush.msrb.mxu0 %v4263_v54  ;;  %v2930_v54 = vld [vmem:[#allocation4 + $0x408] sm:$0xff] }
 0xa86   :  { %2446 = vmatpush.msra.mxu3 %v4278_v47 }
 0xa87   :  { %2513 = vmatpush.msrb.mxu2 %v2927_v31  ;;  %2533 = vmatpush.msrb.mxu0 %v4276_v44  ;;  %v2931_v44 = vld [vmem:[#allocation4 + $0x3f0] sm:$0xff] }
 0xa88   :  { %2447 = vmatpush.msra.mxu3 %v4284_v38 }
 0xa89   :  { %2514 = vmatpush.msrb.mxu2 %v2928_v5  ;;  %2534 = vmatpush.msrb.mxu0 %v4282_v36  ;;  %v2932_v36 = vld [vmem:[#allocation4 + $0x3d8] sm:$0xff] }
 0xa8a   :  { %2448 = vmatpush.msra.mxu3 %v4292_v59 }
 0xa8b   :  { %2515 = vmatpush.msrb.mxu2 %v2929_v11  ;;  %2535 = vmatpush.msrb.mxu0 %v4290_v0  ;;  %v2933_v0 = vld [vmem:[#allocation4 + $0x3c0] sm:$0xff] }
 0xa8c   :  { %2449 = vmatpush.msra.mxu3 %v4300_v52 }
 0xa8d   :  { %2516 = vmatpush.msrb.mxu2 %v2930_v54  ;;  %2536 = vmatpush.msrb.mxu0 %v4298_v18  ;;  %v2934_v18 = vld [vmem:[#allocation4 + $0x3a8] sm:$0xff] }
 0xa8e   :  { %2450 = vmatpush.msra.mxu3 %v4308_v43 }
 0xa8f   :  { %2517 = vmatpush.msrb.mxu2 %v2931_v44  ;;  %2537 = vmatpush.msrb.mxu0 %v4306_v17  ;;  %v2935_v17 = vld [vmem:[#allocation4 + $0x390] sm:$0xff] }
 0xa90   :  { %2451 = vmatpush.msra.mxu3 %v4321_v22 }
 0xa91   :  { %2518 = vmatpush.msrb.mxu2 %v2932_v36  ;;  %2538 = vmatpush.msrb.mxu0 %v4314_v62  ;;  %v2936_v62 = vld [vmem:[#allocation4 + $0x378] sm:$0xff] }
 0xa92   :  { %2452 = vmatpush.msra.mxu3 %v4323_v49 }
 0xa93   :  { %2519 = vmatpush.msrb.mxu2 %v2933_v0  ;;  %2539 = vmatpush.msrb.mxu0 %v4316_v57  ;;  %v2937_v57 = vld [vmem:[#allocation4 + $0x360] sm:$0xff] }
 0xa94   :  { %2453 = vmatpush.msra.mxu3 %v4330_v56 }
 0xa95   :  { %2520 = vmatpush.msrb.mxu2 %v2934_v18  ;;  %2540 = vmatpush.msrb.mxu0 %v4325_v16  ;;  %v2938_v16 = vld [vmem:[#allocation4 + $0x348] sm:$0xff] }
 0xa96   :  { %2454 = vmatpush.msra.mxu3 %v4338_v20 }
 0xa97   :  { %2521 = vmatpush.msrb.mxu2 %v2935_v17  ;;  %2541 = vmatpush.msrb.mxu0 %v4333_v28  ;;  %v2939_v28 = vld [vmem:[#allocation4 + $0x330] sm:$0xff] }
 0xa98   :  { %2455 = vmatpush.msra.mxu3 %v4346_v7 }
 0xa99   :  { %2522 = vmatpush.msrb.mxu2 %v2936_v62  ;;  %2542 = vmatpush.msrb.mxu0 %v4341_v6  ;;  %v2940_v6 = vld [vmem:[#allocation4 + $0x318] sm:$0xff] }
 0xa9a   :  { %2456 = vmatpush.msra.mxu3 %v4354_v19 }
 0xa9b   :  { %2523 = vmatpush.msrb.mxu2 %v2937_v57  ;;  %2543 = vmatpush.msrb.mxu0 %v4350_v30  ;;  %v2941_v30 = vld [vmem:[#allocation4 + $0x300] sm:$0xff] }
 0xa9c   :  { %2457 = vmatpush.msra.mxu3 %v4363_v8 }
 0xa9d   :  { %2524 = vmatpush.msrb.mxu2 %v2938_v16  ;;  %2544 = vmatpush.msrb.mxu0 %v4358_v21  ;;  %v4559_v21 = vpop.f32.mrf.mxu3 }
 0xa9e   :  { %2458 = vmatpush.msra.mxu3 %v4371_v39 }
 0xa9f   :  { %2525 = vmatpush.msrb.mxu2 %v2939_v28  ;;  %2545 = vmatpush.msrb.mxu0 %v4367_v45 }
 0xaa0   :  { %2459 = vmatpush.msra.mxu3 %v4379_v26 }
 0xaa1   :  { %2526 = vmatpush.msrb.mxu2 %v2940_v6  ;;  %2546 = vmatpush.msrb.mxu0 %v4375_v50  ;;  %v2034_v50 = vadd.f32 %v4498_v42, %v4506_v12 }
 0xaa2   :  { %2460 = vmatpush.msra.mxu3 %v4387_v13 }
 0xaa3   :  { %2527 = vmatpush.msrb.mxu2 %v2941_v30  ;;  %2547 = vmatpush.msrb.mxu0 %v4383_v4  ;;  %v2066_v30 = vadd.f32 %v2065_v53, %v4519_v25 }
 0xaa5   :  { %v4561_v46 = vpop.f32.mrf.mxu3 }
 0xaad   :  { %v4563_v55 = vpop.f32.mrf.mxu3 }
 0xb01   :  { %v2248_v0 = vpop.f32.mrf.mxu0 }
 0xb02   :  { %v2249_v57 = vadd.f32 %v2248_v0, %v4516_v15 }
 0xb06   :  { %v2208_v45 = vpop.f32.mrf.mxu3  ;;  %v2228_v32 = vpop.f32.mrf.mxu2 }
 0xb07   :  { %v2209_v63 = vadd.f32 %v2208_v45, %v4488_v27  ;;  %v2229_v60 = vadd.f32 %v2228_v32, %v4510_v37 }
 0xb09   :  { %v2251_v4 = vadd.f32 %v2209_v63, %v2002_v51  ;;  %v2271_v35 = vadd.f32 %v2229_v60, %v2034_v50 }
 0xb0b   :  { %v2252_v33 = vsub.f32 0.0, %v2251_v4  ;;  %v2272_v3 = vsub.f32 0.0, %v2271_v35 }
 0xb0d   :  { %v2253_v29 = vmul.f32 1.442695, %v2252_v33  ;;  %v2273_v14 = vmul.f32 1.442695, %v2272_v3 }
 0xb0f   :  { %2880 = vpow2.f32 %v2253_v29 }
 0xb10   :  { %2882 = vpow2.f32 %v2273_v14 }
 0xb15   :  { %v2881_v10 = vpop.eup %2880 }
 0xb16   :  { %v2883_v61 = vpop.eup %2882  ;;  %v2255_v9 = vadd.f32 1.0, %v2881_v10 }
 0xb17   :  { %v2275_v41 = vadd.f32 1.0, %v2883_v61 }
 0xb18   :  { %2884 = vrcp.f32 %v2255_v9  ;;  %v2267_v11 = vand.u32 2147483648, %v2255_v9  ;;  %v2265_v36 = vand.u32 2147483647, %v2255_v9  ;;  %vm2261_vm8 = vweird.f32 %v2255_v9 }
 0xb19   :  { %2886 = vrcp.f32 %v2275_v41  ;;  %v2287_v45 = vand.u32 2147483648, %v2275_v41  ;;  %vm2281_vm12 = vweird.f32 %v2275_v41  ;;  %v2285_v51 = vand.u32 2147483647, %v2275_v41 }
 0xb1a   :  { %v2268_v62 = vor.u32 1.1754944e-38, %v2267_v11  ;;  %vm2266_vm10 = vcmp.eq.f32.partialorder %v2265_v36, 8.507059e+37 }
 0xb1b   :  { %v2288_v60 = vor.u32 1.1754944e-38, %v2287_v45  ;;  %vm2286_vm14 = vcmp.eq.f32.partialorder %v2285_v51, 8.507059e+37 }
 0xb1e   :  { %v2885_v2 = vpop.eup %2884 }
 0xb1f   :  { %v2887_v42 = vpop.eup %2886  ;;  %v2257_v24 = vmul.f32 %v2885_v2, %v2255_v9  ;;  %vm2262_vm7 = vweird.f32 %v2885_v2 }
 0xb20   :  { %v2277_v31 = vmul.f32 %v2887_v42, %v2275_v41  ;;  %vm2263_vm9 = vmor %vm2261_vm8, %vm2262_vm7  ;;  %vm2282_vm11 = vweird.f32 %v2887_v42 }
 0xb21   :  { %v2258_v5 = vsub.f32 1.0, %v2257_v24  ;;  %vm2283_vm13 = vmor %vm2281_vm12, %vm2282_vm11 }
 0xb22   :  { %v2278_v54 = vsub.f32 1.0, %v2277_v31 }
 0xb23   :  { %v2259_v44 = vmul.f32 %v2885_v2, %v2258_v5 }
 0xb24   :  { %v2279_v18 = vmul.f32 %v2887_v42, %v2278_v54  ;;  %v2069_v54 = vadd.f32 %v4559_v21, %v4519_v25 }
 0xb25   :  { %v2260_v17 = vadd.f32 %v2885_v2, %v2259_v44 }
 0xb26   :  { %v2280_v6 = vadd.f32 %v2887_v42, %v2279_v18 }
 0xb27   :  { %v2264_v16 = vsel %vm2263_vm9, %v2885_v2, %v2260_v17 }
 0xb28   :  { %v2269_v28 = vsel %vm2266_vm10, %v2268_v62, %v2264_v16  ;;  %v2284_v63 = vsel %vm2283_vm13, %v2887_v42, %v2280_v6 }
 0xb29   :  { %v2291_v32 = vmul.f32 %v2269_v28, %v2249_v57  ;;  %v2289_v4 = vsel %vm2286_vm14, %v2288_v60, %v2284_v63  ;;  %v2008_v60 = vadd.f32 %v4500_v48, %v4490_v34 }
 0xb2a   :  { %v2294_v35 = vsub.f32 1.0, %v2289_v4  ;;  %v2296_v29 = vmul.f32 %v2289_v4, %v4522_v23  ;;  %v4814_v4 = vld [vmem:[#allocation25_spill] sm:$0xff] }
 0xb2b   :  { %v2292_v50 = vadd.f32 %v2291_v32, %v2066_v30 }
 0xb2d   :  { %2888 = vtanh.f32 %v2292_v50 }
 0xb33   :  { %v2889_v33 = vpop.eup %2888 }
 0xb34   :  { %v2295_v3 = vmul.f32 %v2889_v33, %v2294_v35  ;;  %v2040_v35 = vadd.f32 %v4814_v4, %v4506_v12 }
 0xb36   :  { %v4574_v14 = vadd.f32 %v2296_v29, %v2295_v3 }
 0xb38   :  { %2314 = vmatmul.f32.vlgmr.msrb.gmra.mxu1 %v4574_v14  ;;  %2334 = vmatmul.f32.vlgmr.msrb.gmra.mxu3 %v4574_v14 }
 0xb39   :  { %2354 = vmatmul.f32.vlgmr.msra.gmra.mxu2 %v4574_v14  ;;  %2552 = vmatpush.msrb.mxu1 %v4273_v40 }
 0xb3b   :  { %2553 = vmatpush.msrb.mxu1 %v4278_v47  ;;  %v2005_v47 = vadd.f32 %v4496_v58, %v4490_v34 }
 0xb3d   :  { %2554 = vmatpush.msrb.mxu1 %v4284_v38 }
 0xb3f   :  { %2555 = vmatpush.msrb.mxu1 %v4292_v59 }
 0xb41   :  { %2556 = vmatpush.msrb.mxu1 %v4300_v52 }
 0xb43   :  { %2557 = vmatpush.msrb.mxu1 %v4308_v43 }
 0xb45   :  { %2558 = vmatpush.msrb.mxu1 %v4321_v22  ;;  %v2037_v22 = vadd.f32 %v4502_v1, %v4506_v12 }
 0xb47   :  { %2559 = vmatpush.msrb.mxu1 %v4323_v49 }
 0xb49   :  { %2560 = vmatpush.msrb.mxu1 %v4330_v56 }
 0xb4b   :  { %2561 = vmatpush.msrb.mxu1 %v4338_v20 }
 0xb4d   :  { %2562 = vmatpush.msrb.mxu1 %v4346_v7 }
 0xb4f   :  { %2563 = vmatpush.msrb.mxu1 %v4354_v19 }
 0xb51   :  { %2564 = vmatpush.msrb.mxu1 %v4363_v8 }
 0xb53   :  { %2565 = vmatpush.msrb.mxu1 %v4371_v39 }
 0xb55   :  { %2566 = vmatpush.msrb.mxu1 %v4379_v26 }
 0xb57   :  { %2567 = vmatpush.msrb.mxu1 %v4387_v13 }
 0xbb5   :  { %v2315_v40 = vpop.f32.mrf.mxu1 }
 0xbb6   :  { %v2316_v38 = vadd.f32 %v2315_v40, %v4488_v27 }
 0xbb8   :  { %v2358_v59 = vadd.f32 %v2316_v38, %v2005_v47 }
 0xbba   :  { %v2359_v52 = vsub.f32 0.0, %v2358_v59 }
 0xbbb   :  { %v2335_v43 = vpop.f32.mrf.mxu3 }
 0xbbc   :  { %v2360_v49 = vmul.f32 1.442695, %v2359_v52  ;;  %v2336_v56 = vadd.f32 %v2335_v43, %v4510_v37  ;;  %v2355_v41 = vpop.f32.mrf.mxu2 }
 0xbbd   :  { %v2356_v5 = vadd.f32 %v2355_v41, %v4516_v15 }
 0xbbe   :  { %2890 = vpow2.f32 %v2360_v49  ;;  %v2378_v20 = vadd.f32 %v2336_v56, %v2037_v22 }
 0xbc0   :  { %v2379_v7 = vsub.f32 0.0, %v2378_v20 }
 0xbc2   :  { %v2380_v19 = vmul.f32 1.442695, %v2379_v7 }
 0xbc4   :  { %v2891_v8 = vpop.eup %2890  ;;  %2892 = vpow2.f32 %v2380_v19 }
 0xbc5   :  { %v2362_v39 = vadd.f32 1.0, %v2891_v8 }
 0xbc7   :  { %2894 = vrcp.f32 %v2362_v39  ;;  %v2374_v10 = vand.u32 2147483648, %v2362_v39  ;;  %v2372_v1 = vand.u32 2147483647, %v2362_v39  ;;  %vm2368_vm0 = vweird.f32 %v2362_v39 }
 0xbc9   :  { %v2375_v24 = vor.u32 1.1754944e-38, %v2374_v10  ;;  %vm2373_vm2 = vcmp.eq.f32.partialorder %v2372_v1, 8.507059e+37 }
 0xbca   :  { %v2893_v26 = vpop.eup %2892 }
 0xbcb   :  { %v2382_v13 = vadd.f32 1.0, %v2893_v26 }
 0xbcd   :  { %v2895_v58 = vpop.eup %2894  ;;  %2896 = vrcp.f32 %v2382_v13  ;;  %v2394_v0 = vand.u32 2147483648, %v2382_v13  ;;  %v2392_v17 = vand.u32 2147483647, %v2382_v13  ;;  %vm2388_vm4 = vweird.f32 %v2382_v13 }
 0xbce   :  { %v2364_v23 = vmul.f32 %v2895_v58, %v2362_v39  ;;  %vm2369_vm15 = vweird.f32 %v2895_v58 }
 0xbcf   :  { %vm2370_vm1 = vmor %vm2368_vm0, %vm2369_vm15  ;;  %v2395_v16 = vor.u32 1.1754944e-38, %v2394_v0  ;;  %vm2393_vm6 = vcmp.eq.f32.partialorder %v2392_v17, 8.507059e+37 }
 0xbd0   :  { %v2365_v53 = vsub.f32 1.0, %v2364_v23 }
 0xbd2   :  { %v2366_v61 = vmul.f32 %v2895_v58, %v2365_v53 }
 0xbd3   :  { %v2897_v9 = vpop.eup %2896 }
 0xbd4   :  { %v2384_v2 = vmul.f32 %v2897_v9, %v2382_v13  ;;  %v2367_v42 = vadd.f32 %v2895_v58, %v2366_v61  ;;  %vm2389_vm3 = vweird.f32 %v2897_v9 }
 0xbd5   :  { %vm2390_vm5 = vmor %vm2388_vm4, %vm2389_vm3 }
 0xbd6   :  { %v2385_v31 = vsub.f32 1.0, %v2384_v2  ;;  %v2371_v11 = vsel %vm2370_vm1, %v2895_v58, %v2367_v42  ;;  %v2072_v2 = vadd.f32 %v4561_v46, %v4519_v25 }
 0xbd7   :  { %v2376_v44 = vsel %vm2373_vm2, %v2375_v24, %v2371_v11 }
 0xbd8   :  { %v2386_v36 = vmul.f32 %v2897_v9, %v2385_v31  ;;  %v2398_v18 = vmul.f32 %v2376_v44, %v2356_v5 }
 0xbda   :  { %v2387_v62 = vadd.f32 %v2897_v9, %v2386_v36  ;;  %v2399_v57 = vadd.f32 %v2398_v18, %v2069_v54 }
 0xbdc   :  { %v2391_v28 = vsel %vm2390_vm5, %v2897_v9, %v2387_v62  ;;  %2898 = vtanh.f32 %v2399_v57  ;;  %v4815_v57 = vld [vmem:[#allocation26_spill] sm:$0xff] }
 0xbdd   :  { %v2396_v6 = vsel %vm2393_vm6, %v2395_v16, %v2391_v28  ;;  %v2043_v16 = vadd.f32 %v4815_v57, %v4506_v12  ;;  %v2655_v57 = vld [vmem:[%s4694_s9 + $0x18] sm:$0xff] }
 0xbde   :  { %v2401_v30 = vsub.f32 1.0, %v2396_v6  ;;  %v2403_v21 = vmul.f32 %v2396_v6, %v4574_v14 }
 0xbe2   :  { %v2899_v45 = vpop.eup %2898 }
 0xbe3   :  { %v2402_v32 = vmul.f32 %v2899_v45, %v2401_v30 }
 0xbe5   :  { %v2404_v51 = vadd.f32 %v2403_v21, %v2402_v32  ;;  %v4816_v32 = vld [vmem:[#allocation24_spill] sm:$0xff] }
 0xbe6   :  { %v2011_v21 = vadd.f32 %v4816_v32, %v4490_v34 }
 0xbe7   :  { %2421 = vmatmul.f32.vlgmr.msra.gmra.mxu0 %v2404_v51  ;;  %2441 = vmatmul.f32.vlgmr.msra.gmra.mxu1 %v2404_v51 }
 0xbe8   :  { %2461 = vmatmul.f32.vlgmr.msra.gmra.mxu3 %v2404_v51 }
 0xc64   :  { %v2422_v50 = vpop.f32.mrf.mxu0  ;;  %v2442_v63 = vpop.f32.mrf.mxu1 }
 0xc65   :  { %v2423_v33 = vadd.f32 %v2422_v50, %v4488_v27  ;;  %v2443_v3 = vadd.f32 %v2442_v63, %v4510_v37 }
 0xc67   :  { %v2465_v29 = vadd.f32 %v2423_v33, %v2008_v60  ;;  %v2485_v40 = vadd.f32 %v2443_v3, %v2040_v35 }
 0xc69   :  { %v2466_v47 = vsub.f32 0.0, %v2465_v29  ;;  %v2486_v14 = vsub.f32 0.0, %v2485_v40 }
 0xc6b   :  { %v2467_v38 = vmul.f32 1.442695, %v2466_v47  ;;  %v2487_v59 = vmul.f32 1.442695, %v2486_v14  ;;  %v2462_v58 = vpop.f32.mrf.mxu3 }
 0xc6c   :  { %v2463_v61 = vadd.f32 %v2462_v58, %v4516_v15 }
 0xc6d   :  { %2900 = vpow2.f32 %v2467_v38 }
 0xc6e   :  { %2902 = vpow2.f32 %v2487_v59 }
 0xc73   :  { %v2901_v52 = vpop.eup %2900 }
 0xc74   :  { %v2903_v43 = vpop.eup %2902  ;;  %v2469_v22 = vadd.f32 1.0, %v2901_v52 }
 0xc75   :  { %v2489_v49 = vadd.f32 1.0, %v2903_v43 }
 0xc76   :  { %2904 = vrcp.f32 %v2469_v22  ;;  %v2481_v39 = vand.u32 2147483648, %v2469_v22  ;;  %v2479_v13 = vand.u32 2147483647, %v2469_v22  ;;  %vm2475_vm8 = vweird.f32 %v2469_v22 }
 0xc77   :  { %2906 = vrcp.f32 %v2489_v49  ;;  %v2501_v24 = vand.u32 2147483648, %v2489_v49  ;;  %vm2495_vm12 = vweird.f32 %v2489_v49  ;;  %v2499_v31 = vand.u32 2147483647, %v2489_v49 }
 0xc78   :  { %v2482_v10 = vor.u32 1.1754944e-38, %v2481_v39  ;;  %vm2480_vm10 = vcmp.eq.f32.partialorder %v2479_v13, 8.507059e+37 }
 0xc79   :  { %v2502_v54 = vor.u32 1.1754944e-38, %v2501_v24  ;;  %vm2500_vm14 = vcmp.eq.f32.partialorder %v2499_v31, 8.507059e+37  ;;  %v2666_v31 = vld [vmem:[%s4694_s9 + $0x70] sm:$0xff] }
 0xc7c   :  { %v2905_v48 = vpop.eup %2904 }
 0xc7d   :  { %v2907_v56 = vpop.eup %2906  ;;  %v2471_v20 = vmul.f32 %v2905_v48, %v2469_v22  ;;  %vm2476_vm7 = vweird.f32 %v2905_v48 }
 0xc7e   :  { %v2491_v7 = vmul.f32 %v2907_v56, %v2489_v49  ;;  %vm2477_vm9 = vmor %vm2475_vm8, %vm2476_vm7  ;;  %vm2496_vm11 = vweird.f32 %v2907_v56 }
 0xc7f   :  { %v2472_v19 = vsub.f32 1.0, %v2471_v20  ;;  %vm2497_vm13 = vmor %vm2495_vm12, %vm2496_vm11 }
 0xc80   :  { %v2492_v8 = vsub.f32 1.0, %v2491_v7 }
 0xc81   :  { %v2473_v26 = vmul.f32 %v2905_v48, %v2472_v19  ;;  %v2075_v19 = vadd.f32 %v4563_v55, %v4519_v25  ;;  %v2667_v25 = vld [vmem:[%s4694_s9 + $0x78] sm:$0xff] }
 0xc82   :  { %v2493_v23 = vmul.f32 %v2907_v56, %v2492_v8  ;;  %2672 = vmatpush.msrb.mxu3 %v2667_v25 }
 0xc83   :  { %v2474_v53 = vadd.f32 %v2905_v48, %v2473_v26 }
 0xc84   :  { %v2494_v41 = vadd.f32 %v2907_v56, %v2493_v23  ;;  %2673 = vmatpush.msrb.mxu3 %v2666_v31 }
 0xc85   :  { %v2478_v1 = vsel %vm2477_vm9, %v2905_v48, %v2474_v53 }
 0xc86   :  { %v2483_v9 = vsel %vm2480_vm10, %v2482_v10, %v2478_v1  ;;  %v2498_v11 = vsel %vm2497_vm13, %v2907_v56, %v2494_v41  ;;  %v4817_v41 = vld [vmem:[#allocation8_spill] sm:$0xff] }
 0xc87   :  { %v2505_v42 = vmul.f32 %v2483_v9, %v2463_v61  ;;  %v2503_v44 = vsel %vm2500_vm14, %v2502_v54, %v2498_v11  ;;  %v2664_v11 = vld [vmem:[%s4694_s9 + $0x60] sm:$0xff]  ;;  %v2663_v54 = vld [vmem:[%s4694_s9 + $0x58] sm:$0xff] }
 0xc88   :  { %v2508_v36 = vsub.f32 1.0, %v2503_v44  ;;  %v2510_v17 = vmul.f32 %v2503_v44, %v2404_v51  ;;  %v2662_v44 = vld [vmem:[%s4694_s9 + $0x50] sm:$0xff] }
 0xc89   :  { %v2506_v5 = vadd.f32 %v2505_v42, %v2072_v2 }
 0xc8b   :  { %2908 = vtanh.f32 %v2506_v5  ;;  %v2665_v5 = vld [vmem:[%s4694_s9 + $0x68] sm:$0xff] }
 0xc8c   :  { %2674 = vmatpush.msrb.mxu3 %v2665_v5 }
 0xc8e   :  { %2675 = vmatpush.msrb.mxu3 %v2664_v11 }
 0xc90   :  { %2676 = vmatpush.msrb.mxu3 %v2663_v54 }
 0xc91   :  { %v2909_v0 = vpop.eup %2908 }
 0xc92   :  { %v2509_v18 = vmul.f32 %v2909_v0, %v2508_v36  ;;  %2677 = vmatpush.msrb.mxu3 %v2662_v44  ;;  %v2661_v36 = vld [vmem:[%s4694_s9 + $0x48] sm:$0xff]  ;;  %v2660_v0 = vld [vmem:[%s4694_s9 + $0x40] sm:$0xff] }
 0xc94   :  { %v2511_v62 = vadd.f32 %v2510_v17, %v2509_v18  ;;  %2678 = vmatpush.msrb.mxu3 %v2661_v36  ;;  %v2659_v18 = vld [vmem:[%s4694_s9 + $0x38] sm:$0xff]  ;;  %v2658_v17 = vld [vmem:[%s4694_s9 + $0x30] sm:$0xff] }
 0xc96   :  { %2528 = vmatmul.f32.vlgmr.msrb.gmra.mxu2 %v2511_v62  ;;  %2548 = vmatmul.f32.vlgmr.msrb.gmra.mxu0 %v2511_v62 }
 0xc97   :  { %2568 = vmatmul.f32.vlgmr.msrb.gmra.mxu1 %v2511_v62  ;;  %2679 = vmatpush.msrb.mxu3 %v2660_v0 }
 0xc99   :  { %2680 = vmatpush.msrb.mxu3 %v2659_v18 }
 0xc9b   :  { %2681 = vmatpush.msrb.mxu3 %v2658_v17 }
 0xd13   :  { %v2549_v46 = vpop.f32.mrf.mxu0 }
 0xd14   :  { %v2550_v28 = vadd.f32 %v2549_v46, %v4510_v37  ;;  %v2569_v52 = vpop.f32.mrf.mxu1  ;;  %v2656_v46 = vld [vmem:[%s4694_s9 + $0x20] sm:$0xff] }
 0xd15   :  { %v2570_v48 = vadd.f32 %v2569_v52, %v4516_v15 }
 0xd16   :  { %v2592_v6 = vadd.f32 %v2550_v28, %v2043_v16  ;;  %v2654_v16 = vld [vmem:[%s4694_s9 + $0x10] sm:$0xff]  ;;  %v2653_v28 = vld [vmem:[%s4694_s9 + $0x8] sm:$0xff] }
 0xd18   :  { %v2593_v30 = vsub.f32 0.0, %v2592_v6  ;;  %v2652_v6 = vld [vmem:[%s4694_s9] sm:$0xff] }
 0xd19   :  { %v2529_v45 = vpop.f32.mrf.mxu2 }
 0xd1a   :  { %v2594_v50 = vmul.f32 1.442695, %v2593_v30  ;;  %v2530_v63 = vadd.f32 %v2529_v45, %v4488_v27 }
 0xd1c   :  { %2910 = vpow2.f32 %v2594_v50  ;;  %v2572_v51 = vadd.f32 %v2530_v63, %v2011_v21 }
 0xd1e   :  { %v2573_v60 = vsub.f32 0.0, %v2572_v51 }
 0xd20   :  { %v2574_v4 = vmul.f32 1.442695, %v2573_v60 }
 0xd22   :  { %v2911_v35 = vpop.eup %2910  ;;  %2912 = vpow2.f32 %v2574_v4 }
 0xd23   :  { %v2596_v33 = vadd.f32 1.0, %v2911_v35  ;;  %v2745_v35 = vld [vmem:[%s4692_s7 + $0x2] ss:$0 sm:$0xff] }
 0xd25   :  { %2914 = vrcp.f32 %v2596_v33  ;;  %v2608_v8 = vand.u32 2147483648, %v2596_v33  ;;  %vm2602_vm4 = vweird.f32 %v2596_v33  ;;  %v2606_v26 = vand.u32 2147483647, %v2596_v33 }
 0xd27   :  { %v2609_v23 = vor.u32 1.1754944e-38, %v2608_v8  ;;  %vm2607_vm6 = vcmp.eq.f32.partialorder %v2606_v26, 8.507059e+37 }
 0xd28   :  { %v2913_v12 = vpop.eup %2912 }
 0xd29   :  { %v2576_v3 = vadd.f32 1.0, %v2913_v12 }
 0xd2b   :  { %2916 = vrcp.f32 %v2576_v3  ;;  %v2915_v37 = vpop.eup %2914  ;;  %v2588_v38 = vand.u32 2147483648, %v2576_v3  ;;  %v2586_v27 = vand.u32 2147483647, %v2576_v3  ;;  %vm2582_vm0 = vweird.f32 %v2576_v3 }
 0xd2c   :  { %v2598_v29 = vmul.f32 %v2915_v37, %v2596_v33  ;;  %vm2603_vm3 = vweird.f32 %v2915_v37 }
 0xd2d   :  { %v2589_v49 = vor.u32 1.1754944e-38, %v2588_v38  ;;  %vm2587_vm2 = vcmp.eq.f32.partialorder %v2586_v27, 8.507059e+37  ;;  %vm2604_vm5 = vmor %vm2602_vm4, %vm2603_vm3 }
 0xd2e   :  { %v2599_v14 = vsub.f32 1.0, %v2598_v29 }
 0xd30   :  { %v2600_v43 = vmul.f32 %v2915_v37, %v2599_v14 }
 0xd31   :  { %v2917_v40 = vpop.eup %2916 }
 0xd32   :  { %v2578_v47 = vmul.f32 %v2917_v40, %v2576_v3  ;;  %vm2583_vm15 = vweird.f32 %v2917_v40  ;;  %v2601_v7 = vadd.f32 %v2915_v37, %v2600_v43  ;;  %v2746_v3 = vld [vmem:[%s4693_s8 + $0x2] ss:$0 sm:$0xff] }
 0xd33   :  { %vm2584_vm1 = vmor %vm2582_vm0, %vm2583_vm15 }
 0xd34   :  { %v2579_v34 = vsub.f32 1.0, %v2578_v47  ;;  %v2605_v58 = vsel %vm2604_vm5, %v2915_v37, %v2601_v7  ;;  %v2692_v47 = vlaneseq }
 0xd35   :  { %v2610_v53 = vsel %vm2607_vm6, %v2609_v23, %v2605_v58 }
 0xd36   :  { %v2580_v59 = vmul.f32 %v2917_v40, %v2579_v34  ;;  %v2615_v15 = vsub.f32 1.0, %v2610_v53  ;;  %v2617_v1 = vmul.f32 %v2610_v53, %v2511_v62  ;;  %v2657_v62 = vld [vmem:[%s4694_s9 + $0x28] sm:$0xff]  ;;  %v2693_v14 = vand.u32 127, %v2692_v47  ;;  %v2747_v34 = vld [vmem:[%s4695_s10] ss:$0 sm:$0xff] }
 0xd37   :  { %2682 = vmatpush.msrb.mxu3 %v2657_v62 }
 0xd38   :  { %v2581_v22 = vadd.f32 %v2917_v40, %v2580_v59  ;;  %vm2694_vm10 = vcmp.lt.s32.totalorder %v2693_v14, 2 }
 0xd39   :  { %2683 = vmatpush.msrb.mxu3 %v2656_v46 }
 0xd3a   :  { %v2585_v56 = vsel %vm2584_vm1, %v2917_v40, %v2581_v22 }
 0xd3b   :  { %v2590_v20 = vsel %vm2587_vm2, %v2589_v49, %v2585_v56  ;;  %2684 = vmatpush.msrb.mxu3 %v2655_v57 }
 0xd3c   :  { %v2612_v39 = vmul.f32 %v2590_v20, %v2570_v48 }
 0xd3d   :  { %2685 = vmatpush.msrb.mxu3 %v2654_v16 }
 0xd3e   :  { %v2613_v13 = vadd.f32 %v2612_v39, %v2075_v19 }
 0xd3f   :  { %2686 = vmatpush.msrb.mxu3 %v2653_v28 }
 0xd40   :  { %2918 = vtanh.f32 %v2613_v13 }
 0xd41   :  { %2687 = vmatpush.msrb.mxu3 %v2652_v6 }
 0xd46   :  { %v2919_v10 = vpop.eup %2918 }
 0xd47   :  { %v2616_v61 = vmul.f32 %v2919_v10, %v2615_v15 }
 0xd49   :  { %v2618_v9 = vadd.f32 %v2617_v1, %v2616_v61 }
 0xd4b   :  { %2619 = vadd.xlane.f32.xlu2 %v2618_v9 }
 0xdbe   :  { %v2620_v55 = vpop.xlane.xlu2 %2619 }
 0xdbf   :  { %v2621_v2 = vmul.f32 %v2620_v55, %v4817_v41 }
 0xdc1   :  { %v2622_v42 = vsub.f32 %v2618_v9, %v2621_v2 }
 0xdc3   :  { %v2623_v24 = vmul.f32 %v2622_v42, %v2622_v42 }
 0xdc5   :  { %2624 = vadd.xlane.f32.xlu0 %v2623_v24 }
 0xe38   :  { %v2625_v30 = vpop.xlane.xlu0 %2624 }
 0xe39   :  { %v2626_v45 = vmul.f32 %v2625_v30, %v4817_v41 }
 0xe3b   :  { %v2627_v32 = vadd.f32 1e-05, %v2626_v45 }
 0xe3d   :  { %2920 = vrsqrt.f32 %v2627_v32  ;;  %vm2634_vm8 = vweird.f32 %v2627_v32 }
 0xe43   :  { %v2921_v21 = vpop.eup %2920 }
 0xe44   :  { %v2629_v50 = vmul.f32 %v2921_v21, %v2627_v32  ;;  %vm2635_vm7 = vweird.f32 %v2921_v21 }
 0xe45   :  { %vm2636_vm9 = vmor %vm2634_vm8, %vm2635_vm7 }
 0xe46   :  { %v2630_v63 = vmul.f32 %v2921_v21, %v2629_v50 }
 0xe48   :  { %v2631_v51 = vmul.f32 0.5, %v2630_v63 }
 0xe4a   :  { %v2632_v60 = vsub.f32 1.5, %v2631_v51 }
 0xe4c   :  { %v2633_v4 = vmul.f32 %v2921_v21, %v2632_v60 }
 0xe4e   :  { %v2637_v33 = vsel %vm2636_vm9, %v2921_v21, %v2633_v4 }
 0xe4f   :  { %v2638_v12 = vmul.f32 %v2637_v33, %v2622_v42 }
 0xe51   :  { %v2644_v37 = vmul.f32 %v2745_v35, %v2638_v12 }
 0xe53   :  { %v2650_v29 = vadd.f32 %v2746_v3, %v2644_v37 }
 0xe55   :  { %v2651_v40 = vmax.f32 %v2650_v29, 0.0 }
 0xe57   :  { %2688 = vmatmul.f32.vlgmr.msrb.gmra.mxu3 %v2651_v40 }
 0xeda   :  { %v2689_v38 = vpop.f32.mrf.mxu3 }
 0xedb   :  { %v2690_v59 = vadd.f32 %v2747_v34, %v2689_v38 }
 0xedd   :  { %v2695_v27 = vsel %vm2694_vm10, %v2690_v59, -1e+30 }
 0xede   :  { %2696 = vmax.xlane.f32.xlu1 %v2695_v27 }
 0xf51   :  { %v2697_v52 = vpop.xlane.xlu1 %2696 }
 0xf52   :  { %v2698_v43 = vsub.f32 %v2695_v27, %v2697_v52 }
 0xf54   :  { %v2699_v22 = vmul.f32 1.442695, %v2698_v43 }
 0xf56   :  { %2922 = vpow2.f32 %v2699_v22 }
 0xf5c   :  { %v2923_v49 = vpop.eup %2922 }
 0xf5d   :  { %v2701_v48 = vsel %vm2694_vm10, %v2923_v49, 0.0 }
 0xf5e   :  { %2702 = vadd.xlane.f32.xlu2 %v2701_v48 }
 0xfd1   :  { %v2703_v56 = vpop.xlane.xlu2 %2702 }
 0xfd2   :  { %2924 = vrcp.f32 %v2703_v56  ;;  %v2715_v8 = vand.u32 2147483648, %v2703_v56  ;;  %v2713_v26 = vand.u32 2147483647, %v2703_v56  ;;  %vm2709_vm12 = vweird.f32 %v2703_v56 }
 0xfd4   :  { %v2716_v58 = vor.u32 1.1754944e-38, %v2715_v8  ;;  %vm2714_vm14 = vcmp.eq.f32.partialorder %v2713_v26, 8.507059e+37 }
 0xfd8   :  { %v2925_v20 = vpop.eup %2924 }
 0xfd9   :  { %v2705_v7 = vmul.f32 %v2925_v20, %v2703_v56  ;;  %vm2710_vm11 = vweird.f32 %v2925_v20 }
 0xfda   :  { %vm2711_vm13 = vmor %vm2709_vm12, %vm2710_vm11 }
 0xfdb   :  { %v2706_v19 = vsub.f32 1.0, %v2705_v7 }
 0xfdd   :  { %v2707_v39 = vmul.f32 %v2925_v20, %v2706_v19 }
 0xfdf   :  { %v2708_v13 = vadd.f32 %v2925_v20, %v2707_v39 }
 0xfe1   :  { %v2712_v23 = vsel %vm2711_vm13, %v2925_v20, %v2708_v13 }
 0xfe2   :  { %v2717_v53 = vsel %vm2714_vm14, %v2716_v58, %v2712_v23 }
 0xfe3   :  { %v2718_v15 = vmul.f32 %v2717_v53, %v2701_v48 }
 0xfe5   :  { %2719 = vst [vmem:[%s4696_s11] sm:$0xff] %v2718_v15 }
 0xfe6   :  { %2724 = vsyncpa [#allocation3], 1 }
 0xfe7   :  { %2725 = vsyncpa [#allocation5], 1 }

</bundles_post_ra>
